<compile_context>
chip_gen: v6e
topology: v6e:2x2x1
jax: 0.10.0
libtpu: 0.0.40
codegen_flags: <defaults>
</compile_context>

<pallas_src>
import functools
from typing import List

import numpy as np
import jax
import jax.numpy as jnp
from jax.experimental import pallas as pl
from jax.experimental.pallas import tpu as pltpu


# ----------------------------------------------------------------------------
# Constant helper matrices (built once per config, in numpy -> embedded consts)
# ----------------------------------------------------------------------------
def _conv_gather_matrices(H, W, Ho, Wo, k, stride, pad):
    """G[t] is a 0/1 (H*W, Ho*Wo) matrix: A_flat @ G[t] gathers, for every output
    position q=(ho,wo), the input pixel hit by kernel tap t=(ki,kj) at the given
    stride.  Out-of-bounds taps stay all-zero -> implements zero padding."""
    G = np.zeros((k * k, H * W, Ho * Wo), np.float32)
    for ki in range(k):
        for kj in range(k):
            t = ki * k + kj
            for ho in range(Ho):
                hi = stride * ho + ki - pad
                if hi < 0 or hi >= H:
                    continue
                for wo in range(Wo):
                    wi = stride * wo + kj - pad
                    if wi < 0 or wi >= W:
                        continue
                    G[t, hi * W + wi, ho * Wo + wo] = 1.0
    return G


def _group_pool_matrix(C, groups, S):
    """pool[c, c'] = 1/(Cg*S) if c, c' belong to the same GroupNorm group.
    pool @ per-channel-row-sums == per-channel group mean (broadcast back)."""
    Cg = C // groups
    cid = np.arange(C) // Cg
    return np.where(cid[:, None] == cid[None, :],
                    1.0 / (Cg * S), 0.0).astype(np.float32)


# ----------------------------------------------------------------------------
# Fully fused stack kernel (one invocation per sample)
# ----------------------------------------------------------------------------
def _build_stack_kernel(layer_meta, eps, compute_dtype):
    n_in = 1
    for m in layer_meta:
        n_in += 2 + int(m["has_gather"]) + int(m["apply_act_norm"])

    def kernel(*refs):
        o_ref = refs[n_in]                      # output block (1, Cout_last, S_last)
        a = refs[0][0]                          # (Cin0, S0) activation, compute dtype
        pos = 1
        y = None
        for m in layer_meta:
            gmat_ref = None
            if m["has_gather"]:
                gmat_ref = refs[pos]; pos += 1  # (k*k, S_in, S_out)
            w_ref = refs[pos]; pos += 1         # (k*k, Cout, Cin)
            p_ref = refs[pos]; pos += 1         # (3, Cout, 1): bias, gamma, beta
            pool_ref = None
            if m["apply_act_norm"]:
                pool_ref = refs[pos]; pos += 1  # (Cout, Cout) group-pool matrix

            # ---- conv: sum over kernel taps of W_t @ (A @ G_t)  (all MXU) ----
            y = jnp.zeros((m["Cout"], m["S_out"]), jnp.float32)
            for t in range(m["kk"]):
                if gmat_ref is None:            # 1x1, stride 1, pad 0
                    at = a
                else:                           # exact 0/1 gather (no rounding)
                    at = jnp.dot(a, gmat_ref[t],
                                 preferred_element_type=compute_dtype)
                y = y + jnp.dot(w_ref[t], at,
                                preferred_element_type=jnp.float32)
            y = y + p_ref[0]                    # conv bias (Cout,1) broadcast

            if m["apply_act_norm"]:
                # CELU(alpha=1)
                y = jnp.where(y > 0.0, y, jnp.exp(y) - 1.0)
                # GroupNorm, two-pass variance (numerically safe), f32 math.
                row_sum = jnp.sum(y, axis=1, keepdims=True)              # (Cout,1)
                mean_c = jnp.dot(pool_ref[...], row_sum,
                                 preferred_element_type=jnp.float32)     # group mean / channel
                d = y - mean_c
                row_sq = jnp.sum(d * d, axis=1, keepdims=True)
                var_c = jnp.dot(pool_ref[...], row_sq,
                                preferred_element_type=jnp.float32)
                y = d * jax.lax.rsqrt(var_c + eps)
                y = y * p_ref[1] + p_ref[2]                              # GN affine

            a = y.astype(compute_dtype)          # stays in VMEM for the next layer

        o_ref[0] = y.astype(o_ref.dtype)

    return kernel, n_in


# ----------------------------------------------------------------------------
# Wrapper: assemble operands / specs from the module config and call the kernel
# ----------------------------------------------------------------------------
def stack_conv_norm_forward(x, params, layer_cfg, norm_act_final,
                            compute_dtype=jnp.bfloat16, eps=1e-5):
    """x: (N, C, H, W) NCHW.  params[i] = (w OIHW, bias, gn_weight, gn_bias)."""
    N, C0, H, W = x.shape
    n_layers = len(layer_cfg)

    operands = [x.reshape(N, C0, H * W).astype(compute_dtype)]
    in_specs = [pl.BlockSpec((1, C0, H * W), lambda n: (n, 0, 0))]
    layer_meta = []

    Hc, Wc, Cin = H, W, C0
    for i, (f, k, s, g) in enumerate(layer_cfg):
        stride = 1 if s == 0 else s
        pad = 0 if s == 0 else (k - 1) // 2
        Ho = (Hc + 2 * pad - k) // stride + 1
        Wo = (Wc + 2 * pad - k) // stride + 1
        S_in, S_out = Hc * Wc, Ho * Wo
        is_last = i == n_layers - 1
        apply_act_norm = not (is_last and not norm_act_final)
        has_gather = not (k == 1 and stride == 1 and pad == 0)

        w, b, gw, gb = params[i]

        if has_gather:
            gmat = jnp.asarray(_conv_gather_matrices(Hc, Wc, Ho, Wo, k, stride, pad),
                               dtype=compute_dtype)              # (k*k, S_in, S_out)
            operands.append(gmat)
            in_specs.append(pl.BlockSpec(gmat.shape, lambda n: (0, 0, 0)))

        # OIHW -> (k*k, Cout, Cin); tap index t = ki*k + kj matches the gather matrices.
        w_taps = jnp.transpose(w.reshape(f, Cin, k * k), (2, 0, 1)).astype(compute_dtype)
        operands.append(w_taps)
        in_specs.append(pl.BlockSpec(w_taps.shape, lambda n: (0, 0, 0)))

        p = jnp.stack([b, gw, gb]).reshape(3, f, 1).astype(jnp.float32)
        operands.append(p)
        in_specs.append(pl.BlockSpec(p.shape, lambda n: (0, 0, 0)))

        if apply_act_norm:
            pool = jnp.asarray(_group_pool_matrix(f, g, S_out), dtype=jnp.float32)
            operands.append(pool)
            in_specs.append(pl.BlockSpec(pool.shape, lambda n: (0, 0)))

        layer_meta.append(dict(kk=k * k, Cin=Cin, Cout=f, S_in=S_in, S_out=S_out,
                               groups=g, apply_act_norm=apply_act_norm,
                               has_gather=has_gather))
        Hc, Wc, Cin = Ho, Wo, f

    kernel, n_in = _build_stack_kernel(layer_meta, eps, compute_dtype)
    assert n_in == len(operands)

    out = pl.pallas_call(
        kernel,
        out_shape=jax.ShapeDtypeStruct((N, Cin, Hc * Wc), jnp.float32),
        grid=(N,),
        in_specs=in_specs,
        out_specs=pl.BlockSpec((1, Cin, Hc * Wc), lambda n: (n, 0, 0)),
        compiler_params=pltpu.CompilerParams(
            dimension_semantics=("parallel",),          # N=2 feeds both v7x TCs
            vmem_limit_bytes=32 * 1024 * 1024,          # far above actual use; v7x-safe
        ),
    )(*operands)
    return out.reshape(N, Cin, Hc, Wc)


# ----------------------------------------------------------------------------
# Pure-JAX reference (matches the PyTorch module) + param init
# ----------------------------------------------------------------------------
def reference_forward(x, params, layer_cfg, norm_act_final, eps=1e-5):
    n_layers = len(layer_cfg)
    for i, (f, k, s, g) in enumerate(layer_cfg):
        w, b, gw, gb = params[i]
        stride = 1 if s == 0 else s
        pad = 0 if s == 0 else (k - 1) // 2
        x = jax.lax.conv_general_dilated(
            x, w, window_strides=(stride, stride),
            padding=[(pad, pad), (pad, pad)],
            dimension_numbers=("NCHW", "OIHW", "NCHW"),
            precision=jax.lax.Precision.HIGHEST)
        x = x + b.reshape(1, -1, 1, 1)
        if i == n_layers - 1 and not norm_act_final:
            break
        x = jnp.where(x > 0, x, jnp.expm1(x))            # CELU(alpha=1)
        N, C, Hh, Ww = x.shape
        xg = x.reshape(N, g, C // g, Hh, Ww)
        mean = xg.mean(axis=(2, 3, 4), keepdims=True)
        var = ((xg - mean) ** 2).mean(axis=(2, 3, 4), keepdims=True)
        x = ((xg - mean) / jnp.sqrt(var + eps)).reshape(N, C, Hh, Ww)
        x = x * gw.reshape(1, -1, 1, 1) + gb.reshape(1, -1, 1, 1)
    return x


def init_params(key, dim_inp: int, filters: List[int],
                kernel_sizes: List[int], strides: List[int]):
    params = []
    dim_prev = dim_inp
    for f, k, s in zip(filters, kernel_sizes, strides):
        key, kw, kb, kgw, kgb = jax.random.split(key, 5)
        fan_in = dim_prev * k * k
        w = jax.random.normal(kw, (f, dim_prev, k, k), jnp.float32) / jnp.sqrt(fan_in)
        b = 0.05 * jax.random.normal(kb, (f,), jnp.float32)
        gw = 1.0 + 0.1 * jax.random.normal(kgw, (f,), jnp.float32)
        gb = 0.05 * jax.random.normal(kgb, (f,), jnp.float32)
        params.append((w, b, gw, gb))
        dim_prev = f
    return params


if __name__ == "__main__":
    # Module config (exercises stride=1, stride=2, and the s==0 1x1 branch).
    dim_inp = 4
    filters = [8, 16, 8]
    kernel_sizes = [3, 3, 1]
    strides = [1, 2, 0]
    groupings = [2, 4, 2]
    norm_act_final = False

    key = jax.random.PRNGKey(0)
    key, kx = jax.random.split(key)
    x = jax.random.normal(kx, (2, dim_inp, 16, 16), jnp.float32)   # NCHW

    params = init_params(key, dim_inp, filters, kernel_sizes, strides)
    layer_cfg = list(zip(filters, kernel_sizes, strides, groupings))

    ref = reference_forward(x, params, layer_cfg, norm_act_final)

    # 1) f32 compute path: strict algorithmic check against the XLA reference.
    fwd_f32 = jax.jit(functools.partial(
        stack_conv_norm_forward, layer_cfg=layer_cfg,
        norm_act_final=norm_act_final, compute_dtype=jnp.float32))
    out_f32 = jax.block_until_ready(fwd_f32(x, params))
    assert out_f32.shape == ref.shape, (out_f32.shape, ref.shape)
    err_f32 = float(jnp.max(jnp.abs(out_f32 - ref)))
    assert err_f32 < 1e-2, f"f32 path mismatch: max abs err {err_f32}"

    # 2) bf16 fast path (bf16 MXU inputs, f32 accumulate / CELU / GN math).
    fwd_bf16 = jax.jit(functools.partial(
        stack_conv_norm_forward, layer_cfg=layer_cfg,
        norm_act_final=norm_act_final, compute_dtype=jnp.bfloat16))
    out_bf16 = jax.block_until_ready(fwd_bf16(x, params))
    assert out_bf16.shape == ref.shape, (out_bf16.shape, ref.shape)
    err_bf16 = float(jnp.max(jnp.abs(out_bf16 - ref)))
    assert err_bf16 < 1e-1, f"bf16 path mismatch: max abs err {err_bf16}"

    print("KERNEL_OK")
</pallas_src>

<mosaic_0001>
module attributes {stable_mosaic.version = 11 : i64} {
  func.func @kernel(%arg0: i32, %arg1: memref<1x4x256xf32, #tpu.memory_space<vmem>>, %arg2: memref<9x256x256xf32, #tpu.memory_space<vmem>>, %arg3: memref<9x8x4xf32, #tpu.memory_space<vmem>>, %arg4: memref<3x8x1xf32, #tpu.memory_space<vmem>>, %arg5: memref<8x8xf32, #tpu.memory_space<vmem>>, %arg6: memref<9x256x64xf32, #tpu.memory_space<vmem>>, %arg7: memref<9x16x8xf32, #tpu.memory_space<vmem>>, %arg8: memref<3x16x1xf32, #tpu.memory_space<vmem>>, %arg9: memref<16x16xf32, #tpu.memory_space<vmem>>, %arg10: memref<1x8x16xf32, #tpu.memory_space<vmem>>, %arg11: memref<3x8x1xf32, #tpu.memory_space<vmem>>, %arg12: memref<1x8x64xf32, #tpu.memory_space<vmem>>) attributes {dimension_semantics = [#tpu.dimension_semantics<parallel>], iteration_bounds = array<i64: 2>, scalar_prefetch = 0 : i64, scratch_operands = 0 : i64, tpu.core_type = #tpu.core_type<tc>, window_params = [{transform_indices = @transform_0, window_bounds = array<i64: 1, 4, 256>}, {pipeline_mode = #tpu.pipeline_mode<synchronous>, transform_indices = @transform_1, window_bounds = array<i64: 9, 256, 256>}, {pipeline_mode = #tpu.pipeline_mode<synchronous>, transform_indices = @transform_2, window_bounds = array<i64: 9, 8, 4>}, {pipeline_mode = #tpu.pipeline_mode<synchronous>, transform_indices = @transform_3, window_bounds = array<i64: 3, 8, 1>}, {pipeline_mode = #tpu.pipeline_mode<synchronous>, transform_indices = @transform_4, window_bounds = array<i64: 8, 8>}, {pipeline_mode = #tpu.pipeline_mode<synchronous>, transform_indices = @transform_5, window_bounds = array<i64: 9, 256, 64>}, {pipeline_mode = #tpu.pipeline_mode<synchronous>, transform_indices = @transform_6, window_bounds = array<i64: 9, 16, 8>}, {pipeline_mode = #tpu.pipeline_mode<synchronous>, transform_indices = @transform_7, window_bounds = array<i64: 3, 16, 1>}, {pipeline_mode = #tpu.pipeline_mode<synchronous>, transform_indices = @transform_8, window_bounds = array<i64: 16, 16>}, {pipeline_mode = #tpu.pipeline_mode<synchronous>, transform_indices = @transform_9, window_bounds = array<i64: 1, 8, 16>}, {pipeline_mode = #tpu.pipeline_mode<synchronous>, transform_indices = @transform_10, window_bounds = array<i64: 3, 8, 1>}, {transform_indices = @transform_11, window_bounds = array<i64: 1, 8, 64>}]} {
    %c0 = arith.constant 0 : index
    %c0_0 = arith.constant 0 : index
    %c0_1 = arith.constant 0 : index
    %0 = vector.load %arg1[%c0, %c0_0, %c0_1] : memref<1x4x256xf32, #tpu.memory_space<vmem>>, vector<1x4x256xf32>
    %1 = vector.shape_cast %0 : vector<1x4x256xf32> to vector<4x256xf32>
    %cst = arith.constant 0.000000e+00 : f32
    %2 = vector.broadcast %cst : f32 to vector<8x256xf32>
    %c0_2 = arith.constant 0 : index
    %c0_3 = arith.constant 0 : index
    %c0_4 = arith.constant 0 : index
    %3 = vector.load %arg2[%c0_2, %c0_3, %c0_4] : memref<9x256x256xf32, #tpu.memory_space<vmem>>, vector<1x256x256xf32>
    %4 = vector.shape_cast %3 : vector<1x256x256xf32> to vector<256x256xf32>
    %cst_5 = arith.constant dense<0.000000e+00> : vector<4x256xf32>
    %5 = tpu.matmul %1, %4, %cst_5 {dimension_numbers = #tpu.dot_dimension_numbers<[1], [0], [0], [1], [0, 0, 1, 1], [], []>} : vector<4x256xf32>, vector<256x256xf32>, vector<4x256xf32> -> vector<4x256xf32>
    %c0_6 = arith.constant 0 : index
    %c0_7 = arith.constant 0 : index
    %c0_8 = arith.constant 0 : index
    %6 = vector.load %arg3[%c0_6, %c0_7, %c0_8] : memref<9x8x4xf32, #tpu.memory_space<vmem>>, vector<1x8x4xf32>
    %7 = vector.shape_cast %6 : vector<1x8x4xf32> to vector<8x4xf32>
    %cst_9 = arith.constant dense<0.000000e+00> : vector<8x256xf32>
    %8 = tpu.matmul %7, %5, %cst_9 {dimension_numbers = #tpu.dot_dimension_numbers<[1], [0], [0], [1], [0, 0, 1, 1], [], []>} : vector<8x4xf32>, vector<4x256xf32>, vector<8x256xf32> -> vector<8x256xf32>
    %9 = arith.addf %2, %8 : vector<8x256xf32>
    %c1 = arith.constant 1 : index
    %c0_10 = arith.constant 0 : index
    %c0_11 = arith.constant 0 : index
    %10 = vector.load %arg2[%c1, %c0_10, %c0_11] : memref<9x256x256xf32, #tpu.memory_space<vmem>>, vector<1x256x256xf32>
    %11 = vector.shape_cast %10 : vector<1x256x256xf32> to vector<256x256xf32>
    %cst_12 = arith.constant dense<0.000000e+00> : vector<4x256xf32>
    %12 = tpu.matmul %1, %11, %cst_12 {dimension_numbers = #tpu.dot_dimension_numbers<[1], [0], [0], [1], [0, 0, 1, 1], [], []>} : vector<4x256xf32>, vector<256x256xf32>, vector<4x256xf32> -> vector<4x256xf32>
    %c1_13 = arith.constant 1 : index
    %c0_14 = arith.constant 0 : index
    %c0_15 = arith.constant 0 : index
    %13 = vector.load %arg3[%c1_13, %c0_14, %c0_15] : memref<9x8x4xf32, #tpu.memory_space<vmem>>, vector<1x8x4xf32>
    %14 = vector.shape_cast %13 : vector<1x8x4xf32> to vector<8x4xf32>
    %cst_16 = arith.constant dense<0.000000e+00> : vector<8x256xf32>
    %15 = tpu.matmul %14, %12, %cst_16 {dimension_numbers = #tpu.dot_dimension_numbers<[1], [0], [0], [1], [0, 0, 1, 1], [], []>} : vector<8x4xf32>, vector<4x256xf32>, vector<8x256xf32> -> vector<8x256xf32>
    %16 = arith.addf %9, %15 : vector<8x256xf32>
    %c2 = arith.constant 2 : index
    %c0_17 = arith.constant 0 : index
    %c0_18 = arith.constant 0 : index
    %17 = vector.load %arg2[%c2, %c0_17, %c0_18] : memref<9x256x256xf32, #tpu.memory_space<vmem>>, vector<1x256x256xf32>
    %18 = vector.shape_cast %17 : vector<1x256x256xf32> to vector<256x256xf32>
    %cst_19 = arith.constant dense<0.000000e+00> : vector<4x256xf32>
    %19 = tpu.matmul %1, %18, %cst_19 {dimension_numbers = #tpu.dot_dimension_numbers<[1], [0], [0], [1], [0, 0, 1, 1], [], []>} : vector<4x256xf32>, vector<256x256xf32>, vector<4x256xf32> -> vector<4x256xf32>
    %c2_20 = arith.constant 2 : index
    %c0_21 = arith.constant 0 : index
    %c0_22 = arith.constant 0 : index
    %20 = vector.load %arg3[%c2_20, %c0_21, %c0_22] : memref<9x8x4xf32, #tpu.memory_space<vmem>>, vector<1x8x4xf32>
    %21 = vector.shape_cast %20 : vector<1x8x4xf32> to vector<8x4xf32>
    %cst_23 = arith.constant dense<0.000000e+00> : vector<8x256xf32>
    %22 = tpu.matmul %21, %19, %cst_23 {dimension_numbers = #tpu.dot_dimension_numbers<[1], [0], [0], [1], [0, 0, 1, 1], [], []>} : vector<8x4xf32>, vector<4x256xf32>, vector<8x256xf32> -> vector<8x256xf32>
    %23 = arith.addf %16, %22 : vector<8x256xf32>
    %c3 = arith.constant 3 : index
    %c0_24 = arith.constant 0 : index
    %c0_25 = arith.constant 0 : index
    %24 = vector.load %arg2[%c3, %c0_24, %c0_25] : memref<9x256x256xf32, #tpu.memory_space<vmem>>, vector<1x256x256xf32>
    %25 = vector.shape_cast %24 : vector<1x256x256xf32> to vector<256x256xf32>
    %cst_26 = arith.constant dense<0.000000e+00> : vector<4x256xf32>
    %26 = tpu.matmul %1, %25, %cst_26 {dimension_numbers = #tpu.dot_dimension_numbers<[1], [0], [0], [1], [0, 0, 1, 1], [], []>} : vector<4x256xf32>, vector<256x256xf32>, vector<4x256xf32> -> vector<4x256xf32>
    %c3_27 = arith.constant 3 : index
    %c0_28 = arith.constant 0 : index
    %c0_29 = arith.constant 0 : index
    %27 = vector.load %arg3[%c3_27, %c0_28, %c0_29] : memref<9x8x4xf32, #tpu.memory_space<vmem>>, vector<1x8x4xf32>
    %28 = vector.shape_cast %27 : vector<1x8x4xf32> to vector<8x4xf32>
    %cst_30 = arith.constant dense<0.000000e+00> : vector<8x256xf32>
    %29 = tpu.matmul %28, %26, %cst_30 {dimension_numbers = #tpu.dot_dimension_numbers<[1], [0], [0], [1], [0, 0, 1, 1], [], []>} : vector<8x4xf32>, vector<4x256xf32>, vector<8x256xf32> -> vector<8x256xf32>
    %30 = arith.addf %23, %29 : vector<8x256xf32>
    %c4 = arith.constant 4 : index
    %c0_31 = arith.constant 0 : index
    %c0_32 = arith.constant 0 : index
    %31 = vector.load %arg2[%c4, %c0_31, %c0_32] : memref<9x256x256xf32, #tpu.memory_space<vmem>>, vector<1x256x256xf32>
    %32 = vector.shape_cast %31 : vector<1x256x256xf32> to vector<256x256xf32>
    %cst_33 = arith.constant dense<0.000000e+00> : vector<4x256xf32>
    %33 = tpu.matmul %1, %32, %cst_33 {dimension_numbers = #tpu.dot_dimension_numbers<[1], [0], [0], [1], [0, 0, 1, 1], [], []>} : vector<4x256xf32>, vector<256x256xf32>, vector<4x256xf32> -> vector<4x256xf32>
    %c4_34 = arith.constant 4 : index
    %c0_35 = arith.constant 0 : index
    %c0_36 = arith.constant 0 : index
    %34 = vector.load %arg3[%c4_34, %c0_35, %c0_36] : memref<9x8x4xf32, #tpu.memory_space<vmem>>, vector<1x8x4xf32>
    %35 = vector.shape_cast %34 : vector<1x8x4xf32> to vector<8x4xf32>
    %cst_37 = arith.constant dense<0.000000e+00> : vector<8x256xf32>
    %36 = tpu.matmul %35, %33, %cst_37 {dimension_numbers = #tpu.dot_dimension_numbers<[1], [0], [0], [1], [0, 0, 1, 1], [], []>} : vector<8x4xf32>, vector<4x256xf32>, vector<8x256xf32> -> vector<8x256xf32>
    %37 = arith.addf %30, %36 : vector<8x256xf32>
    %c5 = arith.constant 5 : index
    %c0_38 = arith.constant 0 : index
    %c0_39 = arith.constant 0 : index
    %38 = vector.load %arg2[%c5, %c0_38, %c0_39] : memref<9x256x256xf32, #tpu.memory_space<vmem>>, vector<1x256x256xf32>
    %39 = vector.shape_cast %38 : vector<1x256x256xf32> to vector<256x256xf32>
    %cst_40 = arith.constant dense<0.000000e+00> : vector<4x256xf32>
    %40 = tpu.matmul %1, %39, %cst_40 {dimension_numbers = #tpu.dot_dimension_numbers<[1], [0], [0], [1], [0, 0, 1, 1], [], []>} : vector<4x256xf32>, vector<256x256xf32>, vector<4x256xf32> -> vector<4x256xf32>
    %c5_41 = arith.constant 5 : index
    %c0_42 = arith.constant 0 : index
    %c0_43 = arith.constant 0 : index
    %41 = vector.load %arg3[%c5_41, %c0_42, %c0_43] : memref<9x8x4xf32, #tpu.memory_space<vmem>>, vector<1x8x4xf32>
    %42 = vector.shape_cast %41 : vector<1x8x4xf32> to vector<8x4xf32>
    %cst_44 = arith.constant dense<0.000000e+00> : vector<8x256xf32>
    %43 = tpu.matmul %42, %40, %cst_44 {dimension_numbers = #tpu.dot_dimension_numbers<[1], [0], [0], [1], [0, 0, 1, 1], [], []>} : vector<8x4xf32>, vector<4x256xf32>, vector<8x256xf32> -> vector<8x256xf32>
    %44 = arith.addf %37, %43 : vector<8x256xf32>
    %c6 = arith.constant 6 : index
    %c0_45 = arith.constant 0 : index
    %c0_46 = arith.constant 0 : index
    %45 = vector.load %arg2[%c6, %c0_45, %c0_46] : memref<9x256x256xf32, #tpu.memory_space<vmem>>, vector<1x256x256xf32>
    %46 = vector.shape_cast %45 : vector<1x256x256xf32> to vector<256x256xf32>
    %cst_47 = arith.constant dense<0.000000e+00> : vector<4x256xf32>
    %47 = tpu.matmul %1, %46, %cst_47 {dimension_numbers = #tpu.dot_dimension_numbers<[1], [0], [0], [1], [0, 0, 1, 1], [], []>} : vector<4x256xf32>, vector<256x256xf32>, vector<4x256xf32> -> vector<4x256xf32>
    %c6_48 = arith.constant 6 : index
    %c0_49 = arith.constant 0 : index
    %c0_50 = arith.constant 0 : index
    %48 = vector.load %arg3[%c6_48, %c0_49, %c0_50] : memref<9x8x4xf32, #tpu.memory_space<vmem>>, vector<1x8x4xf32>
    %49 = vector.shape_cast %48 : vector<1x8x4xf32> to vector<8x4xf32>
    %cst_51 = arith.constant dense<0.000000e+00> : vector<8x256xf32>
    %50 = tpu.matmul %49, %47, %cst_51 {dimension_numbers = #tpu.dot_dimension_numbers<[1], [0], [0], [1], [0, 0, 1, 1], [], []>} : vector<8x4xf32>, vector<4x256xf32>, vector<8x256xf32> -> vector<8x256xf32>
    %51 = arith.addf %44, %50 : vector<8x256xf32>
    %c7 = arith.constant 7 : index
    %c0_52 = arith.constant 0 : index
    %c0_53 = arith.constant 0 : index
    %52 = vector.load %arg2[%c7, %c0_52, %c0_53] : memref<9x256x256xf32, #tpu.memory_space<vmem>>, vector<1x256x256xf32>
    %53 = vector.shape_cast %52 : vector<1x256x256xf32> to vector<256x256xf32>
    %cst_54 = arith.constant dense<0.000000e+00> : vector<4x256xf32>
    %54 = tpu.matmul %1, %53, %cst_54 {dimension_numbers = #tpu.dot_dimension_numbers<[1], [0], [0], [1], [0, 0, 1, 1], [], []>} : vector<4x256xf32>, vector<256x256xf32>, vector<4x256xf32> -> vector<4x256xf32>
    %c7_55 = arith.constant 7 : index
    %c0_56 = arith.constant 0 : index
    %c0_57 = arith.constant 0 : index
    %55 = vector.load %arg3[%c7_55, %c0_56, %c0_57] : memref<9x8x4xf32, #tpu.memory_space<vmem>>, vector<1x8x4xf32>
    %56 = vector.shape_cast %55 : vector<1x8x4xf32> to vector<8x4xf32>
    %cst_58 = arith.constant dense<0.000000e+00> : vector<8x256xf32>
    %57 = tpu.matmul %56, %54, %cst_58 {dimension_numbers = #tpu.dot_dimension_numbers<[1], [0], [0], [1], [0, 0, 1, 1], [], []>} : vector<8x4xf32>, vector<4x256xf32>, vector<8x256xf32> -> vector<8x256xf32>
    %58 = arith.addf %51, %57 : vector<8x256xf32>
    %c8 = arith.constant 8 : index
    %c0_59 = arith.constant 0 : index
    %c0_60 = arith.constant 0 : index
    %59 = vector.load %arg2[%c8, %c0_59, %c0_60] : memref<9x256x256xf32, #tpu.memory_space<vmem>>, vector<1x256x256xf32>
    %60 = vector.shape_cast %59 : vector<1x256x256xf32> to vector<256x256xf32>
    %cst_61 = arith.constant dense<0.000000e+00> : vector<4x256xf32>
    %61 = tpu.matmul %1, %60, %cst_61 {dimension_numbers = #tpu.dot_dimension_numbers<[1], [0], [0], [1], [0, 0, 1, 1], [], []>} : vector<4x256xf32>, vector<256x256xf32>, vector<4x256xf32> -> vector<4x256xf32>
    %c8_62 = arith.constant 8 : index
    %c0_63 = arith.constant 0 : index
    %c0_64 = arith.constant 0 : index
    %62 = vector.load %arg3[%c8_62, %c0_63, %c0_64] : memref<9x8x4xf32, #tpu.memory_space<vmem>>, vector<1x8x4xf32>
    %63 = vector.shape_cast %62 : vector<1x8x4xf32> to vector<8x4xf32>
    %cst_65 = arith.constant dense<0.000000e+00> : vector<8x256xf32>
    %64 = tpu.matmul %63, %61, %cst_65 {dimension_numbers = #tpu.dot_dimension_numbers<[1], [0], [0], [1], [0, 0, 1, 1], [], []>} : vector<8x4xf32>, vector<4x256xf32>, vector<8x256xf32> -> vector<8x256xf32>
    %65 = arith.addf %58, %64 : vector<8x256xf32>
    %c0_66 = arith.constant 0 : index
    %c0_67 = arith.constant 0 : index
    %c0_68 = arith.constant 0 : index
    %66 = vector.load %arg4[%c0_66, %c0_67, %c0_68] : memref<3x8x1xf32, #tpu.memory_space<vmem>>, vector<1x8x1xf32>
    %67 = vector.shape_cast %66 : vector<1x8x1xf32> to vector<8x1xf32>
    %68 = vector.broadcast %67 : vector<8x1xf32> to vector<8x256xf32>
    %69 = arith.addf %65, %68 : vector<8x256xf32>
    %cst_69 = arith.constant 0.000000e+00 : f32
    %70 = vector.broadcast %cst_69 : f32 to vector<8x256xf32>
    %71 = arith.cmpf ogt, %69, %70 : vector<8x256xf32>
    %72 = math.exp %69 : vector<8x256xf32>
    %cst_70 = arith.constant 1.000000e+00 : f32
    %73 = vector.broadcast %cst_70 : f32 to vector<8x256xf32>
    %74 = arith.subf %72, %73 : vector<8x256xf32>
    %75 = arith.select %71, %69, %74 : vector<8x256xi1>, vector<8x256xf32>
    %cst_71 = arith.constant dense<0.000000e+00> : vector<8xf32>
    %76 = vector.multi_reduction <add>, %75, %cst_71 [1] : vector<8x256xf32> to vector<8xf32>
    %77 = vector.shape_cast %76 : vector<8xf32> to vector<8x1xf32>
    %c0_72 = arith.constant 0 : index
    %c0_73 = arith.constant 0 : index
    %78 = vector.load %arg5[%c0_72, %c0_73] : memref<8x8xf32, #tpu.memory_space<vmem>>, vector<8x8xf32>
    %cst_74 = arith.constant dense<0.000000e+00> : vector<8x1xf32>
    %79 = tpu.matmul %78, %77, %cst_74 {dimension_numbers = #tpu.dot_dimension_numbers<[1], [0], [0], [1], [0, 0, 1, 1], [], []>} : vector<8x8xf32>, vector<8x1xf32>, vector<8x1xf32> -> vector<8x1xf32>
    %80 = vector.broadcast %79 : vector<8x1xf32> to vector<8x256xf32>
    %81 = arith.subf %75, %80 : vector<8x256xf32>
    %82 = arith.mulf %81, %81 : vector<8x256xf32>
    %cst_75 = arith.constant dense<0.000000e+00> : vector<8xf32>
    %83 = vector.multi_reduction <add>, %82, %cst_75 [1] : vector<8x256xf32> to vector<8xf32>
    %84 = vector.shape_cast %83 : vector<8xf32> to vector<8x1xf32>
    %c0_76 = arith.constant 0 : index
    %c0_77 = arith.constant 0 : index
    %85 = vector.load %arg5[%c0_76, %c0_77] : memref<8x8xf32, #tpu.memory_space<vmem>>, vector<8x8xf32>
    %cst_78 = arith.constant dense<0.000000e+00> : vector<8x1xf32>
    %86 = tpu.matmul %85, %84, %cst_78 {dimension_numbers = #tpu.dot_dimension_numbers<[1], [0], [0], [1], [0, 0, 1, 1], [], []>} : vector<8x8xf32>, vector<8x1xf32>, vector<8x1xf32> -> vector<8x1xf32>
    %cst_79 = arith.constant 9.99999974E-6 : f32
    %87 = vector.broadcast %cst_79 : f32 to vector<8x1xf32>
    %88 = arith.addf %86, %87 : vector<8x1xf32>
    %89 = math.rsqrt %88 : vector<8x1xf32>
    %90 = vector.broadcast %89 : vector<8x1xf32> to vector<8x256xf32>
    %91 = arith.mulf %81, %90 : vector<8x256xf32>
    %c1_80 = arith.constant 1 : index
    %c0_81 = arith.constant 0 : index
    %c0_82 = arith.constant 0 : index
    %92 = vector.load %arg4[%c1_80, %c0_81, %c0_82] : memref<3x8x1xf32, #tpu.memory_space<vmem>>, vector<1x8x1xf32>
    %93 = vector.shape_cast %92 : vector<1x8x1xf32> to vector<8x1xf32>
    %94 = vector.broadcast %93 : vector<8x1xf32> to vector<8x256xf32>
    %95 = arith.mulf %91, %94 : vector<8x256xf32>
    %c2_83 = arith.constant 2 : index
    %c0_84 = arith.constant 0 : index
    %c0_85 = arith.constant 0 : index
    %96 = vector.load %arg4[%c2_83, %c0_84, %c0_85] : memref<3x8x1xf32, #tpu.memory_space<vmem>>, vector<1x8x1xf32>
    %97 = vector.shape_cast %96 : vector<1x8x1xf32> to vector<8x1xf32>
    %98 = vector.broadcast %97 : vector<8x1xf32> to vector<8x256xf32>
    %99 = arith.addf %95, %98 : vector<8x256xf32>
    %cst_86 = arith.constant 0.000000e+00 : f32
    %100 = vector.broadcast %cst_86 : f32 to vector<16x64xf32>
    %c0_87 = arith.constant 0 : index
    %c0_88 = arith.constant 0 : index
    %c0_89 = arith.constant 0 : index
    %101 = vector.load %arg6[%c0_87, %c0_88, %c0_89] : memref<9x256x64xf32, #tpu.memory_space<vmem>>, vector<1x256x64xf32>
    %102 = vector.shape_cast %101 : vector<1x256x64xf32> to vector<256x64xf32>
    %cst_90 = arith.constant dense<0.000000e+00> : vector<8x64xf32>
    %103 = tpu.matmul %99, %102, %cst_90 {dimension_numbers = #tpu.dot_dimension_numbers<[1], [0], [0], [1], [0, 0, 1, 1], [], []>} : vector<8x256xf32>, vector<256x64xf32>, vector<8x64xf32> -> vector<8x64xf32>
    %c0_91 = arith.constant 0 : index
    %c0_92 = arith.constant 0 : index
    %c0_93 = arith.constant 0 : index
    %104 = vector.load %arg7[%c0_91, %c0_92, %c0_93] : memref<9x16x8xf32, #tpu.memory_space<vmem>>, vector<1x16x8xf32>
    %105 = vector.shape_cast %104 : vector<1x16x8xf32> to vector<16x8xf32>
    %cst_94 = arith.constant dense<0.000000e+00> : vector<16x64xf32>
    %106 = tpu.matmul %105, %103, %cst_94 {dimension_numbers = #tpu.dot_dimension_numbers<[1], [0], [0], [1], [0, 0, 1, 1], [], []>} : vector<16x8xf32>, vector<8x64xf32>, vector<16x64xf32> -> vector<16x64xf32>
    %107 = arith.addf %100, %106 : vector<16x64xf32>
    %c1_95 = arith.constant 1 : index
    %c0_96 = arith.constant 0 : index
    %c0_97 = arith.constant 0 : index
    %108 = vector.load %arg6[%c1_95, %c0_96, %c0_97] : memref<9x256x64xf32, #tpu.memory_space<vmem>>, vector<1x256x64xf32>
    %109 = vector.shape_cast %108 : vector<1x256x64xf32> to vector<256x64xf32>
    %cst_98 = arith.constant dense<0.000000e+00> : vector<8x64xf32>
    %110 = tpu.matmul %99, %109, %cst_98 {dimension_numbers = #tpu.dot_dimension_numbers<[1], [0], [0], [1], [0, 0, 1, 1], [], []>} : vector<8x256xf32>, vector<256x64xf32>, vector<8x64xf32> -> vector<8x64xf32>
    %c1_99 = arith.constant 1 : index
    %c0_100 = arith.constant 0 : index
    %c0_101 = arith.constant 0 : index
    %111 = vector.load %arg7[%c1_99, %c0_100, %c0_101] : memref<9x16x8xf32, #tpu.memory_space<vmem>>, vector<1x16x8xf32>
    %112 = vector.shape_cast %111 : vector<1x16x8xf32> to vector<16x8xf32>
    %cst_102 = arith.constant dense<0.000000e+00> : vector<16x64xf32>
    %113 = tpu.matmul %112, %110, %cst_102 {dimension_numbers = #tpu.dot_dimension_numbers<[1], [0], [0], [1], [0, 0, 1, 1], [], []>} : vector<16x8xf32>, vector<8x64xf32>, vector<16x64xf32> -> vector<16x64xf32>
    %114 = arith.addf %107, %113 : vector<16x64xf32>
    %c2_103 = arith.constant 2 : index
    %c0_104 = arith.constant 0 : index
    %c0_105 = arith.constant 0 : index
    %115 = vector.load %arg6[%c2_103, %c0_104, %c0_105] : memref<9x256x64xf32, #tpu.memory_space<vmem>>, vector<1x256x64xf32>
    %116 = vector.shape_cast %115 : vector<1x256x64xf32> to vector<256x64xf32>
    %cst_106 = arith.constant dense<0.000000e+00> : vector<8x64xf32>
    %117 = tpu.matmul %99, %116, %cst_106 {dimension_numbers = #tpu.dot_dimension_numbers<[1], [0], [0], [1], [0, 0, 1, 1], [], []>} : vector<8x256xf32>, vector<256x64xf32>, vector<8x64xf32> -> vector<8x64xf32>
    %c2_107 = arith.constant 2 : index
    %c0_108 = arith.constant 0 : index
    %c0_109 = arith.constant 0 : index
    %118 = vector.load %arg7[%c2_107, %c0_108, %c0_109] : memref<9x16x8xf32, #tpu.memory_space<vmem>>, vector<1x16x8xf32>
    %119 = vector.shape_cast %118 : vector<1x16x8xf32> to vector<16x8xf32>
    %cst_110 = arith.constant dense<0.000000e+00> : vector<16x64xf32>
    %120 = tpu.matmul %119, %117, %cst_110 {dimension_numbers = #tpu.dot_dimension_numbers<[1], [0], [0], [1], [0, 0, 1, 1], [], []>} : vector<16x8xf32>, vector<8x64xf32>, vector<16x64xf32> -> vector<16x64xf32>
    %121 = arith.addf %114, %120 : vector<16x64xf32>
    %c3_111 = arith.constant 3 : index
    %c0_112 = arith.constant 0 : index
    %c0_113 = arith.constant 0 : index
    %122 = vector.load %arg6[%c3_111, %c0_112, %c0_113] : memref<9x256x64xf32, #tpu.memory_space<vmem>>, vector<1x256x64xf32>
    %123 = vector.shape_cast %122 : vector<1x256x64xf32> to vector<256x64xf32>
    %cst_114 = arith.constant dense<0.000000e+00> : vector<8x64xf32>
    %124 = tpu.matmul %99, %123, %cst_114 {dimension_numbers = #tpu.dot_dimension_numbers<[1], [0], [0], [1], [0, 0, 1, 1], [], []>} : vector<8x256xf32>, vector<256x64xf32>, vector<8x64xf32> -> vector<8x64xf32>
    %c3_115 = arith.constant 3 : index
    %c0_116 = arith.constant 0 : index
    %c0_117 = arith.constant 0 : index
    %125 = vector.load %arg7[%c3_115, %c0_116, %c0_117] : memref<9x16x8xf32, #tpu.memory_space<vmem>>, vector<1x16x8xf32>
    %126 = vector.shape_cast %125 : vector<1x16x8xf32> to vector<16x8xf32>
    %cst_118 = arith.constant dense<0.000000e+00> : vector<16x64xf32>
    %127 = tpu.matmul %126, %124, %cst_118 {dimension_numbers = #tpu.dot_dimension_numbers<[1], [0], [0], [1], [0, 0, 1, 1], [], []>} : vector<16x8xf32>, vector<8x64xf32>, vector<16x64xf32> -> vector<16x64xf32>
    %128 = arith.addf %121, %127 : vector<16x64xf32>
    %c4_119 = arith.constant 4 : index
    %c0_120 = arith.constant 0 : index
    %c0_121 = arith.constant 0 : index
    %129 = vector.load %arg6[%c4_119, %c0_120, %c0_121] : memref<9x256x64xf32, #tpu.memory_space<vmem>>, vector<1x256x64xf32>
    %130 = vector.shape_cast %129 : vector<1x256x64xf32> to vector<256x64xf32>
    %cst_122 = arith.constant dense<0.000000e+00> : vector<8x64xf32>
    %131 = tpu.matmul %99, %130, %cst_122 {dimension_numbers = #tpu.dot_dimension_numbers<[1], [0], [0], [1], [0, 0, 1, 1], [], []>} : vector<8x256xf32>, vector<256x64xf32>, vector<8x64xf32> -> vector<8x64xf32>
    %c4_123 = arith.constant 4 : index
    %c0_124 = arith.constant 0 : index
    %c0_125 = arith.constant 0 : index
    %132 = vector.load %arg7[%c4_123, %c0_124, %c0_125] : memref<9x16x8xf32, #tpu.memory_space<vmem>>, vector<1x16x8xf32>
    %133 = vector.shape_cast %132 : vector<1x16x8xf32> to vector<16x8xf32>
    %cst_126 = arith.constant dense<0.000000e+00> : vector<16x64xf32>
    %134 = tpu.matmul %133, %131, %cst_126 {dimension_numbers = #tpu.dot_dimension_numbers<[1], [0], [0], [1], [0, 0, 1, 1], [], []>} : vector<16x8xf32>, vector<8x64xf32>, vector<16x64xf32> -> vector<16x64xf32>
    %135 = arith.addf %128, %134 : vector<16x64xf32>
    %c5_127 = arith.constant 5 : index
    %c0_128 = arith.constant 0 : index
    %c0_129 = arith.constant 0 : index
    %136 = vector.load %arg6[%c5_127, %c0_128, %c0_129] : memref<9x256x64xf32, #tpu.memory_space<vmem>>, vector<1x256x64xf32>
    %137 = vector.shape_cast %136 : vector<1x256x64xf32> to vector<256x64xf32>
    %cst_130 = arith.constant dense<0.000000e+00> : vector<8x64xf32>
    %138 = tpu.matmul %99, %137, %cst_130 {dimension_numbers = #tpu.dot_dimension_numbers<[1], [0], [0], [1], [0, 0, 1, 1], [], []>} : vector<8x256xf32>, vector<256x64xf32>, vector<8x64xf32> -> vector<8x64xf32>
    %c5_131 = arith.constant 5 : index
    %c0_132 = arith.constant 0 : index
    %c0_133 = arith.constant 0 : index
    %139 = vector.load %arg7[%c5_131, %c0_132, %c0_133] : memref<9x16x8xf32, #tpu.memory_space<vmem>>, vector<1x16x8xf32>
    %140 = vector.shape_cast %139 : vector<1x16x8xf32> to vector<16x8xf32>
    %cst_134 = arith.constant dense<0.000000e+00> : vector<16x64xf32>
    %141 = tpu.matmul %140, %138, %cst_134 {dimension_numbers = #tpu.dot_dimension_numbers<[1], [0], [0], [1], [0, 0, 1, 1], [], []>} : vector<16x8xf32>, vector<8x64xf32>, vector<16x64xf32> -> vector<16x64xf32>
    %142 = arith.addf %135, %141 : vector<16x64xf32>
    %c6_135 = arith.constant 6 : index
    %c0_136 = arith.constant 0 : index
    %c0_137 = arith.constant 0 : index
    %143 = vector.load %arg6[%c6_135, %c0_136, %c0_137] : memref<9x256x64xf32, #tpu.memory_space<vmem>>, vector<1x256x64xf32>
    %144 = vector.shape_cast %143 : vector<1x256x64xf32> to vector<256x64xf32>
    %cst_138 = arith.constant dense<0.000000e+00> : vector<8x64xf32>
    %145 = tpu.matmul %99, %144, %cst_138 {dimension_numbers = #tpu.dot_dimension_numbers<[1], [0], [0], [1], [0, 0, 1, 1], [], []>} : vector<8x256xf32>, vector<256x64xf32>, vector<8x64xf32> -> vector<8x64xf32>
    %c6_139 = arith.constant 6 : index
    %c0_140 = arith.constant 0 : index
    %c0_141 = arith.constant 0 : index
    %146 = vector.load %arg7[%c6_139, %c0_140, %c0_141] : memref<9x16x8xf32, #tpu.memory_space<vmem>>, vector<1x16x8xf32>
    %147 = vector.shape_cast %146 : vector<1x16x8xf32> to vector<16x8xf32>
    %cst_142 = arith.constant dense<0.000000e+00> : vector<16x64xf32>
    %148 = tpu.matmul %147, %145, %cst_142 {dimension_numbers = #tpu.dot_dimension_numbers<[1], [0], [0], [1], [0, 0, 1, 1], [], []>} : vector<16x8xf32>, vector<8x64xf32>, vector<16x64xf32> -> vector<16x64xf32>
    %149 = arith.addf %142, %148 : vector<16x64xf32>
    %c7_143 = arith.constant 7 : index
    %c0_144 = arith.constant 0 : index
    %c0_145 = arith.constant 0 : index
    %150 = vector.load %arg6[%c7_143, %c0_144, %c0_145] : memref<9x256x64xf32, #tpu.memory_space<vmem>>, vector<1x256x64xf32>
    %151 = vector.shape_cast %150 : vector<1x256x64xf32> to vector<256x64xf32>
    %cst_146 = arith.constant dense<0.000000e+00> : vector<8x64xf32>
    %152 = tpu.matmul %99, %151, %cst_146 {dimension_numbers = #tpu.dot_dimension_numbers<[1], [0], [0], [1], [0, 0, 1, 1], [], []>} : vector<8x256xf32>, vector<256x64xf32>, vector<8x64xf32> -> vector<8x64xf32>
    %c7_147 = arith.constant 7 : index
    %c0_148 = arith.constant 0 : index
    %c0_149 = arith.constant 0 : index
    %153 = vector.load %arg7[%c7_147, %c0_148, %c0_149] : memref<9x16x8xf32, #tpu.memory_space<vmem>>, vector<1x16x8xf32>
    %154 = vector.shape_cast %153 : vector<1x16x8xf32> to vector<16x8xf32>
    %cst_150 = arith.constant dense<0.000000e+00> : vector<16x64xf32>
    %155 = tpu.matmul %154, %152, %cst_150 {dimension_numbers = #tpu.dot_dimension_numbers<[1], [0], [0], [1], [0, 0, 1, 1], [], []>} : vector<16x8xf32>, vector<8x64xf32>, vector<16x64xf32> -> vector<16x64xf32>
    %156 = arith.addf %149, %155 : vector<16x64xf32>
    %c8_151 = arith.constant 8 : index
    %c0_152 = arith.constant 0 : index
    %c0_153 = arith.constant 0 : index
    %157 = vector.load %arg6[%c8_151, %c0_152, %c0_153] : memref<9x256x64xf32, #tpu.memory_space<vmem>>, vector<1x256x64xf32>
    %158 = vector.shape_cast %157 : vector<1x256x64xf32> to vector<256x64xf32>
    %cst_154 = arith.constant dense<0.000000e+00> : vector<8x64xf32>
    %159 = tpu.matmul %99, %158, %cst_154 {dimension_numbers = #tpu.dot_dimension_numbers<[1], [0], [0], [1], [0, 0, 1, 1], [], []>} : vector<8x256xf32>, vector<256x64xf32>, vector<8x64xf32> -> vector<8x64xf32>
    %c8_155 = arith.constant 8 : index
    %c0_156 = arith.constant 0 : index
    %c0_157 = arith.constant 0 : index
    %160 = vector.load %arg7[%c8_155, %c0_156, %c0_157] : memref<9x16x8xf32, #tpu.memory_space<vmem>>, vector<1x16x8xf32>
    %161 = vector.shape_cast %160 : vector<1x16x8xf32> to vector<16x8xf32>
    %cst_158 = arith.constant dense<0.000000e+00> : vector<16x64xf32>
    %162 = tpu.matmul %161, %159, %cst_158 {dimension_numbers = #tpu.dot_dimension_numbers<[1], [0], [0], [1], [0, 0, 1, 1], [], []>} : vector<16x8xf32>, vector<8x64xf32>, vector<16x64xf32> -> vector<16x64xf32>
    %163 = arith.addf %156, %162 : vector<16x64xf32>
    %c0_159 = arith.constant 0 : index
    %c0_160 = arith.constant 0 : index
    %c0_161 = arith.constant 0 : index
    %164 = vector.load %arg8[%c0_159, %c0_160, %c0_161] : memref<3x16x1xf32, #tpu.memory_space<vmem>>, vector<1x16x1xf32>
    %165 = vector.shape_cast %164 : vector<1x16x1xf32> to vector<16x1xf32>
    %166 = vector.broadcast %165 : vector<16x1xf32> to vector<16x64xf32>
    %167 = arith.addf %163, %166 : vector<16x64xf32>
    %cst_162 = arith.constant 0.000000e+00 : f32
    %168 = vector.broadcast %cst_162 : f32 to vector<16x64xf32>
    %169 = arith.cmpf ogt, %167, %168 : vector<16x64xf32>
    %170 = math.exp %167 : vector<16x64xf32>
    %cst_163 = arith.constant 1.000000e+00 : f32
    %171 = vector.broadcast %cst_163 : f32 to vector<16x64xf32>
    %172 = arith.subf %170, %171 : vector<16x64xf32>
    %173 = arith.select %169, %167, %172 : vector<16x64xi1>, vector<16x64xf32>
    %cst_164 = arith.constant dense<0.000000e+00> : vector<16xf32>
    %174 = vector.multi_reduction <add>, %173, %cst_164 [1] : vector<16x64xf32> to vector<16xf32>
    %175 = vector.shape_cast %174 : vector<16xf32> to vector<16x1xf32>
    %c0_165 = arith.constant 0 : index
    %c0_166 = arith.constant 0 : index
    %176 = vector.load %arg9[%c0_165, %c0_166] : memref<16x16xf32, #tpu.memory_space<vmem>>, vector<16x16xf32>
    %cst_167 = arith.constant dense<0.000000e+00> : vector<16x1xf32>
    %177 = tpu.matmul %176, %175, %cst_167 {dimension_numbers = #tpu.dot_dimension_numbers<[1], [0], [0], [1], [0, 0, 1, 1], [], []>} : vector<16x16xf32>, vector<16x1xf32>, vector<16x1xf32> -> vector<16x1xf32>
    %178 = vector.broadcast %177 : vector<16x1xf32> to vector<16x64xf32>
    %179 = arith.subf %173, %178 : vector<16x64xf32>
    %180 = arith.mulf %179, %179 : vector<16x64xf32>
    %cst_168 = arith.constant dense<0.000000e+00> : vector<16xf32>
    %181 = vector.multi_reduction <add>, %180, %cst_168 [1] : vector<16x64xf32> to vector<16xf32>
    %182 = vector.shape_cast %181 : vector<16xf32> to vector<16x1xf32>
    %c0_169 = arith.constant 0 : index
    %c0_170 = arith.constant 0 : index
    %183 = vector.load %arg9[%c0_169, %c0_170] : memref<16x16xf32, #tpu.memory_space<vmem>>, vector<16x16xf32>
    %cst_171 = arith.constant dense<0.000000e+00> : vector<16x1xf32>
    %184 = tpu.matmul %183, %182, %cst_171 {dimension_numbers = #tpu.dot_dimension_numbers<[1], [0], [0], [1], [0, 0, 1, 1], [], []>} : vector<16x16xf32>, vector<16x1xf32>, vector<16x1xf32> -> vector<16x1xf32>
    %cst_172 = arith.constant 9.99999974E-6 : f32
    %185 = vector.broadcast %cst_172 : f32 to vector<16x1xf32>
    %186 = arith.addf %184, %185 : vector<16x1xf32>
    %187 = math.rsqrt %186 : vector<16x1xf32>
    %188 = vector.broadcast %187 : vector<16x1xf32> to vector<16x64xf32>
    %189 = arith.mulf %179, %188 : vector<16x64xf32>
    %c1_173 = arith.constant 1 : index
    %c0_174 = arith.constant 0 : index
    %c0_175 = arith.constant 0 : index
    %190 = vector.load %arg8[%c1_173, %c0_174, %c0_175] : memref<3x16x1xf32, #tpu.memory_space<vmem>>, vector<1x16x1xf32>
    %191 = vector.shape_cast %190 : vector<1x16x1xf32> to vector<16x1xf32>
    %192 = vector.broadcast %191 : vector<16x1xf32> to vector<16x64xf32>
    %193 = arith.mulf %189, %192 : vector<16x64xf32>
    %c2_176 = arith.constant 2 : index
    %c0_177 = arith.constant 0 : index
    %c0_178 = arith.constant 0 : index
    %194 = vector.load %arg8[%c2_176, %c0_177, %c0_178] : memref<3x16x1xf32, #tpu.memory_space<vmem>>, vector<1x16x1xf32>
    %195 = vector.shape_cast %194 : vector<1x16x1xf32> to vector<16x1xf32>
    %196 = vector.broadcast %195 : vector<16x1xf32> to vector<16x64xf32>
    %197 = arith.addf %193, %196 : vector<16x64xf32>
    %cst_179 = arith.constant 0.000000e+00 : f32
    %198 = vector.broadcast %cst_179 : f32 to vector<8x64xf32>
    %c0_180 = arith.constant 0 : index
    %c0_181 = arith.constant 0 : index
    %c0_182 = arith.constant 0 : index
    %199 = vector.load %arg10[%c0_180, %c0_181, %c0_182] : memref<1x8x16xf32, #tpu.memory_space<vmem>>, vector<1x8x16xf32>
    %200 = vector.shape_cast %199 : vector<1x8x16xf32> to vector<8x16xf32>
    %cst_183 = arith.constant dense<0.000000e+00> : vector<8x64xf32>
    %201 = tpu.matmul %200, %197, %cst_183 {dimension_numbers = #tpu.dot_dimension_numbers<[1], [0], [0], [1], [0, 0, 1, 1], [], []>} : vector<8x16xf32>, vector<16x64xf32>, vector<8x64xf32> -> vector<8x64xf32>
    %202 = arith.addf %198, %201 : vector<8x64xf32>
    %c0_184 = arith.constant 0 : index
    %c0_185 = arith.constant 0 : index
    %c0_186 = arith.constant 0 : index
    %203 = vector.load %arg11[%c0_184, %c0_185, %c0_186] : memref<3x8x1xf32, #tpu.memory_space<vmem>>, vector<1x8x1xf32>
    %204 = vector.shape_cast %203 : vector<1x8x1xf32> to vector<8x1xf32>
    %205 = vector.broadcast %204 : vector<8x1xf32> to vector<8x64xf32>
    %206 = arith.addf %202, %205 : vector<8x64xf32>
    %c0_187 = arith.constant 0 : index
    %c0_188 = arith.constant 0 : index
    %c0_189 = arith.constant 0 : index
    %207 = vector.load %arg12[%c0_187, %c0_188, %c0_189] : memref<1x8x64xf32, #tpu.memory_space<vmem>>, vector<1x8x64xf32>
    %208 = vector.shape_cast %207 : vector<1x8x64xf32> to vector<8x64xf32>
    %209 = vector.shape_cast %206 : vector<8x64xf32> to vector<1x8x64xf32>
    tpu.vector_store %arg12[%c0_187, %c0_188, %c0_189], %209 {strides = array<i32>} : memref<1x8x64xf32, #tpu.memory_space<vmem>>, vector<1x8x64xf32>,
    return
  }
  func.func @transform_0(%arg0: i32) -> (i32, i32, i32) {
    %c0_i32 = arith.constant 0 : i32
    %c0_i32_0 = arith.constant 0 : i32
    %c0_i32_1 = arith.constant 0 : i32
    return %arg0, %c0_i32, %c0_i32_0 : i32, i32, i32
  }
  func.func @transform_1(%arg0: i32) -> (i32, i32, i32) {
    %c0_i32 = arith.constant 0 : i32
    %c0_i32_0 = arith.constant 0 : i32
    %c0_i32_1 = arith.constant 0 : i32
    %c0_i32_2 = arith.constant 0 : i32
    return %c0_i32, %c0_i32_0, %c0_i32_1 : i32, i32, i32
  }
  func.func @transform_2(%arg0: i32) -> (i32, i32, i32) {
    %c0_i32 = arith.constant 0 : i32
    %c0_i32_0 = arith.constant 0 : i32
    %c0_i32_1 = arith.constant 0 : i32
    %c0_i32_2 = arith.constant 0 : i32
    return %c0_i32, %c0_i32_0, %c0_i32_1 : i32, i32, i32
  }
  func.func @transform_3(%arg0: i32) -> (i32, i32, i32) {
    %c0_i32 = arith.constant 0 : i32
    %c0_i32_0 = arith.constant 0 : i32
    %c0_i32_1 = arith.constant 0 : i32
    %c0_i32_2 = arith.constant 0 : i32
    return %c0_i32, %c0_i32_0, %c0_i32_1 : i32, i32, i32
  }
  func.func @transform_4(%arg0: i32) -> (i32, i32) {
    %c0_i32 = arith.constant 0 : i32
    %c0_i32_0 = arith.constant 0 : i32
    %c0_i32_1 = arith.constant 0 : i32
    return %c0_i32, %c0_i32_0 : i32, i32
  }
  func.func @transform_5(%arg0: i32) -> (i32, i32, i32) {
    %c0_i32 = arith.constant 0 : i32
    %c0_i32_0 = arith.constant 0 : i32
    %c0_i32_1 = arith.constant 0 : i32
    %c0_i32_2 = arith.constant 0 : i32
    return %c0_i32, %c0_i32_0, %c0_i32_1 : i32, i32, i32
  }
  func.func @transform_6(%arg0: i32) -> (i32, i32, i32) {
    %c0_i32 = arith.constant 0 : i32
    %c0_i32_0 = arith.constant 0 : i32
    %c0_i32_1 = arith.constant 0 : i32
    %c0_i32_2 = arith.constant 0 : i32
    return %c0_i32, %c0_i32_0, %c0_i32_1 : i32, i32, i32
  }
  func.func @transform_7(%arg0: i32) -> (i32, i32, i32) {
    %c0_i32 = arith.constant 0 : i32
    %c0_i32_0 = arith.constant 0 : i32
    %c0_i32_1 = arith.constant 0 : i32
    %c0_i32_2 = arith.constant 0 : i32
    return %c0_i32, %c0_i32_0, %c0_i32_1 : i32, i32, i32
  }
  func.func @transform_8(%arg0: i32) -> (i32, i32) {
    %c0_i32 = arith.constant 0 : i32
    %c0_i32_0 = arith.constant 0 : i32
    %c0_i32_1 = arith.constant 0 : i32
    return %c0_i32, %c0_i32_0 : i32, i32
  }
  func.func @transform_9(%arg0: i32) -> (i32, i32, i32) {
    %c0_i32 = arith.constant 0 : i32
    %c0_i32_0 = arith.constant 0 : i32
    %c0_i32_1 = arith.constant 0 : i32
    %c0_i32_2 = arith.constant 0 : i32
    return %c0_i32, %c0_i32_0, %c0_i32_1 : i32, i32, i32
  }
  func.func @transform_10(%arg0: i32) -> (i32, i32, i32) {
    %c0_i32 = arith.constant 0 : i32
    %c0_i32_0 = arith.constant 0 : i32
    %c0_i32_1 = arith.constant 0 : i32
    %c0_i32_2 = arith.constant 0 : i32
    return %c0_i32, %c0_i32_0, %c0_i32_1 : i32, i32, i32
  }
  func.func @transform_11(%arg0: i32) -> (i32, i32, i32) {
    %c0_i32 = arith.constant 0 : i32
    %c0_i32_0 = arith.constant 0 : i32
    %c0_i32_1 = arith.constant 0 : i32
    return %arg0, %c0_i32, %c0_i32_0 : i32, i32, i32
  }
}

</mosaic_0001>

<bundles_post_ra>
// kernel: stack_conv_norm_forward.1
= control target key start
LH: loop header
LB: loop body
LE: loop exit
PB: predicated region body
PF: predicated region fallthrough
CT: control target
= control target key end

     0   :  { %16 = vsyncpa [#allocation3], 0  ;;  %s6050_s0 = inlined_call_operand.vmem [shape: f32[2,4,256], index: 0, kind: input, shape index: {}]   ;;  %s6051_s1 = inlined_call_operand.hbm [shape: f32[9,256,256], index: 1, kind: input, shape index: {}]   ;;  %s6052_s2 = inlined_call_operand.vmem [shape: f32[9,8,4], index: 2, kind: input, shape index: {}]   ;;  %s6053_s3 = inlined_call_operand.vmem [shape: f32[3,8,1], index: 3, kind: input, shape index: {}]   ;;  %s6054_s4 = inlined_call_operand.hbm [shape: f32[8,8], index: 4, kind: input, shape index: {}]   ;;  %s6055_s5 = inlined_call_operand.hbm [shape: f32[9,256,64], index: 5, kind: input, shape index: {}]   ;;  %s6056_s6 = inlined_call_operand.vmem [shape: f32[9,16,8], index: 6, kind: input, shape index: {}]   ;;  %s6057_s7 = inlined_call_operand.vmem [shape: f32[3,16,1], index: 7, kind: input, shape index: {}]   ;;  %s6058_s8 = inlined_call_operand.hbm [shape: f32[16,16], index: 8, kind: input, shape index: {}]   ;;  %s6059_s9 = inlined_call_operand.hbm [shape: f32[1,8,16], index: 9, kind: input, shape index: {}]   ;;  %s6060_s10 = inlined_call_operand.vmem [shape: f32[3,8,1], index: 10, kind: input, shape index: {}]   ;;  %s6061_s11 = inlined_call_operand.vmem [shape: f32[2,8,64], index: 11, kind: output, shape index: {}]  }
   0x1   :  { %17 = vsyncpa [#allocation5], 0 }
   0x2   :  { %18 = vsyncpa [#allocation8], 0  ;;  %s5617_s17 = smov 0  }
   0x3 LB: > { %s5545_s18 = smov [#allocation4]   ;;  %s5623_s20 = sadd.s32 4294967295, %s5543_s17   ;;  %s5543_s17 = sphi %s5617_s17, %s24_s17  }
   0x4   : > { %s323_s19 = sshll.u32 %s5545_s18, 4  ;;  %p4773_p0 = scmp.ge.s32.totalorder %s5543_s17, 1  ;;  %s324_s19 = int_to_ptr.vmem [resolvable:$true] %s323_s19 }
   0x5   : > { %p291_p1 = scmp.lt.s32.totalorder %s5543_s17, 3  ;;  %p5347_p2 = scmp.eq.s32.totalorder %s5623_s20, 0 }
   0x6   : > { %s5546_s22 = smov [#allocation7]   ;;  %s5547_s25 = smov [#allocation2]  }
   0x7   : > { %p5628_p3 = pnand %p4773_p0, %p291_p1  ;;  %s352_s23 = sshll.u32 %s5546_s22, 4  ;;  %s5634_s23 = int_to_ptr.vmem [resolvable:$true] %s352_s23 }
   0x8   : > { %s303_s26 = sshll.u32 %s5547_s25, 4  ;;  %s5406_s28 = scalar_lea.vmem %s324_s19, 128  ;;  %s5642_s26 = int_to_ptr.vmem [resolvable:$true] %s303_s26 }
   0x9   : > { %p5331_p4 = pneg %p5628_p3  ;;  %p5407_p7 = scmp.ne.s32.totalorder %s324_s19, %s5406_s28 }
   0xa   : > { %p5414_p10 = scmp.lt.s32.totalorder %s324_s19, %s324_s19  ;;  %p5415_p11 = scmp.lt.s32.totalorder %s5406_s28, %s5406_s28 }
   0xb   : > { %p5638_p5 = pnand %p5347_p2, %p5331_p4 }
   0xc   : > { %p5416_p12 = por %p5415_p11, %p5414_p10 }
   0xd   : > { %p5646_p6 = pneg %p5638_p5 }
   0xf   : > { %p5409_p8 = pnand %p5407_p7, %p5646_p6 }
  0x11   : > { %p5410_p9 = pneg %p5409_p8 }
  0x13   : > { %p5417_p13 = pnand %p5416_p12, %p5410_p9 }
  0x15   : > { %5420 = shalt.err (!%p5417_p13)
}
  0x16   : > { %5337 = dma.hbm_to_vmem [thread:$0]  (!%p5638_p5), %s6054_s4, 128, %s324_s19, [#allocation5]  }
  0x17   : > { %s5432_s12 = scalar_lea.vmem %s5634_s23, 256  ;;  %p5440_p7 = scmp.lt.s32.totalorder %s5634_s23, %s5634_s23 }
  0x18   : > { %p5433_p0 = scmp.ne.s32.totalorder %s5634_s23, %s5432_s12  ;;  %p5441_p8 = scmp.lt.s32.totalorder %s5432_s12, %s5432_s12 }
  0x1a   : > { %p5435_p1 = pnand %p5433_p0, %p5646_p6  ;;  %p5442_p9 = por %p5441_p8, %p5440_p7 }
  0x1c   : > { %p5436_p4 = pneg %p5435_p1 }
  0x1e   : > { %p5443_p10 = pnand %p5442_p9, %p5436_p4 }
  0x20   : > { %5446 = shalt.err (!%p5443_p10)
}
  0x21   : > { %s5548_s13 = smov 128   ;;  %s5549_s14 = smov 8  }
  0x22   : > { %5343 = dma.hbm_to_vmem [thread:$0]  (!%p5638_p5), %s6058_s8, 256, %s5634_s23, [#allocation8], %s5548_s13, %s5548_s13, %s5549_s14  }
  0x23   : > { %s5458_s18 = scalar_lea.vmem %s5642_s26, 73728  ;;  %p5466_p0 = scmp.lt.s32.totalorder %s5642_s26, %s5642_s26 }
  0x24   : > { %p5459_p11 = scmp.ne.s32.totalorder %s5642_s26, %s5458_s18  ;;  %p5467_p1 = scmp.lt.s32.totalorder %s5458_s18, %s5458_s18 }
  0x26   : > { %p5461_p12 = pnand %p5459_p11, %p5646_p6  ;;  %p5468_p4 = por %p5467_p1, %p5466_p0 }
  0x28   : > { %p5462_p13 = pneg %p5461_p12 }
  0x2a   : > { %p5469_p7 = pnand %p5468_p4, %p5462_p13 }
  0x2c   : > { %5472 = shalt.err (!%p5469_p7)
}
  0x2d   : > { %s5550_s19 = smov 256   ;;  %s5551_s22 = smov 16  }
  0x2e   : > { %5334 = dma.hbm_to_vmem [thread:$0]  (!%p5638_p5), %s6051_s1, 73728, %s5642_s26, [#allocation3], %s5550_s19, %s5550_s19, %s5551_s22  }
  0x2f   : > { %s5552_s23 = smov [#allocation6]   ;;  %s5553_s30 = smov [#allocation9]  }
  0x30   : > { %s333_s29 = sshll.u32 %s5552_s23, 4  ;;  %s366_s12 = sshll.u32 %s5553_s30, 4  ;;  %s334_s29 = int_to_ptr.vmem [resolvable:$true] %s333_s29  ;;  %s367_s12 = int_to_ptr.vmem [resolvable:$true] %s366_s12 }
  0x31   : > { %s5484_s15 = scalar_lea.vmem %s334_s29, 36864  ;;  %p5492_p11 = scmp.lt.s32.totalorder %s334_s29, %s334_s29 }
  0x32   : > { %p5485_p8 = scmp.ne.s32.totalorder %s334_s29, %s5484_s15  ;;  %p5493_p12 = scmp.lt.s32.totalorder %s5484_s15, %s5484_s15 }
  0x34   : > { %p5487_p9 = pnand %p5485_p8, %p5646_p6  ;;  %p5494_p13 = por %p5493_p12, %p5492_p11 }
  0x36   : > { %p5488_p10 = pneg %p5487_p9 }
  0x38   : > { %p5495_p0 = pnand %p5494_p13, %p5488_p10 }
  0x3a   : > { %5498 = shalt.err (!%p5495_p0)
}
  0x3b   : > { %5340 = dma.hbm_to_vmem [thread:$0]  (!%p5638_p5), %s6055_s5, 36864, %s334_s29, [#allocation5], %s5548_s13, %s5548_s13, %s5549_s14  }
  0x3c   : > { %s5510_s18 = scalar_lea.vmem %s367_s12, 128  ;;  %p5518_p8 = scmp.lt.s32.totalorder %s367_s12, %s367_s12 }
  0x3d   : > { %p5511_p1 = scmp.ne.s32.totalorder %s367_s12, %s5510_s18  ;;  %p5519_p9 = scmp.lt.s32.totalorder %s5510_s18, %s5510_s18 }
  0x3f   : > { %p5513_p4 = pnand %p5511_p1, %p5646_p6  ;;  %p5520_p11 = por %p5519_p9, %p5518_p8 }
  0x41   : > { %p5514_p7 = pneg %p5513_p4 }
  0x43   : > { %p5521_p10 = pnand %p5520_p11, %p5514_p7 }
  0x45   : > { %5524 = shalt.err (!%p5521_p10)
}
  0x46   : > { %5346 = dma.hbm_to_vmem [thread:$0]  (!%p5638_p5), %s6059_s9, 128, %s367_s12, [#allocation8]  }
  0x47   : > { %390 = sbr.rel (%p5628_p3) target bundleno = 6351 (0x18cf), region = 64 }
  0x4c   : > { %5530 = dma.done.wait (%p5347_p2), [#allocation3], 73728  }
  0x4d   : > { %5532 = vsyncadd (%p5347_p2), [#allocation3], 4294893568 }
  0x4e   : > { %5534 = dma.done.wait (%p5347_p2), [#allocation5], 36992  }
  0x4f   : > { %5536 = vsyncadd (%p5347_p2), [#allocation5], 4294930304 }
  0x50   : > { %5538 = dma.done.wait (%p5347_p2), [#allocation8], 384  }
  0x51   : > { %5540 = vsyncadd (%p5347_p2), [#allocation8], 4294966912  ;;  %v486_v0 = vld [vmem:[#allocation2 + $0xf8] sm:$0xff]  ;;  %v485_v2 = vld [vmem:[#allocation2 + $0xf0] sm:$0xff]  ;;  %p445_p2 = scmp.lt.s32.totalorder %s5623_s20, 1  ;;  %vm736_vm0 = vcmask 1043456  }
  0x52   : > { %v626_v1 = vld [vmem:[#allocation2 + $0x2f8] sm:$0xff]  ;;  %522 = vmatprep.subr.mxu0 %v486_v0  ;;  %v625_v3 = vld [vmem:[#allocation2 + $0x2f0] sm:$0xff]  ;;  %v484_v4 = vld [vmem:[#allocation2 + $0xe8] sm:$0xff]  ;;  %vm732_vm1 = vcmask 31744   ;;  %vm5556_vm4 = vmmov 0   ;;  %vm2456_vm5 = vcmask 64512  }
  0x53   : > { %659 = vmatprep.subr.mxu1 %v626_v1  ;;  %v624_v5 = vld [vmem:[#allocation2 + $0x2e8] sm:$0xff]  ;;  %523 = vmatpush1.msra.mxu0 %v485_v2  ;;  %v483_v6 = vld [vmem:[#allocation2 + $0xe0] sm:$0xff]  ;;  %v482_v8 = vld [vmem:[#allocation2 + $0xd8] sm:$0xff]  ;;  %s6066_s20 = smov (!%p445_p2, %s5623_s20), 1  ;;  %vm4357_vm6 = vcmask 523264   ;;  %vm4366_vm9 = vcmask 130048  }
  0x54   : > { %660 = vmatpush1.msra.mxu1 %v625_v3  ;;  %v623_v7 = vld [vmem:[#allocation2 + $0x2e0] sm:$0xff]  ;;  %524 = vmatprep.subr.mxu0 %v484_v4  ;;  %v622_v9 = vld [vmem:[#allocation2 + $0x2d8] sm:$0xff]  ;;  %v481_v10 = vld [vmem:[#allocation2 + $0xd0] sm:$0xff]  ;;  %s4877_s21 = sshll.u32 %s6066_s20, 3 }
  0x55   : > { %661 = vmatprep.subr.mxu1 %v624_v5  ;;  %v621_v11 = vld [vmem:[#allocation2 + $0x2d0] sm:$0xff]  ;;  %525 = vmatpush1.msra.mxu0 %v483_v6  ;;  %v480_v12 = vld [vmem:[#allocation2 + $0xc8] sm:$0xff]  ;;  %v479_v14 = vld [vmem:[#allocation2 + $0xc0] sm:$0xff]  ;;  %s5727_s13 = scalar_lea.vmem %s6050_s0, %s4877_s21  ;;  %s453_s22 = scalar_lea.vmem %s6061_s11, %s4877_s21 }
  0x56   : > { %662 = vmatpush1.msra.mxu1 %v623_v7  ;;  %v620_v13 = vld [vmem:[#allocation2 + $0x2c8] sm:$0xff]  ;;  %526 = vmatprep.subr.mxu0 %v482_v8  ;;  %v619_v15 = vld [vmem:[#allocation2 + $0x2c0] sm:$0xff]  ;;  %v478_v16 = vld [vmem:[#allocation2 + $0xb8] sm:$0xff] }
  0x57   : > { %663 = vmatprep.subr.mxu1 %v622_v9  ;;  %527 = vmatpush1.msra.mxu0 %v481_v10  ;;  %v618_v17 = vld [vmem:[#allocation2 + $0x2b8] sm:$0xff]  ;;  %v477_v18 = vld [vmem:[#allocation2 + $0xb0] sm:$0xff]  ;;  %v476_v20 = vld [vmem:[#allocation2 + $0xa8] sm:$0xff] }
  0x58   : > { %664 = vmatpush1.msra.mxu1 %v621_v11  ;;  %528 = vmatprep.subr.mxu0 %v480_v12  ;;  %v617_v19 = vld [vmem:[#allocation2 + $0x2b0] sm:$0xff]  ;;  %v616_v21 = vld [vmem:[#allocation2 + $0x2a8] sm:$0xff]  ;;  %v475_v22 = vld [vmem:[#allocation2 + $0xa0] sm:$0xff] }
  0x59   : > { %665 = vmatprep.subr.mxu1 %v620_v13  ;;  %529 = vmatpush1.msra.mxu0 %v479_v14  ;;  %v615_v23 = vld [vmem:[#allocation2 + $0x2a0] sm:$0xff]  ;;  %v474_v24 = vld [vmem:[#allocation2 + $0x98] sm:$0xff]  ;;  %v473_v26 = vld [vmem:[#allocation2 + $0x90] sm:$0xff] }
  0x5a   : > { %666 = vmatpush1.msra.mxu1 %v619_v15  ;;  %530 = vmatprep.subr.mxu0 %v478_v16  ;;  %v614_v25 = vld [vmem:[#allocation2 + $0x298] sm:$0xff]  ;;  %v613_v27 = vld [vmem:[#allocation2 + $0x290] sm:$0xff]  ;;  %v472_v28 = vld [vmem:[#allocation2 + $0x88] sm:$0xff] }
  0x5b   : > { %667 = vmatprep.subr.mxu1 %v618_v17  ;;  %531 = vmatpush1.msra.mxu0 %v477_v18  ;;  %v612_v29 = vld [vmem:[#allocation2 + $0x288] sm:$0xff]  ;;  %v471_v30 = vld [vmem:[#allocation2 + $0x80] sm:$0xff]  ;;  %v470_v32 = vld [vmem:[#allocation2 + $0x78] sm:$0xff] }
  0x5c   : > { %668 = vmatpush1.msra.mxu1 %v617_v19  ;;  %532 = vmatprep.subr.mxu0 %v476_v20  ;;  %v611_v31 = vld [vmem:[#allocation2 + $0x280] sm:$0xff]  ;;  %v610_v33 = vld [vmem:[#allocation2 + $0x278] sm:$0xff]  ;;  %v469_v34 = vld [vmem:[#allocation2 + $0x70] sm:$0xff] }
  0x5d   : > { %669 = vmatprep.subr.mxu1 %v616_v21  ;;  %533 = vmatpush1.msra.mxu0 %v475_v22  ;;  %v609_v35 = vld [vmem:[#allocation2 + $0x270] sm:$0xff]  ;;  %v468_v36 = vld [vmem:[#allocation2 + $0x68] sm:$0xff]  ;;  %v467_v38 = vld [vmem:[#allocation2 + $0x60] sm:$0xff] }
  0x5e   : > { %670 = vmatpush1.msra.mxu1 %v615_v23  ;;  %534 = vmatprep.subr.mxu0 %v474_v24  ;;  %v608_v37 = vld [vmem:[#allocation2 + $0x268] sm:$0xff]  ;;  %v607_v39 = vld [vmem:[#allocation2 + $0x260] sm:$0xff]  ;;  %v466_v40 = vld [vmem:[#allocation2 + $0x58] sm:$0xff] }
  0x5f   : > { %671 = vmatprep.subr.mxu1 %v614_v25  ;;  %535 = vmatpush1.msra.mxu0 %v473_v26  ;;  %v606_v41 = vld [vmem:[#allocation2 + $0x258] sm:$0xff]  ;;  %v465_v42 = vld [vmem:[#allocation2 + $0x50] sm:$0xff]  ;;  %v464_v44 = vld [vmem:[#allocation2 + $0x48] sm:$0xff] }
  0x60   : > { %672 = vmatpush1.msra.mxu1 %v613_v27  ;;  %536 = vmatprep.subr.mxu0 %v472_v28  ;;  %v605_v43 = vld [vmem:[#allocation2 + $0x250] sm:$0xff]  ;;  %v604_v45 = vld [vmem:[#allocation2 + $0x248] sm:$0xff]  ;;  %v463_v46 = vld [vmem:[#allocation2 + $0x40] sm:$0xff] }
  0x61   : > { %673 = vmatprep.subr.mxu1 %v612_v29  ;;  %537 = vmatpush1.msra.mxu0 %v471_v30  ;;  %v603_v47 = vld [vmem:[#allocation2 + $0x240] sm:$0xff]  ;;  %v462_v48 = vld [vmem:[#allocation2 + $0x38] sm:$0xff]  ;;  %v461_v50 = vld [vmem:[#allocation2 + $0x30] sm:$0xff] }
  0x62   : > { %674 = vmatpush1.msra.mxu1 %v611_v31  ;;  %538 = vmatprep.subr.mxu0 %v470_v32  ;;  %v602_v49 = vld [vmem:[#allocation2 + $0x238] sm:$0xff]  ;;  %v601_v51 = vld [vmem:[#allocation2 + $0x230] sm:$0xff]  ;;  %v460_v52 = vld [vmem:[#allocation2 + $0x28] sm:$0xff] }
  0x63   : > { %675 = vmatprep.subr.mxu1 %v610_v33  ;;  %539 = vmatpush1.msra.mxu0 %v469_v34  ;;  %v600_v53 = vld [vmem:[#allocation2 + $0x228] sm:$0xff]  ;;  %v459_v54 = vld [vmem:[#allocation2 + $0x20] sm:$0xff]  ;;  %v458_v56 = vld [vmem:[#allocation2 + $0x18] sm:$0xff] }
  0x64   : > { %676 = vmatpush1.msra.mxu1 %v609_v35  ;;  %540 = vmatprep.subr.mxu0 %v468_v36  ;;  %v599_v55 = vld [vmem:[#allocation2 + $0x220] sm:$0xff]  ;;  %v598_v57 = vld [vmem:[#allocation2 + $0x218] sm:$0xff]  ;;  %v457_v58 = vld [vmem:[#allocation2 + $0x10] sm:$0xff] }
  0x65   : > { %677 = vmatprep.subr.mxu1 %v608_v37  ;;  %541 = vmatpush1.msra.mxu0 %v467_v38  ;;  %v597_v59 = vld [vmem:[#allocation2 + $0x210] sm:$0xff]  ;;  %v456_v60 = vld [vmem:[#allocation2 + $0x8] sm:$0xff]  ;;  %v455_v62 = vld [vmem:[#allocation2] sm:$0xff] }
  0x66   : > { %678 = vmatpush1.msra.mxu1 %v607_v39  ;;  %542 = vmatprep.subr.mxu0 %v466_v40  ;;  %v596_v61 = vld [vmem:[#allocation2 + $0x208] sm:$0xff]  ;;  %v595_v63 = vld [vmem:[#allocation2 + $0x200] sm:$0xff]  ;;  %v518_v0 = vld [vmem:[#allocation2 + $0x1f8] sm:$0xff] }
  0x67   : > { %679 = vmatprep.subr.mxu1 %v606_v41  ;;  %543 = vmatpush1.msra.mxu0 %v465_v42  ;;  %v658_v1 = vld [vmem:[#allocation2 + $0x3f8] sm:$0xff]  ;;  %v517_v2 = vld [vmem:[#allocation2 + $0x1f0] sm:$0xff]  ;;  %v516_v4 = vld [vmem:[#allocation2 + $0x1e8] sm:$0xff] }
  0x68   : > { %680 = vmatpush1.msra.mxu1 %v605_v43  ;;  %544 = vmatprep.subr.mxu0 %v464_v44  ;;  %v657_v3 = vld [vmem:[#allocation2 + $0x3f0] sm:$0xff]  ;;  %v656_v5 = vld [vmem:[#allocation2 + $0x3e8] sm:$0xff]  ;;  %v515_v6 = vld [vmem:[#allocation2 + $0x1e0] sm:$0xff] }
  0x69   : > { %681 = vmatprep.subr.mxu1 %v604_v45  ;;  %545 = vmatpush1.msra.mxu0 %v463_v46  ;;  %v655_v7 = vld [vmem:[#allocation2 + $0x3e0] sm:$0xff]  ;;  %v514_v8 = vld [vmem:[#allocation2 + $0x1d8] sm:$0xff]  ;;  %v513_v10 = vld [vmem:[#allocation2 + $0x1d0] sm:$0xff] }
  0x6a   : > { %682 = vmatpush1.msra.mxu1 %v603_v47  ;;  %546 = vmatprep.subr.mxu0 %v462_v48  ;;  %v654_v9 = vld [vmem:[#allocation2 + $0x3d8] sm:$0xff]  ;;  %v653_v11 = vld [vmem:[#allocation2 + $0x3d0] sm:$0xff]  ;;  %v512_v12 = vld [vmem:[#allocation2 + $0x1c8] sm:$0xff] }
  0x6b   : > { %683 = vmatprep.subr.mxu1 %v602_v49  ;;  %547 = vmatpush1.msra.mxu0 %v461_v50  ;;  %v652_v13 = vld [vmem:[#allocation2 + $0x3c8] sm:$0xff]  ;;  %v511_v14 = vld [vmem:[#allocation2 + $0x1c0] sm:$0xff]  ;;  %v510_v16 = vld [vmem:[#allocation2 + $0x1b8] sm:$0xff] }
  0x6c   : > { %684 = vmatpush1.msra.mxu1 %v601_v51  ;;  %548 = vmatprep.subr.mxu0 %v460_v52  ;;  %v651_v15 = vld [vmem:[#allocation2 + $0x3c0] sm:$0xff]  ;;  %v650_v17 = vld [vmem:[#allocation2 + $0x3b8] sm:$0xff]  ;;  %v509_v18 = vld [vmem:[#allocation2 + $0x1b0] sm:$0xff] }
  0x6d   : > { %685 = vmatprep.subr.mxu1 %v600_v53  ;;  %549 = vmatpush1.msra.mxu0 %v459_v54  ;;  %v649_v19 = vld [vmem:[#allocation2 + $0x3b0] sm:$0xff]  ;;  %v508_v20 = vld [vmem:[#allocation2 + $0x1a8] sm:$0xff]  ;;  %v507_v22 = vld [vmem:[#allocation2 + $0x1a0] sm:$0xff] }
  0x6e   : > { %686 = vmatpush1.msra.mxu1 %v599_v55  ;;  %550 = vmatprep.subr.mxu0 %v458_v56  ;;  %v648_v21 = vld [vmem:[#allocation2 + $0x3a8] sm:$0xff]  ;;  %v647_v23 = vld [vmem:[#allocation2 + $0x3a0] sm:$0xff]  ;;  %v506_v24 = vld [vmem:[#allocation2 + $0x198] sm:$0xff] }
  0x6f   : > { %687 = vmatprep.subr.mxu1 %v598_v57  ;;  %551 = vmatpush1.msra.mxu0 %v457_v58  ;;  %v646_v25 = vld [vmem:[#allocation2 + $0x398] sm:$0xff]  ;;  %v505_v26 = vld [vmem:[#allocation2 + $0x190] sm:$0xff]  ;;  %v504_v28 = vld [vmem:[#allocation2 + $0x188] sm:$0xff] }
  0x70   : > { %688 = vmatpush1.msra.mxu1 %v597_v59  ;;  %552 = vmatprep.subr.mxu0 %v456_v60  ;;  %v645_v27 = vld [vmem:[#allocation2 + $0x390] sm:$0xff]  ;;  %v644_v29 = vld [vmem:[#allocation2 + $0x388] sm:$0xff]  ;;  %v503_v30 = vld [vmem:[#allocation2 + $0x180] sm:$0xff] }
  0x71   : > { %689 = vmatprep.subr.mxu1 %v596_v61  ;;  %553 = vmatpush1.msra.mxu0 %v455_v62  ;;  %v643_v31 = vld [vmem:[#allocation2 + $0x380] sm:$0xff]  ;;  %v502_v32 = vld [vmem:[#allocation2 + $0x178] sm:$0xff]  ;;  %v501_v34 = vld [vmem:[#allocation2 + $0x170] sm:$0xff] }
  0x72   : > { %690 = vmatpush1.msra.mxu1 %v595_v63  ;;  %554 = vmatprep.subr.mxu0 %v518_v0  ;;  %v642_v33 = vld [vmem:[#allocation2 + $0x378] sm:$0xff]  ;;  %v641_v35 = vld [vmem:[#allocation2 + $0x370] sm:$0xff]  ;;  %v500_v36 = vld [vmem:[#allocation2 + $0x168] sm:$0xff] }
  0x73   : > { %691 = vmatprep.subr.mxu1 %v658_v1  ;;  %555 = vmatpush2.msra.mxu0 %v517_v2  ;;  %v640_v37 = vld [vmem:[#allocation2 + $0x368] sm:$0xff]  ;;  %v499_v38 = vld [vmem:[#allocation2 + $0x160] sm:$0xff]  ;;  %v498_v40 = vld [vmem:[#allocation2 + $0x158] sm:$0xff] }
  0x74   : > { %692 = vmatpush2.msra.mxu1 %v657_v3  ;;  %556 = vmatprep.subr.mxu0 %v516_v4  ;;  %v639_v39 = vld [vmem:[#allocation2 + $0x360] sm:$0xff]  ;;  %v638_v41 = vld [vmem:[#allocation2 + $0x358] sm:$0xff]  ;;  %v497_v42 = vld [vmem:[#allocation2 + $0x150] sm:$0xff] }
  0x75   : > { %693 = vmatprep.subr.mxu1 %v656_v5  ;;  %557 = vmatpush2.msra.mxu0 %v515_v6  ;;  %v637_v43 = vld [vmem:[#allocation2 + $0x350] sm:$0xff]  ;;  %v496_v44 = vld [vmem:[#allocation2 + $0x148] sm:$0xff]  ;;  %v495_v46 = vld [vmem:[#allocation2 + $0x140] sm:$0xff] }
  0x76   : > { %694 = vmatpush2.msra.mxu1 %v655_v7  ;;  %558 = vmatprep.subr.mxu0 %v514_v8  ;;  %v636_v45 = vld [vmem:[#allocation2 + $0x348] sm:$0xff]  ;;  %v635_v47 = vld [vmem:[#allocation2 + $0x340] sm:$0xff]  ;;  %v494_v48 = vld [vmem:[#allocation2 + $0x138] sm:$0xff] }
  0x77   : > { %695 = vmatprep.subr.mxu1 %v654_v9  ;;  %559 = vmatpush2.msra.mxu0 %v513_v10  ;;  %v634_v49 = vld [vmem:[#allocation2 + $0x338] sm:$0xff]  ;;  %v493_v50 = vld [vmem:[#allocation2 + $0x130] sm:$0xff]  ;;  %v492_v52 = vld [vmem:[#allocation2 + $0x128] sm:$0xff] }
  0x78   : > { %696 = vmatpush2.msra.mxu1 %v653_v11  ;;  %560 = vmatprep.subr.mxu0 %v512_v12  ;;  %v633_v51 = vld [vmem:[#allocation2 + $0x330] sm:$0xff]  ;;  %v632_v53 = vld [vmem:[#allocation2 + $0x328] sm:$0xff]  ;;  %v491_v54 = vld [vmem:[#allocation2 + $0x120] sm:$0xff] }
  0x79   : > { %697 = vmatprep.subr.mxu1 %v652_v13  ;;  %561 = vmatpush2.msra.mxu0 %v511_v14  ;;  %v631_v55 = vld [vmem:[#allocation2 + $0x320] sm:$0xff]  ;;  %v490_v57 = vld [vmem:[#allocation2 + $0x118] sm:$0xff]  ;;  %v489_v59 = vld [vmem:[#allocation2 + $0x110] sm:$0xff] }
  0x7a   : > { %698 = vmatpush2.msra.mxu1 %v651_v15  ;;  %562 = vmatprep.subr.mxu0 %v510_v16  ;;  %v5730_v56 = vld [vmem:[%s5727_s13] sm:$0xff]  ;;  %v630_v58 = vld [vmem:[#allocation2 + $0x318] sm:$0xff]  ;;  %v629_v60 = vld [vmem:[#allocation2 + $0x310] sm:$0xff] }
  0x7b   : > { %699 = vmatprep.subr.mxu1 %v650_v17  ;;  %563 = vmatpush2.msra.mxu0 %v509_v18  ;;  %v488_v61 = vld [vmem:[#allocation2 + $0x108] sm:$0xff]  ;;  %v5734_v63 = vcombine.high %v5730_v56, %v5730_v56  ;;  %v487_v0 = vld [vmem:[#allocation2 + $0x100] sm:$0xff]  ;;  %v926_v2 = vld [vmem:[#allocation2 + $0x4f8] sm:$0xff] }
  0x7c   : > { %700 = vmatpush2.msra.mxu1 %v649_v19  ;;  %564 = vmatprep.subr.mxu0 %v508_v20  ;;  %v628_v62 = vld [vmem:[#allocation2 + $0x308] sm:$0xff]  ;;  %v627_v1 = vld [vmem:[#allocation2 + $0x300] sm:$0xff]  ;;  %v925_v3 = vld [vmem:[#allocation2 + $0x4f0] sm:$0xff] }
  0x7d   : > { %701 = vmatprep.subr.mxu1 %v648_v21  ;;  %565 = vmatpush2.msra.mxu0 %v507_v22  ;;  %v924_v4 = vld [vmem:[#allocation2 + $0x4e8] sm:$0xff]  ;;  %v923_v5 = vld [vmem:[#allocation2 + $0x4e0] sm:$0xff]  ;;  %v922_v6 = vld [vmem:[#allocation2 + $0x4d8] sm:$0xff] }
  0x7e   : > { %702 = vmatpush2.msra.mxu1 %v647_v23  ;;  %566 = vmatprep.subr.mxu0 %v506_v24  ;;  %v921_v7 = vld [vmem:[#allocation2 + $0x4d0] sm:$0xff]  ;;  %v920_v8 = vld [vmem:[#allocation2 + $0x4c8] sm:$0xff]  ;;  %v919_v9 = vld [vmem:[#allocation2 + $0x4c0] sm:$0xff] }
  0x7f   : > { %703 = vmatprep.subr.mxu1 %v646_v25  ;;  %567 = vmatpush2.msra.mxu0 %v505_v26  ;;  %v918_v10 = vld [vmem:[#allocation2 + $0x4b8] sm:$0xff]  ;;  %v917_v11 = vld [vmem:[#allocation2 + $0x4b0] sm:$0xff]  ;;  %v916_v12 = vld [vmem:[#allocation2 + $0x4a8] sm:$0xff] }
  0x80   : > { %704 = vmatpush2.msra.mxu1 %v645_v27  ;;  %568 = vmatprep.subr.mxu0 %v504_v28  ;;  %v915_v13 = vld [vmem:[#allocation2 + $0x4a0] sm:$0xff]  ;;  %v914_v14 = vld [vmem:[#allocation2 + $0x498] sm:$0xff]  ;;  %v913_v15 = vld [vmem:[#allocation2 + $0x490] sm:$0xff] }
  0x81   : > { %705 = vmatprep.subr.mxu1 %v644_v29  ;;  %569 = vmatpush2.msra.mxu0 %v503_v30  ;;  %v912_v16 = vld [vmem:[#allocation2 + $0x488] sm:$0xff]  ;;  %v911_v17 = vld [vmem:[#allocation2 + $0x480] sm:$0xff]  ;;  %v910_v18 = vld [vmem:[#allocation2 + $0x478] sm:$0xff] }
  0x82   : > { %706 = vmatpush2.msra.mxu1 %v643_v31  ;;  %570 = vmatprep.subr.mxu0 %v502_v32  ;;  %v909_v19 = vld [vmem:[#allocation2 + $0x470] sm:$0xff]  ;;  %v908_v20 = vld [vmem:[#allocation2 + $0x468] sm:$0xff]  ;;  %v907_v21 = vld [vmem:[#allocation2 + $0x460] sm:$0xff] }
  0x83   : > { %707 = vmatprep.subr.mxu1 %v642_v33  ;;  %571 = vmatpush2.msra.mxu0 %v501_v34  ;;  %v906_v22 = vld [vmem:[#allocation2 + $0x458] sm:$0xff]  ;;  %v905_v23 = vld [vmem:[#allocation2 + $0x450] sm:$0xff]  ;;  %v904_v24 = vld [vmem:[#allocation2 + $0x448] sm:$0xff] }
  0x84   : > { %708 = vmatpush2.msra.mxu1 %v641_v35  ;;  %572 = vmatprep.subr.mxu0 %v500_v36  ;;  %v903_v25 = vld [vmem:[#allocation2 + $0x440] sm:$0xff]  ;;  %v902_v26 = vld [vmem:[#allocation2 + $0x438] sm:$0xff]  ;;  %v901_v27 = vld [vmem:[#allocation2 + $0x430] sm:$0xff] }
  0x85   : > { %709 = vmatprep.subr.mxu1 %v640_v37  ;;  %573 = vmatpush2.msra.mxu0 %v499_v38  ;;  %v900_v28 = vld [vmem:[#allocation2 + $0x428] sm:$0xff]  ;;  %v899_v29 = vld [vmem:[#allocation2 + $0x420] sm:$0xff]  ;;  %v898_v30 = vld [vmem:[#allocation2 + $0x418] sm:$0xff] }
  0x86   : > { %710 = vmatpush2.msra.mxu1 %v639_v39  ;;  %574 = vmatprep.subr.mxu0 %v498_v40  ;;  %v897_v31 = vld [vmem:[#allocation2 + $0x410] sm:$0xff]  ;;  %v896_v32 = vld [vmem:[#allocation2 + $0x408] sm:$0xff]  ;;  %v895_v33 = vld [vmem:[#allocation2 + $0x400] sm:$0xff] }
  0x87   : > { %711 = vmatprep.subr.mxu1 %v638_v41  ;;  %575 = vmatpush2.msra.mxu0 %v497_v42  ;;  %v958_v34 = vld [vmem:[#allocation2 + $0x5f8] sm:$0xff]  ;;  %v957_v35 = vld [vmem:[#allocation2 + $0x5f0] sm:$0xff]  ;;  %v956_v36 = vld [vmem:[#allocation2 + $0x5e8] sm:$0xff] }
  0x88   : > { %712 = vmatpush2.msra.mxu1 %v637_v43  ;;  %576 = vmatprep.subr.mxu0 %v496_v44  ;;  %v955_v37 = vld [vmem:[#allocation2 + $0x5e0] sm:$0xff]  ;;  %v954_v38 = vld [vmem:[#allocation2 + $0x5d8] sm:$0xff]  ;;  %v953_v39 = vld [vmem:[#allocation2 + $0x5d0] sm:$0xff] }
  0x89   : > { %713 = vmatprep.subr.mxu1 %v636_v45  ;;  %577 = vmatpush2.msra.mxu0 %v495_v46  ;;  %v952_v40 = vld [vmem:[#allocation2 + $0x5c8] sm:$0xff]  ;;  %v951_v41 = vld [vmem:[#allocation2 + $0x5c0] sm:$0xff]  ;;  %v950_v42 = vld [vmem:[#allocation2 + $0x5b8] sm:$0xff] }
  0x8a   : > { %714 = vmatpush2.msra.mxu1 %v635_v47  ;;  %578 = vmatprep.subr.mxu0 %v494_v48  ;;  %v949_v43 = vld [vmem:[#allocation2 + $0x5b0] sm:$0xff]  ;;  %v948_v44 = vld [vmem:[#allocation2 + $0x5a8] sm:$0xff]  ;;  %v947_v45 = vld [vmem:[#allocation2 + $0x5a0] sm:$0xff] }
  0x8b   : > { %715 = vmatprep.subr.mxu1 %v634_v49  ;;  %579 = vmatpush2.msra.mxu0 %v493_v50  ;;  %v946_v46 = vld [vmem:[#allocation2 + $0x598] sm:$0xff]  ;;  %v945_v47 = vld [vmem:[#allocation2 + $0x590] sm:$0xff]  ;;  %v944_v48 = vld [vmem:[#allocation2 + $0x588] sm:$0xff] }
  0x8c   : > { %716 = vmatpush2.msra.mxu1 %v633_v51  ;;  %580 = vmatprep.subr.mxu0 %v492_v52  ;;  %v943_v49 = vld [vmem:[#allocation2 + $0x580] sm:$0xff]  ;;  %v942_v50 = vld [vmem:[#allocation2 + $0x578] sm:$0xff]  ;;  %v941_v51 = vld [vmem:[#allocation2 + $0x570] sm:$0xff] }
  0x8d   : > { %717 = vmatprep.subr.mxu1 %v632_v53  ;;  %581 = vmatpush2.msra.mxu0 %v491_v54  ;;  %v940_v52 = vld [vmem:[#allocation2 + $0x568] sm:$0xff]  ;;  %v939_v53 = vld [vmem:[#allocation2 + $0x560] sm:$0xff]  ;;  %v938_v54 = vld [vmem:[#allocation2 + $0x558] sm:$0xff] }
  0x8e   : > { %718 = vmatpush2.msra.mxu1 %v631_v55  ;;  %582 = vmatprep.subr.mxu0 %v490_v57  ;;  %v937_v55 = vld [vmem:[#allocation2 + $0x550] sm:$0xff]  ;;  %v936_v57 = vld [vmem:[#allocation2 + $0x548] sm:$0xff] }
  0x8f   : > { %719 = vmatprep.subr.mxu1 %v630_v58  ;;  %583 = vmatpush2.msra.mxu0 %v489_v59  ;;  %v935_v58 = vld [vmem:[#allocation2 + $0x540] sm:$0xff]  ;;  %v934_v59 = vld [vmem:[#allocation2 + $0x538] sm:$0xff] }
  0x90   : > { %720 = vmatpush2.msra.mxu1 %v629_v60  ;;  %584 = vmatprep.subr.mxu0 %v488_v61  ;;  %v933_v60 = vld [vmem:[#allocation2 + $0x530] sm:$0xff]  ;;  %v932_v61 = vld [vmem:[#allocation2 + $0x528] sm:$0xff] }
  0x91   : > { %721 = vmatprep.subr.mxu1 %v628_v62  ;;  %585 = vmatpush2.msra.mxu0 %v487_v0  ;;  %v931_v62 = vld [vmem:[#allocation2 + $0x520] sm:$0xff]  ;;  %v930_v0 = vld [vmem:[#allocation2 + $0x518] sm:$0xff] }
  0x92   : > { %586 = vmatprep.mubr.f32.mxu0 %v5734_v63  ;;  %722 = vmatpush2.msra.mxu1 %v627_v1  ;;  %v929_v1 = vld [vmem:[#allocation2 + $0x510] sm:$0xff] }
  0x93   : > { %723 = vmatprep.mubr.f32.mxu1 %v5734_v63  ;;  %587 = vmatmul.mubr.f32.vlgmr.msra.gmra.mxu0 %v5730_v56 }
  0x94   : > { %724 = vmatmul.mubr.f32.vlgmr.msra.gmra.mxu1 %v5730_v56  ;;  %959 = vmatprep.subr.mxu0 %v926_v2  ;;  %v928_v2 = vld [vmem:[#allocation2 + $0x508] sm:$0xff] }
  0x95   : > { %1023 = vmatprep.mubr.f32.mxu0 %v5734_v63  ;;  %960 = vmatpush1.msra.mxu0 %v925_v3  ;;  %v927_v3 = vld [vmem:[#allocation2 + $0x500] sm:$0xff] }
  0x96   : > { %961 = vmatprep.subr.mxu0 %v924_v4  ;;  %v5554_v4 = vmov 0.0  }
  0x97   : > { %962 = vmatpush1.msra.mxu0 %v923_v5  ;;  %807 = vmatprep.mubr.f32.mxu1 %v5554_v4 }
  0x98   : > { %963 = vmatprep.subr.mxu0 %v922_v6 }
  0x99   : > { %964 = vmatpush1.msra.mxu0 %v921_v7 }
  0x9a   : > { %965 = vmatprep.subr.mxu0 %v920_v8  ;;  %v4789_v8 = vld [vmem:[%s6052_s2 + $0x8] sm:$0xff] }
  0x9b   : > { %966 = vmatpush1.msra.mxu0 %v919_v9 }
  0x9c   : > { %967 = vmatprep.subr.mxu0 %v918_v10  ;;  %v593_v10 = vld [vmem:[%s6052_s2] sm:$0xff] }
  0x9d   : > { %968 = vmatpush1.msra.mxu0 %v917_v11 }
  0x9e   : > { %969 = vmatprep.subr.mxu0 %v916_v12 }
  0x9f   : > { %970 = vmatpush1.msra.mxu0 %v915_v13  ;;  %v4796_v13 = vld [vmem:[%s6052_s2 + $0x10] sm:$0xff] }
  0xa0   : > { %971 = vmatprep.subr.mxu0 %v914_v14  ;;  %v1146_v14 = vld [vmem:[#allocation2 + $0x6f8] sm:$0xff] }
  0xa1   : > { %972 = vmatpush1.msra.mxu0 %v913_v15  ;;  %v1145_v15 = vld [vmem:[#allocation2 + $0x6f0] sm:$0xff] }
  0xa2   : > { %973 = vmatprep.subr.mxu0 %v912_v16  ;;  %v1144_v16 = vld [vmem:[#allocation2 + $0x6e8] sm:$0xff] }
  0xa3   : > { %974 = vmatpush1.msra.mxu0 %v911_v17  ;;  %v1143_v17 = vld [vmem:[#allocation2 + $0x6e0] sm:$0xff] }
  0xa4   : > { %975 = vmatprep.subr.mxu0 %v910_v18  ;;  %v1142_v18 = vld [vmem:[#allocation2 + $0x6d8] sm:$0xff] }
  0xa5   : > { %976 = vmatpush1.msra.mxu0 %v909_v19  ;;  %v1141_v19 = vld [vmem:[#allocation2 + $0x6d0] sm:$0xff] }
  0xa6   : > { %977 = vmatprep.subr.mxu0 %v908_v20  ;;  %v1140_v20 = vld [vmem:[#allocation2 + $0x6c8] sm:$0xff] }
  0xa7   : > { %978 = vmatpush1.msra.mxu0 %v907_v21  ;;  %v1139_v21 = vld [vmem:[#allocation2 + $0x6c0] sm:$0xff] }
  0xa8   : > { %979 = vmatprep.subr.mxu0 %v906_v22  ;;  %v1138_v22 = vld [vmem:[#allocation2 + $0x6b8] sm:$0xff] }
  0xa9   : > { %980 = vmatpush1.msra.mxu0 %v905_v23  ;;  %v1137_v23 = vld [vmem:[#allocation2 + $0x6b0] sm:$0xff] }
  0xaa   : > { %981 = vmatprep.subr.mxu0 %v904_v24  ;;  %v1136_v24 = vld [vmem:[#allocation2 + $0x6a8] sm:$0xff] }
  0xab   : > { %982 = vmatpush1.msra.mxu0 %v903_v25  ;;  %v1135_v25 = vld [vmem:[#allocation2 + $0x6a0] sm:$0xff] }
  0xac   : > { %983 = vmatprep.subr.mxu0 %v902_v26  ;;  %v1134_v26 = vld [vmem:[#allocation2 + $0x698] sm:$0xff] }
  0xad   : > { %984 = vmatpush1.msra.mxu0 %v901_v27  ;;  %v1133_v27 = vld [vmem:[#allocation2 + $0x690] sm:$0xff] }
  0xae   : > { %985 = vmatprep.subr.mxu0 %v900_v28  ;;  %v1132_v28 = vld [vmem:[#allocation2 + $0x688] sm:$0xff] }
  0xaf   : > { %986 = vmatpush1.msra.mxu0 %v899_v29  ;;  %v1131_v29 = vld [vmem:[#allocation2 + $0x680] sm:$0xff] }
  0xb0   : > { %987 = vmatprep.subr.mxu0 %v898_v30  ;;  %v1130_v30 = vld [vmem:[#allocation2 + $0x678] sm:$0xff] }
  0xb1   : > { %988 = vmatpush1.msra.mxu0 %v897_v31  ;;  %v1129_v31 = vld [vmem:[#allocation2 + $0x670] sm:$0xff] }
  0xb2   : > { %989 = vmatprep.subr.mxu0 %v896_v32  ;;  %v1128_v32 = vld [vmem:[#allocation2 + $0x668] sm:$0xff] }
  0xb3   : > { %990 = vmatpush1.msra.mxu0 %v895_v33  ;;  %v1127_v33 = vld [vmem:[#allocation2 + $0x660] sm:$0xff] }
  0xb4   : > { %991 = vmatprep.subr.mxu0 %v958_v34  ;;  %v1126_v34 = vld [vmem:[#allocation2 + $0x658] sm:$0xff] }
  0xb5   : > { %992 = vmatpush2.msra.mxu0 %v957_v35  ;;  %v1125_v35 = vld [vmem:[#allocation2 + $0x650] sm:$0xff] }
  0xb6   : > { %993 = vmatprep.subr.mxu0 %v956_v36  ;;  %v1124_v36 = vld [vmem:[#allocation2 + $0x648] sm:$0xff] }
  0xb7   : > { %994 = vmatpush2.msra.mxu0 %v955_v37  ;;  %v1123_v37 = vld [vmem:[#allocation2 + $0x640] sm:$0xff] }
  0xb8   : > { %995 = vmatprep.subr.mxu0 %v954_v38  ;;  %v1122_v38 = vld [vmem:[#allocation2 + $0x638] sm:$0xff] }
  0xb9   : > { %996 = vmatpush2.msra.mxu0 %v953_v39  ;;  %v1121_v39 = vld [vmem:[#allocation2 + $0x630] sm:$0xff] }
  0xba   : > { %997 = vmatprep.subr.mxu0 %v952_v40  ;;  %v1120_v40 = vld [vmem:[#allocation2 + $0x628] sm:$0xff] }
  0xbb   : > { %998 = vmatpush2.msra.mxu0 %v951_v41  ;;  %v1119_v41 = vld [vmem:[#allocation2 + $0x620] sm:$0xff] }
  0xbc   : > { %999 = vmatprep.subr.mxu0 %v950_v42  ;;  %v1118_v42 = vld [vmem:[#allocation2 + $0x618] sm:$0xff] }
  0xbd   : > { %1000 = vmatpush2.msra.mxu0 %v949_v43  ;;  %v1117_v43 = vld [vmem:[#allocation2 + $0x610] sm:$0xff] }
  0xbe   : > { %1001 = vmatprep.subr.mxu0 %v948_v44  ;;  %v1116_v44 = vld [vmem:[#allocation2 + $0x608] sm:$0xff] }
  0xbf   : > { %1002 = vmatpush2.msra.mxu0 %v947_v45  ;;  %v1115_v45 = vld [vmem:[#allocation2 + $0x600] sm:$0xff] }
  0xc0   : > { %1003 = vmatprep.subr.mxu0 %v946_v46  ;;  %v1178_v46 = vld [vmem:[#allocation2 + $0x7f8] sm:$0xff] }
  0xc1   : > { %1004 = vmatpush2.msra.mxu0 %v945_v47  ;;  %v1177_v47 = vld [vmem:[#allocation2 + $0x7f0] sm:$0xff] }
  0xc2   : > { %1005 = vmatprep.subr.mxu0 %v944_v48  ;;  %v1176_v48 = vld [vmem:[#allocation2 + $0x7e8] sm:$0xff] }
  0xc3   : > { %1006 = vmatpush2.msra.mxu0 %v943_v49  ;;  %v1175_v49 = vld [vmem:[#allocation2 + $0x7e0] sm:$0xff] }
  0xc4   : > { %1007 = vmatprep.subr.mxu0 %v942_v50  ;;  %v1174_v50 = vld [vmem:[#allocation2 + $0x7d8] sm:$0xff] }
  0xc5   : > { %1008 = vmatpush2.msra.mxu0 %v941_v51  ;;  %v1173_v51 = vld [vmem:[#allocation2 + $0x7d0] sm:$0xff] }
  0xc6   : > { %1009 = vmatprep.subr.mxu0 %v940_v52  ;;  %v1172_v52 = vld [vmem:[#allocation2 + $0x7c8] sm:$0xff] }
  0xc7   : > { %1010 = vmatpush2.msra.mxu0 %v939_v53  ;;  %v1171_v53 = vld [vmem:[#allocation2 + $0x7c0] sm:$0xff] }
  0xc8   : > { %1011 = vmatprep.subr.mxu0 %v938_v54  ;;  %v1170_v54 = vld [vmem:[#allocation2 + $0x7b8] sm:$0xff] }
  0xc9   : > { %1012 = vmatpush2.msra.mxu0 %v937_v55  ;;  %v1169_v55 = vld [vmem:[#allocation2 + $0x7b0] sm:$0xff] }
  0xca   : > { %1013 = vmatprep.subr.mxu0 %v936_v57  ;;  %v1168_v57 = vld [vmem:[#allocation2 + $0x7a8] sm:$0xff] }
  0xcb   : > { %1014 = vmatpush2.msra.mxu0 %v935_v58  ;;  %v1167_v58 = vld [vmem:[#allocation2 + $0x7a0] sm:$0xff] }
  0xcc   : > { %1015 = vmatprep.subr.mxu0 %v934_v59  ;;  %v1166_v59 = vld [vmem:[#allocation2 + $0x798] sm:$0xff] }
  0xcd   : > { %1016 = vmatpush2.msra.mxu0 %v933_v60  ;;  %v1165_v60 = vld [vmem:[#allocation2 + $0x790] sm:$0xff] }
  0xce   : > { %1017 = vmatprep.subr.mxu0 %v932_v61  ;;  %v1164_v61 = vld [vmem:[#allocation2 + $0x788] sm:$0xff] }
  0xcf   : > { %1018 = vmatpush2.msra.mxu0 %v931_v62  ;;  %v1163_v62 = vld [vmem:[#allocation2 + $0x780] sm:$0xff] }
  0xd0   : > { %1019 = vmatprep.subr.mxu0 %v930_v0  ;;  %v1162_v0 = vld [vmem:[#allocation2 + $0x778] sm:$0xff] }
  0xd1   : > { %1020 = vmatpush2.msra.mxu0 %v929_v1  ;;  %v1161_v1 = vld [vmem:[#allocation2 + $0x770] sm:$0xff] }
  0xd2   : > { %1021 = vmatprep.subr.mxu0 %v928_v2  ;;  %v1160_v2 = vld [vmem:[#allocation2 + $0x768] sm:$0xff] }
  0xd3   : > { %1022 = vmatpush2.msra.mxu0 %v927_v3  ;;  %v1159_v3 = vld [vmem:[#allocation2 + $0x760] sm:$0xff] }
  0xd4   : > { %1024 = vmatmul.mubr.f32.vlgmr.msra.gmra.mxu0 %v5730_v56 }
  0xd5   : > { %1325 = vmatprep.mubr.f32.mxu0 %v5554_v4 }
 0x153   : > { %v588_v5 = vpop.f32.mrf.mxu0 }
 0x154   : > { %v725_v6 = vpop.f32.mrf.mxu1 }
 0x155   : > { %v590_v9 = vpop.f32.mrf.mxu0 }
 0x156   : > { %v727_v7 = vpop.f32.mrf.mxu1 }
 0x157   : > { %4790 = vmatprep.subr.msk.mxu1 %vm736_vm0, %v727_v7  ;;  %v1156_v7 = vld [vmem:[#allocation2 + $0x748] sm:$0xff] }
 0x158   : > { %4791 = vmatpush1.msk.msra.mxu1 %vm736_vm0, %v725_v6  ;;  %v1157_v6 = vld [vmem:[#allocation2 + $0x750] sm:$0xff] }
 0x159   : > { %4793 = vmatprep.subr.msk.mxu1 %vm736_vm0, %v590_v9  ;;  %4792 = vmatmul.mubr.msk.f32.vlgmr.msra.gmra.mxu1 %vm732_vm1, %v4789_v8  ;;  %v1155_v8 = vld [vmem:[#allocation2 + $0x740] sm:$0xff]  ;;  %v1154_v9 = vld [vmem:[#allocation2 + $0x738] sm:$0xff] }
 0x15a   : > { %4794 = vmatpush1.msk.msra.mxu1 %vm736_vm0, %v588_v5  ;;  %887 = vmatprep.mubr.f32.mxu1 %v5554_v4  ;;  %v1158_v5 = vld [vmem:[#allocation2 + $0x758] sm:$0xff] }
 0x15d   : > { %4795 = vmatmul.mubr.msk.f32.vlgmr.msra.gmra.mxu1 %vm732_vm1, %v593_v10  ;;  %v1153_v10 = vld [vmem:[#allocation2 + $0x730] sm:$0xff] }
 0x15e   : > { %1105 = vmatprep.mubr.f32.mxu1 %v5554_v4 }
 0x194   : > { %v1025_v11 = vpop.f32.mrf.mxu0 }
 0x196   : > { %v1027_v12 = vpop.f32.mrf.mxu0 }
 0x197   : > { %4797 = vmatprep.subr.msk.mxu1 %vm736_vm0, %v1027_v12  ;;  %v1151_v12 = vld [vmem:[#allocation2 + $0x720] sm:$0xff] }
 0x198   : > { %4798 = vmatpush1.msk.msra.mxu1 %vm736_vm0, %v1025_v11  ;;  %v1152_v11 = vld [vmem:[#allocation2 + $0x728] sm:$0xff] }
 0x199   : > { %4799 = vmatmul.mubr.msk.f32.vlgmr.msra.gmra.mxu1 %vm732_vm1, %v4796_v13  ;;  %1179 = vmatprep.subr.mxu1 %v1146_v14  ;;  %v1150_v13 = vld [vmem:[#allocation2 + $0x718] sm:$0xff]  ;;  %v1149_v14 = vld [vmem:[#allocation2 + $0x710] sm:$0xff] }
 0x19a   : > { %1180 = vmatpush1.msra.mxu1 %v1145_v15  ;;  %1243 = vmatprep.mubr.f32.mxu1 %v5734_v63  ;;  %v1148_v15 = vld [vmem:[#allocation2 + $0x708] sm:$0xff] }
 0x19b   : > { %1181 = vmatprep.subr.mxu1 %v1144_v16  ;;  %v1147_v16 = vld [vmem:[#allocation2 + $0x700] sm:$0xff] }
 0x19c   : > { %1182 = vmatpush1.msra.mxu1 %v1143_v17 }
 0x19d   : > { %1183 = vmatprep.subr.mxu1 %v1142_v18 }
 0x19e   : > { %1184 = vmatpush1.msra.mxu1 %v1141_v19 }
 0x19f   : > { %1185 = vmatprep.subr.mxu1 %v1140_v20 }
 0x1a0   : > { %1186 = vmatpush1.msra.mxu1 %v1139_v21 }
 0x1a1   : > { %1187 = vmatprep.subr.mxu1 %v1138_v22 }
 0x1a2   : > { %1188 = vmatpush1.msra.mxu1 %v1137_v23 }
 0x1a3   : > { %1189 = vmatprep.subr.mxu1 %v1136_v24 }
 0x1a4   : > { %1190 = vmatpush1.msra.mxu1 %v1135_v25 }
 0x1a5   : > { %1191 = vmatprep.subr.mxu1 %v1134_v26 }
 0x1a6   : > { %1192 = vmatpush1.msra.mxu1 %v1133_v27 }
 0x1a7   : > { %1193 = vmatprep.subr.mxu1 %v1132_v28 }
 0x1a8   : > { %1194 = vmatpush1.msra.mxu1 %v1131_v29  ;;  %v4800_v29 = vld [vmem:[%s6052_s2 + $0x18] sm:$0xff] }
 0x1a9   : > { %1195 = vmatprep.subr.mxu1 %v1130_v30  ;;  %v1366_v30 = vld [vmem:[#allocation2 + $0x8f8] sm:$0xff] }
 0x1aa   : > { %1196 = vmatpush1.msra.mxu1 %v1129_v31  ;;  %v1365_v31 = vld [vmem:[#allocation2 + $0x8f0] sm:$0xff] }
 0x1ab   : > { %1197 = vmatprep.subr.mxu1 %v1128_v32  ;;  %v1364_v32 = vld [vmem:[#allocation2 + $0x8e8] sm:$0xff] }
 0x1ac   : > { %1198 = vmatpush1.msra.mxu1 %v1127_v33  ;;  %v1363_v33 = vld [vmem:[#allocation2 + $0x8e0] sm:$0xff] }
 0x1ad   : > { %1199 = vmatprep.subr.mxu1 %v1126_v34  ;;  %v1362_v34 = vld [vmem:[#allocation2 + $0x8d8] sm:$0xff] }
 0x1ae   : > { %1200 = vmatpush1.msra.mxu1 %v1125_v35  ;;  %v1361_v35 = vld [vmem:[#allocation2 + $0x8d0] sm:$0xff] }
 0x1af   : > { %1201 = vmatprep.subr.mxu1 %v1124_v36  ;;  %v1360_v36 = vld [vmem:[#allocation2 + $0x8c8] sm:$0xff] }
 0x1b0   : > { %1202 = vmatpush1.msra.mxu1 %v1123_v37  ;;  %v1359_v37 = vld [vmem:[#allocation2 + $0x8c0] sm:$0xff] }
 0x1b1   : > { %1203 = vmatprep.subr.mxu1 %v1122_v38  ;;  %v1358_v38 = vld [vmem:[#allocation2 + $0x8b8] sm:$0xff] }
 0x1b2   : > { %1204 = vmatpush1.msra.mxu1 %v1121_v39  ;;  %v1357_v39 = vld [vmem:[#allocation2 + $0x8b0] sm:$0xff] }
 0x1b3   : > { %1205 = vmatprep.subr.mxu1 %v1120_v40  ;;  %v1356_v40 = vld [vmem:[#allocation2 + $0x8a8] sm:$0xff] }
 0x1b4   : > { %1206 = vmatpush1.msra.mxu1 %v1119_v41  ;;  %v1355_v41 = vld [vmem:[#allocation2 + $0x8a0] sm:$0xff] }
 0x1b5   : > { %1207 = vmatprep.subr.mxu1 %v1118_v42  ;;  %v1354_v42 = vld [vmem:[#allocation2 + $0x898] sm:$0xff] }
 0x1b6   : > { %1208 = vmatpush1.msra.mxu1 %v1117_v43  ;;  %v1353_v43 = vld [vmem:[#allocation2 + $0x890] sm:$0xff] }
 0x1b7   : > { %1209 = vmatprep.subr.mxu1 %v1116_v44  ;;  %v1352_v44 = vld [vmem:[#allocation2 + $0x888] sm:$0xff] }
 0x1b8   : > { %1210 = vmatpush1.msra.mxu1 %v1115_v45  ;;  %v1351_v45 = vld [vmem:[#allocation2 + $0x880] sm:$0xff] }
 0x1b9   : > { %1211 = vmatprep.subr.mxu1 %v1178_v46  ;;  %v1350_v46 = vld [vmem:[#allocation2 + $0x878] sm:$0xff] }
 0x1ba   : > { %1212 = vmatpush2.msra.mxu1 %v1177_v47  ;;  %v1349_v47 = vld [vmem:[#allocation2 + $0x870] sm:$0xff] }
 0x1bb   : > { %1213 = vmatprep.subr.mxu1 %v1176_v48  ;;  %v1348_v48 = vld [vmem:[#allocation2 + $0x868] sm:$0xff] }
 0x1bc   : > { %1214 = vmatpush2.msra.mxu1 %v1175_v49  ;;  %v1347_v49 = vld [vmem:[#allocation2 + $0x860] sm:$0xff] }
 0x1bd   : > { %1215 = vmatprep.subr.mxu1 %v1174_v50  ;;  %v1346_v50 = vld [vmem:[#allocation2 + $0x858] sm:$0xff] }
 0x1be   : > { %1216 = vmatpush2.msra.mxu1 %v1173_v51  ;;  %v1345_v51 = vld [vmem:[#allocation2 + $0x850] sm:$0xff] }
 0x1bf   : > { %1217 = vmatprep.subr.mxu1 %v1172_v52  ;;  %v1344_v52 = vld [vmem:[#allocation2 + $0x848] sm:$0xff] }
 0x1c0   : > { %1218 = vmatpush2.msra.mxu1 %v1171_v53  ;;  %v1343_v53 = vld [vmem:[#allocation2 + $0x840] sm:$0xff] }
 0x1c1   : > { %1219 = vmatprep.subr.mxu1 %v1170_v54  ;;  %v1342_v54 = vld [vmem:[#allocation2 + $0x838] sm:$0xff] }
 0x1c2   : > { %1220 = vmatpush2.msra.mxu1 %v1169_v55  ;;  %v1341_v55 = vld [vmem:[#allocation2 + $0x830] sm:$0xff] }
 0x1c3   : > { %1221 = vmatprep.subr.mxu1 %v1168_v57  ;;  %v1340_v57 = vld [vmem:[#allocation2 + $0x828] sm:$0xff] }
 0x1c4   : > { %1222 = vmatpush2.msra.mxu1 %v1167_v58  ;;  %v1339_v58 = vld [vmem:[#allocation2 + $0x820] sm:$0xff] }
 0x1c5   : > { %1223 = vmatprep.subr.mxu1 %v1166_v59  ;;  %v1338_v59 = vld [vmem:[#allocation2 + $0x818] sm:$0xff] }
 0x1c6   : > { %1224 = vmatpush2.msra.mxu1 %v1165_v60  ;;  %v1337_v60 = vld [vmem:[#allocation2 + $0x810] sm:$0xff] }
 0x1c7   : > { %1225 = vmatprep.subr.mxu1 %v1164_v61  ;;  %v1336_v61 = vld [vmem:[#allocation2 + $0x808] sm:$0xff] }
 0x1c8   : > { %1226 = vmatpush2.msra.mxu1 %v1163_v62  ;;  %v1335_v62 = vld [vmem:[#allocation2 + $0x800] sm:$0xff] }
 0x1c9   : > { %1227 = vmatprep.subr.mxu1 %v1162_v0  ;;  %v1398_v0 = vld [vmem:[#allocation2 + $0x9f8] sm:$0xff] }
 0x1ca   : > { %1228 = vmatpush2.msra.mxu1 %v1161_v1  ;;  %v1397_v1 = vld [vmem:[#allocation2 + $0x9f0] sm:$0xff] }
 0x1cb   : > { %1229 = vmatprep.subr.mxu1 %v1160_v2  ;;  %v1396_v2 = vld [vmem:[#allocation2 + $0x9e8] sm:$0xff] }
 0x1cc   : > { %1230 = vmatpush2.msra.mxu1 %v1159_v3  ;;  %v1395_v3 = vld [vmem:[#allocation2 + $0x9e0] sm:$0xff] }
 0x1cd   : > { %1231 = vmatprep.subr.mxu1 %v1158_v5  ;;  %v1394_v5 = vld [vmem:[#allocation2 + $0x9d8] sm:$0xff] }
 0x1ce   : > { %1232 = vmatpush2.msra.mxu1 %v1157_v6  ;;  %v1393_v6 = vld [vmem:[#allocation2 + $0x9d0] sm:$0xff] }
 0x1cf   : > { %1233 = vmatprep.subr.mxu1 %v1156_v7  ;;  %v1392_v7 = vld [vmem:[#allocation2 + $0x9c8] sm:$0xff] }
 0x1d0   : > { %1234 = vmatpush2.msra.mxu1 %v1155_v8  ;;  %v1391_v8 = vld [vmem:[#allocation2 + $0x9c0] sm:$0xff] }
 0x1d1   : > { %1235 = vmatprep.subr.mxu1 %v1154_v9  ;;  %v1390_v9 = vld [vmem:[#allocation2 + $0x9b8] sm:$0xff] }
 0x1d2   : > { %1236 = vmatpush2.msra.mxu1 %v1153_v10  ;;  %v1389_v10 = vld [vmem:[#allocation2 + $0x9b0] sm:$0xff] }
 0x1d3   : > { %1237 = vmatprep.subr.mxu1 %v1152_v11  ;;  %v1388_v11 = vld [vmem:[#allocation2 + $0x9a8] sm:$0xff] }
 0x1d4   : > { %1238 = vmatpush2.msra.mxu1 %v1151_v12  ;;  %v1387_v12 = vld [vmem:[#allocation2 + $0x9a0] sm:$0xff] }
 0x1d5   : > { %1239 = vmatprep.subr.mxu1 %v1150_v13  ;;  %v1386_v13 = vld [vmem:[#allocation2 + $0x998] sm:$0xff] }
 0x1d6   : > { %1240 = vmatpush2.msra.mxu1 %v1149_v14  ;;  %v1385_v14 = vld [vmem:[#allocation2 + $0x990] sm:$0xff] }
 0x1d7   : > { %1241 = vmatprep.subr.mxu1 %v1148_v15  ;;  %v1384_v15 = vld [vmem:[#allocation2 + $0x988] sm:$0xff] }
 0x1d8   : > { %1242 = vmatpush2.msra.mxu1 %v1147_v16  ;;  %v1383_v16 = vld [vmem:[#allocation2 + $0x980] sm:$0xff] }
 0x1d9   : > { %1244 = vmatmul.mubr.f32.vlgmr.msra.gmra.mxu1 %v5730_v56 }
 0x1da   : > { %1545 = vmatprep.mubr.f32.mxu1 %v5554_v4 }
 0x219   : > { %v809_v17 = vpop.f32.mrf.mxu1 }
 0x21b   : > { %v811_v18 = vpop.f32.mrf.mxu1 }
 0x21d   : > { %v889_v19 = vpop.f32.mrf.mxu1 }
 0x21e   : > { %v890_v20 = vadd.f32 %v889_v19, %v809_v17  ;;  %v1382_v17 = vld [vmem:[#allocation2 + $0x978] sm:$0xff]  ;;  %v1380_v19 = vld [vmem:[#allocation2 + $0x968] sm:$0xff] }
 0x21f   : > { %v891_v21 = vpop.f32.mrf.mxu1 }
 0x220   : > { %v892_v22 = vadd.f32 %v891_v21, %v811_v18  ;;  %v1381_v18 = vld [vmem:[#allocation2 + $0x970] sm:$0xff]  ;;  %v1378_v21 = vld [vmem:[#allocation2 + $0x958] sm:$0xff] }
 0x259   : > { %v1107_v23 = vpop.f32.mrf.mxu1 }
 0x25a   : > { %v5767_v24 = vadd.f32 %v1107_v23, %v890_v20  ;;  %v1379_v20 = vld [vmem:[#allocation2 + $0x960] sm:$0xff]  ;;  %v1376_v23 = vld [vmem:[#allocation2 + $0x948] sm:$0xff] }
 0x25b   : > { %v1109_v25 = vpop.f32.mrf.mxu1 }
 0x25c   : > { %v5769_v26 = vadd.f32 %v1109_v25, %v892_v22  ;;  %v1377_v22 = vld [vmem:[#allocation2 + $0x950] sm:$0xff]  ;;  %v1375_v25 = vld [vmem:[#allocation2 + $0x940] sm:$0xff] }
 0x299   : > { %v1245_v27 = vpop.f32.mrf.mxu1 }
 0x29b   : > { %v1247_v28 = vpop.f32.mrf.mxu1 }
 0x29c   : > { %4801 = vmatprep.subr.msk.mxu0 %vm736_vm0, %v1247_v28  ;;  %v1373_v28 = vld [vmem:[#allocation2 + $0x930] sm:$0xff] }
 0x29d   : > { %4802 = vmatpush1.msk.msra.mxu0 %vm736_vm0, %v1245_v27  ;;  %v1374_v27 = vld [vmem:[#allocation2 + $0x938] sm:$0xff] }
 0x29e   : > { %4803 = vmatmul.mubr.msk.f32.vlgmr.msra.gmra.mxu0 %vm732_vm1, %v4800_v29  ;;  %1399 = vmatprep.subr.mxu0 %v1366_v30  ;;  %v1372_v29 = vld [vmem:[#allocation2 + $0x928] sm:$0xff]  ;;  %v1371_v30 = vld [vmem:[#allocation2 + $0x920] sm:$0xff] }
 0x29f   : > { %1400 = vmatpush1.msra.mxu0 %v1365_v31  ;;  %1463 = vmatprep.mubr.f32.mxu0 %v5734_v63  ;;  %v1370_v31 = vld [vmem:[#allocation2 + $0x918] sm:$0xff] }
 0x2a0   : > { %1401 = vmatprep.subr.mxu0 %v1364_v32  ;;  %v1369_v32 = vld [vmem:[#allocation2 + $0x910] sm:$0xff] }
 0x2a1   : > { %1402 = vmatpush1.msra.mxu0 %v1363_v33  ;;  %v1368_v33 = vld [vmem:[#allocation2 + $0x908] sm:$0xff] }
 0x2a2   : > { %1403 = vmatprep.subr.mxu0 %v1362_v34  ;;  %v1367_v34 = vld [vmem:[#allocation2 + $0x900] sm:$0xff] }
 0x2a3   : > { %1404 = vmatpush1.msra.mxu0 %v1361_v35 }
 0x2a4   : > { %1405 = vmatprep.subr.mxu0 %v1360_v36 }
 0x2a5   : > { %1406 = vmatpush1.msra.mxu0 %v1359_v37 }
 0x2a6   : > { %1407 = vmatprep.subr.mxu0 %v1358_v38 }
 0x2a7   : > { %1408 = vmatpush1.msra.mxu0 %v1357_v39 }
 0x2a8   : > { %1409 = vmatprep.subr.mxu0 %v1356_v40 }
 0x2a9   : > { %1410 = vmatpush1.msra.mxu0 %v1355_v41  ;;  %v4804_v41 = vld [vmem:[%s6052_s2 + $0x20] sm:$0xff] }
 0x2aa   : > { %1411 = vmatprep.subr.mxu0 %v1354_v42  ;;  %v1586_v42 = vld [vmem:[#allocation2 + $0xaf8] sm:$0xff] }
 0x2ab   : > { %1412 = vmatpush1.msra.mxu0 %v1353_v43  ;;  %v1584_v43 = vld [vmem:[#allocation2 + $0xae8] sm:$0xff] }
 0x2ac   : > { %1413 = vmatprep.subr.mxu0 %v1352_v44  ;;  %v1581_v44 = vld [vmem:[#allocation2 + $0xad0] sm:$0xff] }
 0x2ad   : > { %1414 = vmatpush1.msra.mxu0 %v1351_v45  ;;  %v1580_v45 = vld [vmem:[#allocation2 + $0xac8] sm:$0xff] }
 0x2ae   : > { %1415 = vmatprep.subr.mxu0 %v1350_v46  ;;  %v1579_v46 = vld [vmem:[#allocation2 + $0xac0] sm:$0xff] }
 0x2af   : > { %1416 = vmatpush1.msra.mxu0 %v1349_v47  ;;  %v1578_v47 = vld [vmem:[#allocation2 + $0xab8] sm:$0xff] }
 0x2b0   : > { %1417 = vmatprep.subr.mxu0 %v1348_v48  ;;  %v1577_v48 = vld [vmem:[#allocation2 + $0xab0] sm:$0xff] }
 0x2b1   : > { %1418 = vmatpush1.msra.mxu0 %v1347_v49  ;;  %v1576_v49 = vld [vmem:[#allocation2 + $0xaa8] sm:$0xff] }
 0x2b2   : > { %1419 = vmatprep.subr.mxu0 %v1346_v50  ;;  %v1575_v50 = vld [vmem:[#allocation2 + $0xaa0] sm:$0xff] }
 0x2b3   : > { %1420 = vmatpush1.msra.mxu0 %v1345_v51  ;;  %v1574_v51 = vld [vmem:[#allocation2 + $0xa98] sm:$0xff] }
 0x2b4   : > { %1421 = vmatprep.subr.mxu0 %v1344_v52  ;;  %v1573_v52 = vld [vmem:[#allocation2 + $0xa90] sm:$0xff] }
 0x2b5   : > { %1422 = vmatpush1.msra.mxu0 %v1343_v53  ;;  %v1572_v53 = vld [vmem:[#allocation2 + $0xa88] sm:$0xff] }
 0x2b6   : > { %1423 = vmatprep.subr.mxu0 %v1342_v54  ;;  %v1571_v54 = vld [vmem:[#allocation2 + $0xa80] sm:$0xff] }
 0x2b7   : > { %1424 = vmatpush1.msra.mxu0 %v1341_v55  ;;  %v1570_v55 = vld [vmem:[#allocation2 + $0xa78] sm:$0xff] }
 0x2b8   : > { %1425 = vmatprep.subr.mxu0 %v1340_v57  ;;  %v1569_v57 = vld [vmem:[#allocation2 + $0xa70] sm:$0xff] }
 0x2b9   : > { %1426 = vmatpush1.msra.mxu0 %v1339_v58  ;;  %v1568_v58 = vld [vmem:[#allocation2 + $0xa68] sm:$0xff] }
 0x2ba   : > { %1427 = vmatprep.subr.mxu0 %v1338_v59  ;;  %v1567_v59 = vld [vmem:[#allocation2 + $0xa60] sm:$0xff] }
 0x2bb   : > { %1428 = vmatpush1.msra.mxu0 %v1337_v60  ;;  %v1566_v60 = vld [vmem:[#allocation2 + $0xa58] sm:$0xff] }
 0x2bc   : > { %1429 = vmatprep.subr.mxu0 %v1336_v61  ;;  %v1565_v61 = vld [vmem:[#allocation2 + $0xa50] sm:$0xff] }
 0x2bd   : > { %1430 = vmatpush1.msra.mxu0 %v1335_v62  ;;  %v1564_v62 = vld [vmem:[#allocation2 + $0xa48] sm:$0xff] }
 0x2be   : > { %1431 = vmatprep.subr.mxu0 %v1398_v0  ;;  %v1563_v0 = vld [vmem:[#allocation2 + $0xa40] sm:$0xff] }
 0x2bf   : > { %1432 = vmatpush2.msra.mxu0 %v1397_v1  ;;  %v1562_v1 = vld [vmem:[#allocation2 + $0xa38] sm:$0xff] }
 0x2c0   : > { %1433 = vmatprep.subr.mxu0 %v1396_v2  ;;  %v1561_v2 = vld [vmem:[#allocation2 + $0xa30] sm:$0xff] }
 0x2c1   : > { %1434 = vmatpush2.msra.mxu0 %v1395_v3  ;;  %v1560_v3 = vld [vmem:[#allocation2 + $0xa28] sm:$0xff] }
 0x2c2   : > { %1435 = vmatprep.subr.mxu0 %v1394_v5  ;;  %v1559_v5 = vld [vmem:[#allocation2 + $0xa20] sm:$0xff] }
 0x2c3   : > { %1436 = vmatpush2.msra.mxu0 %v1393_v6  ;;  %v1558_v6 = vld [vmem:[#allocation2 + $0xa18] sm:$0xff] }
 0x2c4   : > { %1437 = vmatprep.subr.mxu0 %v1392_v7  ;;  %v1557_v7 = vld [vmem:[#allocation2 + $0xa10] sm:$0xff] }
 0x2c5   : > { %1438 = vmatpush2.msra.mxu0 %v1391_v8  ;;  %v1556_v8 = vld [vmem:[#allocation2 + $0xa08] sm:$0xff] }
 0x2c6   : > { %1439 = vmatprep.subr.mxu0 %v1390_v9  ;;  %v1555_v9 = vld [vmem:[#allocation2 + $0xa00] sm:$0xff] }
 0x2c7   : > { %1440 = vmatpush2.msra.mxu0 %v1389_v10  ;;  %v1618_v10 = vld [vmem:[#allocation2 + $0xbf8] sm:$0xff] }
 0x2c8   : > { %1441 = vmatprep.subr.mxu0 %v1388_v11  ;;  %v1617_v11 = vld [vmem:[#allocation2 + $0xbf0] sm:$0xff] }
 0x2c9   : > { %1442 = vmatpush2.msra.mxu0 %v1387_v12  ;;  %v1616_v12 = vld [vmem:[#allocation2 + $0xbe8] sm:$0xff] }
 0x2ca   : > { %1443 = vmatprep.subr.mxu0 %v1386_v13  ;;  %v1615_v13 = vld [vmem:[#allocation2 + $0xbe0] sm:$0xff] }
 0x2cb   : > { %1444 = vmatpush2.msra.mxu0 %v1385_v14  ;;  %v1614_v14 = vld [vmem:[#allocation2 + $0xbd8] sm:$0xff] }
 0x2cc   : > { %1445 = vmatprep.subr.mxu0 %v1384_v15  ;;  %v1613_v15 = vld [vmem:[#allocation2 + $0xbd0] sm:$0xff] }
 0x2cd   : > { %1446 = vmatpush2.msra.mxu0 %v1383_v16  ;;  %v1612_v16 = vld [vmem:[#allocation2 + $0xbc8] sm:$0xff] }
 0x2ce   : > { %1447 = vmatprep.subr.mxu0 %v1382_v17  ;;  %v1611_v17 = vld [vmem:[#allocation2 + $0xbc0] sm:$0xff] }
 0x2cf   : > { %1448 = vmatpush2.msra.mxu0 %v1381_v18  ;;  %v1610_v18 = vld [vmem:[#allocation2 + $0xbb8] sm:$0xff] }
 0x2d0   : > { %1449 = vmatprep.subr.mxu0 %v1380_v19  ;;  %v1609_v19 = vld [vmem:[#allocation2 + $0xbb0] sm:$0xff] }
 0x2d1   : > { %1450 = vmatpush2.msra.mxu0 %v1379_v20  ;;  %v1608_v20 = vld [vmem:[#allocation2 + $0xba8] sm:$0xff] }
 0x2d2   : > { %1451 = vmatprep.subr.mxu0 %v1378_v21  ;;  %v1607_v21 = vld [vmem:[#allocation2 + $0xba0] sm:$0xff] }
 0x2d3   : > { %1452 = vmatpush2.msra.mxu0 %v1377_v22  ;;  %v1606_v22 = vld [vmem:[#allocation2 + $0xb98] sm:$0xff] }
 0x2d4   : > { %1453 = vmatprep.subr.mxu0 %v1376_v23  ;;  %v1605_v23 = vld [vmem:[#allocation2 + $0xb90] sm:$0xff] }
 0x2d5   : > { %1454 = vmatpush2.msra.mxu0 %v1375_v25  ;;  %v1604_v25 = vld [vmem:[#allocation2 + $0xb88] sm:$0xff] }
 0x2d6   : > { %1455 = vmatprep.subr.mxu0 %v1374_v27  ;;  %v1603_v27 = vld [vmem:[#allocation2 + $0xb80] sm:$0xff] }
 0x2d7   : > { %1456 = vmatpush2.msra.mxu0 %v1373_v28  ;;  %v1602_v28 = vld [vmem:[#allocation2 + $0xb78] sm:$0xff] }
 0x2d8   : > { %1457 = vmatprep.subr.mxu0 %v1372_v29  ;;  %v1601_v29 = vld [vmem:[#allocation2 + $0xb70] sm:$0xff] }
 0x2d9   : > { %1458 = vmatpush2.msra.mxu0 %v1371_v30  ;;  %v1600_v30 = vld [vmem:[#allocation2 + $0xb68] sm:$0xff] }
 0x2da   : > { %1459 = vmatprep.subr.mxu0 %v1370_v31  ;;  %v1599_v31 = vld [vmem:[#allocation2 + $0xb60] sm:$0xff] }
 0x2db   : > { %1460 = vmatpush2.msra.mxu0 %v1369_v32  ;;  %v1598_v32 = vld [vmem:[#allocation2 + $0xb58] sm:$0xff] }
 0x2dc   : > { %1461 = vmatprep.subr.mxu0 %v1368_v33  ;;  %v1597_v33 = vld [vmem:[#allocation2 + $0xb50] sm:$0xff] }
 0x2dd   : > { %1462 = vmatpush2.msra.mxu0 %v1367_v34  ;;  %v1596_v34 = vld [vmem:[#allocation2 + $0xb48] sm:$0xff] }
 0x2de   : > { %1464 = vmatmul.mubr.f32.vlgmr.msra.gmra.mxu0 %v5730_v56  ;;  %v1585_v56 = vld [vmem:[#allocation2 + $0xaf0] sm:$0xff] }
 0x2df   : > { %1765 = vmatprep.mubr.f32.mxu0 %v5554_v4 }
 0x35e   : > { %v1327_v35 = vpop.f32.mrf.mxu0 }
 0x35f   : > { %v5781_v36 = vadd.f32 %v1327_v35, %v5767_v24  ;;  %v1583_v24 = vld [vmem:[#allocation2 + $0xae0] sm:$0xff] }
 0x360   : > { %v1329_v37 = vpop.f32.mrf.mxu0  ;;  %v1595_v35 = vld [vmem:[#allocation2 + $0xb40] sm:$0xff] }
 0x361   : > { %v5784_v38 = vadd.f32 %v1329_v37, %v5769_v26  ;;  %v1582_v26 = vld [vmem:[#allocation2 + $0xad8] sm:$0xff] }
 0x362   : > { %v1594_v37 = vld [vmem:[#allocation2 + $0xb38] sm:$0xff] }
 0x39e   : > { %v1465_v39 = vpop.f32.mrf.mxu0 }
 0x3a0   : > { %v1467_v40 = vpop.f32.mrf.mxu0 }
 0x3a1   : > { %4805 = vmatprep.subr.msk.mxu1 %vm736_vm0, %v1467_v40  ;;  %v1592_v40 = vld [vmem:[#allocation2 + $0xb28] sm:$0xff] }
 0x3a2   : > { %4806 = vmatpush1.msk.msra.mxu1 %vm736_vm0, %v1465_v39  ;;  %v1593_v39 = vld [vmem:[#allocation2 + $0xb30] sm:$0xff] }
 0x3a3   : > { %4807 = vmatmul.mubr.msk.f32.vlgmr.msra.gmra.mxu1 %vm732_vm1, %v4804_v41  ;;  %1619 = vmatprep.subr.mxu1 %v1586_v42  ;;  %v1591_v41 = vld [vmem:[#allocation2 + $0xb20] sm:$0xff]  ;;  %v1590_v42 = vld [vmem:[#allocation2 + $0xb18] sm:$0xff] }
 0x3a4   : > { %1620 = vmatpush1.msra.mxu1 %v1585_v56  ;;  %1683 = vmatprep.mubr.f32.mxu1 %v5734_v63  ;;  %v1589_v56 = vld [vmem:[#allocation2 + $0xb10] sm:$0xff] }
 0x3a5   : > { %1621 = vmatprep.subr.mxu1 %v1584_v43  ;;  %v1588_v43 = vld [vmem:[#allocation2 + $0xb08] sm:$0xff] }
 0x3a6   : > { %1622 = vmatpush1.msra.mxu1 %v1583_v24  ;;  %v1587_v24 = vld [vmem:[#allocation2 + $0xb00] sm:$0xff] }
 0x3a7   : > { %1623 = vmatprep.subr.mxu1 %v1582_v26  ;;  %v5794_v26 = vld [vmem:[%s5727_s13] sm:$0xff] }
 0x3a8   : > { %1624 = vmatpush1.msra.mxu1 %v1581_v44 }
 0x3a9   : > { %1625 = vmatprep.subr.mxu1 %v1580_v45 }
 0x3aa   : > { %1626 = vmatpush1.msra.mxu1 %v1579_v46 }
 0x3ab   : > { %1627 = vmatprep.subr.mxu1 %v1578_v47 }
 0x3ac   : > { %1628 = vmatpush1.msra.mxu1 %v1577_v48 }
 0x3ad   : > { %1629 = vmatprep.subr.mxu1 %v1576_v49 }
 0x3ae   : > { %1630 = vmatpush1.msra.mxu1 %v1575_v50  ;;  %v4808_v50 = vld [vmem:[%s6052_s2 + $0x28] sm:$0xff] }
 0x3af   : > { %1631 = vmatprep.subr.mxu1 %v1574_v51  ;;  %v1806_v51 = vld [vmem:[#allocation2 + $0xcf8] sm:$0xff] }
 0x3b0   : > { %1632 = vmatpush1.msra.mxu1 %v1573_v52  ;;  %v1805_v52 = vld [vmem:[#allocation2 + $0xcf0] sm:$0xff] }
 0x3b1   : > { %1633 = vmatprep.subr.mxu1 %v1572_v53  ;;  %v1804_v53 = vld [vmem:[#allocation2 + $0xce8] sm:$0xff] }
 0x3b2   : > { %1634 = vmatpush1.msra.mxu1 %v1571_v54  ;;  %v1801_v54 = vld [vmem:[#allocation2 + $0xcd0] sm:$0xff] }
 0x3b3   : > { %1635 = vmatprep.subr.mxu1 %v1570_v55  ;;  %v1800_v55 = vld [vmem:[#allocation2 + $0xcc8] sm:$0xff] }
 0x3b4   : > { %1636 = vmatpush1.msra.mxu1 %v1569_v57  ;;  %v1799_v57 = vld [vmem:[#allocation2 + $0xcc0] sm:$0xff] }
 0x3b5   : > { %1637 = vmatprep.subr.mxu1 %v1568_v58  ;;  %v1798_v58 = vld [vmem:[#allocation2 + $0xcb8] sm:$0xff] }
 0x3b6   : > { %1638 = vmatpush1.msra.mxu1 %v1567_v59  ;;  %v1797_v59 = vld [vmem:[#allocation2 + $0xcb0] sm:$0xff] }
 0x3b7   : > { %1639 = vmatprep.subr.mxu1 %v1566_v60  ;;  %v1796_v60 = vld [vmem:[#allocation2 + $0xca8] sm:$0xff] }
 0x3b8   : > { %1640 = vmatpush1.msra.mxu1 %v1565_v61  ;;  %v1795_v61 = vld [vmem:[#allocation2 + $0xca0] sm:$0xff] }
 0x3b9   : > { %1641 = vmatprep.subr.mxu1 %v1564_v62  ;;  %v1794_v62 = vld [vmem:[#allocation2 + $0xc98] sm:$0xff] }
 0x3ba   : > { %1642 = vmatpush1.msra.mxu1 %v1563_v0  ;;  %v1793_v0 = vld [vmem:[#allocation2 + $0xc90] sm:$0xff] }
 0x3bb   : > { %1643 = vmatprep.subr.mxu1 %v1562_v1  ;;  %v1792_v1 = vld [vmem:[#allocation2 + $0xc88] sm:$0xff] }
 0x3bc   : > { %1644 = vmatpush1.msra.mxu1 %v1561_v2  ;;  %v1791_v2 = vld [vmem:[#allocation2 + $0xc80] sm:$0xff] }
 0x3bd   : > { %1645 = vmatprep.subr.mxu1 %v1560_v3  ;;  %v1790_v3 = vld [vmem:[#allocation2 + $0xc78] sm:$0xff] }
 0x3be   : > { %1646 = vmatpush1.msra.mxu1 %v1559_v5  ;;  %v1789_v5 = vld [vmem:[#allocation2 + $0xc70] sm:$0xff] }
 0x3bf   : > { %1647 = vmatprep.subr.mxu1 %v1558_v6  ;;  %v1788_v6 = vld [vmem:[#allocation2 + $0xc68] sm:$0xff] }
 0x3c0   : > { %1648 = vmatpush1.msra.mxu1 %v1557_v7  ;;  %v1787_v7 = vld [vmem:[#allocation2 + $0xc60] sm:$0xff] }
 0x3c1   : > { %1649 = vmatprep.subr.mxu1 %v1556_v8  ;;  %v1786_v8 = vld [vmem:[#allocation2 + $0xc58] sm:$0xff] }
 0x3c2   : > { %1650 = vmatpush1.msra.mxu1 %v1555_v9  ;;  %v1785_v9 = vld [vmem:[#allocation2 + $0xc50] sm:$0xff] }
 0x3c3   : > { %1651 = vmatprep.subr.mxu1 %v1618_v10  ;;  %v1784_v10 = vld [vmem:[#allocation2 + $0xc48] sm:$0xff] }
 0x3c4   : > { %1652 = vmatpush2.msra.mxu1 %v1617_v11  ;;  %v1783_v11 = vld [vmem:[#allocation2 + $0xc40] sm:$0xff] }
 0x3c5   : > { %1653 = vmatprep.subr.mxu1 %v1616_v12  ;;  %v1782_v12 = vld [vmem:[#allocation2 + $0xc38] sm:$0xff] }
 0x3c6   : > { %1654 = vmatpush2.msra.mxu1 %v1615_v13  ;;  %v1781_v13 = vld [vmem:[#allocation2 + $0xc30] sm:$0xff] }
 0x3c7   : > { %1655 = vmatprep.subr.mxu1 %v1614_v14  ;;  %v1780_v14 = vld [vmem:[#allocation2 + $0xc28] sm:$0xff] }
 0x3c8   : > { %1656 = vmatpush2.msra.mxu1 %v1613_v15  ;;  %v1779_v15 = vld [vmem:[#allocation2 + $0xc20] sm:$0xff] }
 0x3c9   : > { %1657 = vmatprep.subr.mxu1 %v1612_v16  ;;  %v1778_v16 = vld [vmem:[#allocation2 + $0xc18] sm:$0xff] }
 0x3ca   : > { %1658 = vmatpush2.msra.mxu1 %v1611_v17  ;;  %v1777_v17 = vld [vmem:[#allocation2 + $0xc10] sm:$0xff] }
 0x3cb   : > { %1659 = vmatprep.subr.mxu1 %v1610_v18  ;;  %v1776_v18 = vld [vmem:[#allocation2 + $0xc08] sm:$0xff] }
 0x3cc   : > { %1660 = vmatpush2.msra.mxu1 %v1609_v19  ;;  %v1775_v19 = vld [vmem:[#allocation2 + $0xc00] sm:$0xff] }
 0x3cd   : > { %1661 = vmatprep.subr.mxu1 %v1608_v20  ;;  %v1838_v20 = vld [vmem:[#allocation2 + $0xdf8] sm:$0xff] }
 0x3ce   : > { %1662 = vmatpush2.msra.mxu1 %v1607_v21  ;;  %v1837_v21 = vld [vmem:[#allocation2 + $0xdf0] sm:$0xff] }
 0x3cf   : > { %1663 = vmatprep.subr.mxu1 %v1606_v22  ;;  %v1836_v22 = vld [vmem:[#allocation2 + $0xde8] sm:$0xff] }
 0x3d0   : > { %1664 = vmatpush2.msra.mxu1 %v1605_v23  ;;  %v1835_v23 = vld [vmem:[#allocation2 + $0xde0] sm:$0xff] }
 0x3d1   : > { %1665 = vmatprep.subr.mxu1 %v1604_v25  ;;  %v1834_v25 = vld [vmem:[#allocation2 + $0xdd8] sm:$0xff] }
 0x3d2   : > { %1666 = vmatpush2.msra.mxu1 %v1603_v27  ;;  %v1833_v27 = vld [vmem:[#allocation2 + $0xdd0] sm:$0xff] }
 0x3d3   : > { %1667 = vmatprep.subr.mxu1 %v1602_v28  ;;  %v1832_v28 = vld [vmem:[#allocation2 + $0xdc8] sm:$0xff] }
 0x3d4   : > { %1668 = vmatpush2.msra.mxu1 %v1601_v29  ;;  %v1831_v29 = vld [vmem:[#allocation2 + $0xdc0] sm:$0xff] }
 0x3d5   : > { %1669 = vmatprep.subr.mxu1 %v1600_v30  ;;  %v1830_v30 = vld [vmem:[#allocation2 + $0xdb8] sm:$0xff] }
 0x3d6   : > { %1670 = vmatpush2.msra.mxu1 %v1599_v31  ;;  %v1829_v31 = vld [vmem:[#allocation2 + $0xdb0] sm:$0xff] }
 0x3d7   : > { %1671 = vmatprep.subr.mxu1 %v1598_v32  ;;  %v1828_v32 = vld [vmem:[#allocation2 + $0xda8] sm:$0xff] }
 0x3d8   : > { %1672 = vmatpush2.msra.mxu1 %v1597_v33  ;;  %v1827_v33 = vld [vmem:[#allocation2 + $0xda0] sm:$0xff] }
 0x3d9   : > { %1673 = vmatprep.subr.mxu1 %v1596_v34  ;;  %v1826_v34 = vld [vmem:[#allocation2 + $0xd98] sm:$0xff] }
 0x3da   : > { %1674 = vmatpush2.msra.mxu1 %v1595_v35  ;;  %v1825_v35 = vld [vmem:[#allocation2 + $0xd90] sm:$0xff] }
 0x3db   : > { %1675 = vmatprep.subr.mxu1 %v1594_v37  ;;  %v1824_v37 = vld [vmem:[#allocation2 + $0xd88] sm:$0xff] }
 0x3dc   : > { %1676 = vmatpush2.msra.mxu1 %v1593_v39  ;;  %v1823_v39 = vld [vmem:[#allocation2 + $0xd80] sm:$0xff] }
 0x3dd   : > { %1677 = vmatprep.subr.mxu1 %v1592_v40  ;;  %v1822_v40 = vld [vmem:[#allocation2 + $0xd78] sm:$0xff] }
 0x3de   : > { %1678 = vmatpush2.msra.mxu1 %v1591_v41  ;;  %v1821_v41 = vld [vmem:[#allocation2 + $0xd70] sm:$0xff] }
 0x3df   : > { %1679 = vmatprep.subr.mxu1 %v1590_v42  ;;  %v1820_v42 = vld [vmem:[#allocation2 + $0xd68] sm:$0xff] }
 0x3e0   : > { %1680 = vmatpush2.msra.mxu1 %v1589_v56  ;;  %v1819_v56 = vld [vmem:[#allocation2 + $0xd60] sm:$0xff] }
 0x3e1   : > { %1681 = vmatprep.subr.mxu1 %v1588_v43  ;;  %v1818_v43 = vld [vmem:[#allocation2 + $0xd58] sm:$0xff] }
 0x3e2   : > { %1682 = vmatpush2.msra.mxu1 %v1587_v24  ;;  %v1817_v24 = vld [vmem:[#allocation2 + $0xd50] sm:$0xff] }
 0x3e3   : > { %1684 = vmatmul.mubr.f32.vlgmr.msra.gmra.mxu1 %v5794_v26 }
 0x3e4   : > { %1985 = vmatprep.mubr.f32.mxu1 %v5554_v4 }
 0x463   : > { %v1547_v44 = vpop.f32.mrf.mxu1 }
 0x464   : > { %v5799_v45 = vadd.f32 %v1547_v44, %v5781_v36  ;;  %v1803_v36 = vld [vmem:[#allocation2 + $0xce0] sm:$0xff]  ;;  %v1816_v44 = vld [vmem:[#allocation2 + $0xd48] sm:$0xff] }
 0x465   : > { %v1549_v46 = vpop.f32.mrf.mxu1 }
 0x466   : > { %v5802_v47 = vadd.f32 %v1549_v46, %v5784_v38  ;;  %v1802_v38 = vld [vmem:[#allocation2 + $0xcd8] sm:$0xff]  ;;  %v1815_v46 = vld [vmem:[#allocation2 + $0xd40] sm:$0xff] }
 0x4a3   : > { %v1685_v48 = vpop.f32.mrf.mxu1 }
 0x4a5   : > { %v1687_v49 = vpop.f32.mrf.mxu1 }
 0x4a6   : > { %4809 = vmatprep.subr.msk.mxu0 %vm736_vm0, %v1687_v49  ;;  %v1813_v49 = vld [vmem:[#allocation2 + $0xd30] sm:$0xff] }
 0x4a7   : > { %4810 = vmatpush1.msk.msra.mxu0 %vm736_vm0, %v1685_v48  ;;  %v1814_v48 = vld [vmem:[#allocation2 + $0xd38] sm:$0xff] }
 0x4a8   : > { %4811 = vmatmul.mubr.msk.f32.vlgmr.msra.gmra.mxu0 %vm732_vm1, %v4808_v50  ;;  %1839 = vmatprep.subr.mxu0 %v1806_v51  ;;  %v1812_v50 = vld [vmem:[#allocation2 + $0xd28] sm:$0xff]  ;;  %v1811_v51 = vld [vmem:[#allocation2 + $0xd20] sm:$0xff] }
 0x4a9   : > { %1840 = vmatpush1.msra.mxu0 %v1805_v52  ;;  %1903 = vmatprep.mubr.f32.mxu0 %v5734_v63  ;;  %v1810_v52 = vld [vmem:[#allocation2 + $0xd18] sm:$0xff] }
 0x4aa   : > { %1841 = vmatprep.subr.mxu0 %v1804_v53  ;;  %v1809_v53 = vld [vmem:[#allocation2 + $0xd10] sm:$0xff] }
 0x4ab   : > { %1842 = vmatpush1.msra.mxu0 %v1803_v36  ;;  %v1808_v36 = vld [vmem:[#allocation2 + $0xd08] sm:$0xff] }
 0x4ac   : > { %1843 = vmatprep.subr.mxu0 %v1802_v38  ;;  %v1807_v38 = vld [vmem:[#allocation2 + $0xd00] sm:$0xff] }
 0x4ad   : > { %1844 = vmatpush1.msra.mxu0 %v1801_v54 }
 0x4ae   : > { %1845 = vmatprep.subr.mxu0 %v1800_v55 }
 0x4af   : > { %1846 = vmatpush1.msra.mxu0 %v1799_v57 }
 0x4b0   : > { %1847 = vmatprep.subr.mxu0 %v1798_v58 }
 0x4b1   : > { %1848 = vmatpush1.msra.mxu0 %v1797_v59 }
 0x4b2   : > { %1849 = vmatprep.subr.mxu0 %v1796_v60 }
 0x4b3   : > { %1850 = vmatpush1.msra.mxu0 %v1795_v61  ;;  %v4812_v61 = vld [vmem:[%s6052_s2 + $0x30] sm:$0xff] }
 0x4b4   : > { %1851 = vmatprep.subr.mxu0 %v1794_v62  ;;  %v2026_v62 = vld [vmem:[#allocation2 + $0xef8] sm:$0xff] }
 0x4b5   : > { %1852 = vmatpush1.msra.mxu0 %v1793_v0  ;;  %v2025_v0 = vld [vmem:[#allocation2 + $0xef0] sm:$0xff] }
 0x4b6   : > { %1853 = vmatprep.subr.mxu0 %v1792_v1  ;;  %v2024_v1 = vld [vmem:[#allocation2 + $0xee8] sm:$0xff] }
 0x4b7   : > { %1854 = vmatpush1.msra.mxu0 %v1791_v2  ;;  %v2021_v2 = vld [vmem:[#allocation2 + $0xed0] sm:$0xff] }
 0x4b8   : > { %1855 = vmatprep.subr.mxu0 %v1790_v3  ;;  %v2020_v3 = vld [vmem:[#allocation2 + $0xec8] sm:$0xff] }
 0x4b9   : > { %1856 = vmatpush1.msra.mxu0 %v1789_v5  ;;  %v2019_v5 = vld [vmem:[#allocation2 + $0xec0] sm:$0xff] }
 0x4ba   : > { %1857 = vmatprep.subr.mxu0 %v1788_v6  ;;  %v2018_v6 = vld [vmem:[#allocation2 + $0xeb8] sm:$0xff] }
 0x4bb   : > { %1858 = vmatpush1.msra.mxu0 %v1787_v7  ;;  %v2017_v7 = vld [vmem:[#allocation2 + $0xeb0] sm:$0xff] }
 0x4bc   : > { %1859 = vmatprep.subr.mxu0 %v1786_v8  ;;  %v2016_v8 = vld [vmem:[#allocation2 + $0xea8] sm:$0xff] }
 0x4bd   : > { %1860 = vmatpush1.msra.mxu0 %v1785_v9  ;;  %v2015_v9 = vld [vmem:[#allocation2 + $0xea0] sm:$0xff] }
 0x4be   : > { %1861 = vmatprep.subr.mxu0 %v1784_v10  ;;  %v2014_v10 = vld [vmem:[#allocation2 + $0xe98] sm:$0xff] }
 0x4bf   : > { %1862 = vmatpush1.msra.mxu0 %v1783_v11  ;;  %v2013_v11 = vld [vmem:[#allocation2 + $0xe90] sm:$0xff] }
 0x4c0   : > { %1863 = vmatprep.subr.mxu0 %v1782_v12  ;;  %v2012_v12 = vld [vmem:[#allocation2 + $0xe88] sm:$0xff] }
 0x4c1   : > { %1864 = vmatpush1.msra.mxu0 %v1781_v13  ;;  %v2011_v13 = vld [vmem:[#allocation2 + $0xe80] sm:$0xff] }
 0x4c2   : > { %1865 = vmatprep.subr.mxu0 %v1780_v14  ;;  %v2010_v14 = vld [vmem:[#allocation2 + $0xe78] sm:$0xff] }
 0x4c3   : > { %1866 = vmatpush1.msra.mxu0 %v1779_v15  ;;  %v2009_v15 = vld [vmem:[#allocation2 + $0xe70] sm:$0xff] }
 0x4c4   : > { %1867 = vmatprep.subr.mxu0 %v1778_v16  ;;  %v2008_v16 = vld [vmem:[#allocation2 + $0xe68] sm:$0xff] }
 0x4c5   : > { %1868 = vmatpush1.msra.mxu0 %v1777_v17  ;;  %v2007_v17 = vld [vmem:[#allocation2 + $0xe60] sm:$0xff] }
 0x4c6   : > { %1869 = vmatprep.subr.mxu0 %v1776_v18  ;;  %v2006_v18 = vld [vmem:[#allocation2 + $0xe58] sm:$0xff] }
 0x4c7   : > { %1870 = vmatpush1.msra.mxu0 %v1775_v19  ;;  %v2005_v19 = vld [vmem:[#allocation2 + $0xe50] sm:$0xff] }
 0x4c8   : > { %1871 = vmatprep.subr.mxu0 %v1838_v20  ;;  %v2004_v20 = vld [vmem:[#allocation2 + $0xe48] sm:$0xff] }
 0x4c9   : > { %1872 = vmatpush2.msra.mxu0 %v1837_v21  ;;  %v2003_v21 = vld [vmem:[#allocation2 + $0xe40] sm:$0xff] }
 0x4ca   : > { %1873 = vmatprep.subr.mxu0 %v1836_v22  ;;  %v2002_v22 = vld [vmem:[#allocation2 + $0xe38] sm:$0xff] }
 0x4cb   : > { %1874 = vmatpush2.msra.mxu0 %v1835_v23  ;;  %v2001_v23 = vld [vmem:[#allocation2 + $0xe30] sm:$0xff] }
 0x4cc   : > { %1875 = vmatprep.subr.mxu0 %v1834_v25  ;;  %v2000_v25 = vld [vmem:[#allocation2 + $0xe28] sm:$0xff] }
 0x4cd   : > { %1876 = vmatpush2.msra.mxu0 %v1833_v27  ;;  %v1999_v27 = vld [vmem:[#allocation2 + $0xe20] sm:$0xff] }
 0x4ce   : > { %1877 = vmatprep.subr.mxu0 %v1832_v28  ;;  %v1998_v28 = vld [vmem:[#allocation2 + $0xe18] sm:$0xff] }
 0x4cf   : > { %1878 = vmatpush2.msra.mxu0 %v1831_v29  ;;  %v1997_v29 = vld [vmem:[#allocation2 + $0xe10] sm:$0xff] }
 0x4d0   : > { %1879 = vmatprep.subr.mxu0 %v1830_v30  ;;  %v1996_v30 = vld [vmem:[#allocation2 + $0xe08] sm:$0xff] }
 0x4d1   : > { %1880 = vmatpush2.msra.mxu0 %v1829_v31  ;;  %v1995_v31 = vld [vmem:[#allocation2 + $0xe00] sm:$0xff] }
 0x4d2   : > { %1881 = vmatprep.subr.mxu0 %v1828_v32  ;;  %v2058_v32 = vld [vmem:[#allocation2 + $0xff8] sm:$0xff] }
 0x4d3   : > { %1882 = vmatpush2.msra.mxu0 %v1827_v33  ;;  %v2057_v33 = vld [vmem:[#allocation2 + $0xff0] sm:$0xff] }
 0x4d4   : > { %1883 = vmatprep.subr.mxu0 %v1826_v34  ;;  %v2056_v34 = vld [vmem:[#allocation2 + $0xfe8] sm:$0xff] }
 0x4d5   : > { %1884 = vmatpush2.msra.mxu0 %v1825_v35  ;;  %v2055_v35 = vld [vmem:[#allocation2 + $0xfe0] sm:$0xff] }
 0x4d6   : > { %1885 = vmatprep.subr.mxu0 %v1824_v37  ;;  %v2054_v37 = vld [vmem:[#allocation2 + $0xfd8] sm:$0xff] }
 0x4d7   : > { %1886 = vmatpush2.msra.mxu0 %v1823_v39  ;;  %v2053_v39 = vld [vmem:[#allocation2 + $0xfd0] sm:$0xff] }
 0x4d8   : > { %1887 = vmatprep.subr.mxu0 %v1822_v40  ;;  %v2052_v40 = vld [vmem:[#allocation2 + $0xfc8] sm:$0xff] }
 0x4d9   : > { %1888 = vmatpush2.msra.mxu0 %v1821_v41  ;;  %v2051_v41 = vld [vmem:[#allocation2 + $0xfc0] sm:$0xff] }
 0x4da   : > { %1889 = vmatprep.subr.mxu0 %v1820_v42  ;;  %v2050_v42 = vld [vmem:[#allocation2 + $0xfb8] sm:$0xff] }
 0x4db   : > { %1890 = vmatpush2.msra.mxu0 %v1819_v56  ;;  %v2049_v56 = vld [vmem:[#allocation2 + $0xfb0] sm:$0xff] }
 0x4dc   : > { %1891 = vmatprep.subr.mxu0 %v1818_v43  ;;  %v2048_v43 = vld [vmem:[#allocation2 + $0xfa8] sm:$0xff] }
 0x4dd   : > { %1892 = vmatpush2.msra.mxu0 %v1817_v24  ;;  %v2047_v24 = vld [vmem:[#allocation2 + $0xfa0] sm:$0xff] }
 0x4de   : > { %1893 = vmatprep.subr.mxu0 %v1816_v44  ;;  %v2046_v44 = vld [vmem:[#allocation2 + $0xf98] sm:$0xff] }
 0x4df   : > { %1894 = vmatpush2.msra.mxu0 %v1815_v46  ;;  %v2045_v46 = vld [vmem:[#allocation2 + $0xf90] sm:$0xff] }
 0x4e0   : > { %1895 = vmatprep.subr.mxu0 %v1814_v48  ;;  %v2044_v48 = vld [vmem:[#allocation2 + $0xf88] sm:$0xff] }
 0x4e1   : > { %1896 = vmatpush2.msra.mxu0 %v1813_v49  ;;  %v2043_v49 = vld [vmem:[#allocation2 + $0xf80] sm:$0xff] }
 0x4e2   : > { %1897 = vmatprep.subr.mxu0 %v1812_v50  ;;  %v2042_v50 = vld [vmem:[#allocation2 + $0xf78] sm:$0xff] }
 0x4e3   : > { %1898 = vmatpush2.msra.mxu0 %v1811_v51  ;;  %v2041_v51 = vld [vmem:[#allocation2 + $0xf70] sm:$0xff] }
 0x4e4   : > { %1899 = vmatprep.subr.mxu0 %v1810_v52  ;;  %v2040_v52 = vld [vmem:[#allocation2 + $0xf68] sm:$0xff] }
 0x4e5   : > { %1900 = vmatpush2.msra.mxu0 %v1809_v53  ;;  %v2039_v53 = vld [vmem:[#allocation2 + $0xf60] sm:$0xff] }
 0x4e6   : > { %1901 = vmatprep.subr.mxu0 %v1808_v36  ;;  %v2038_v36 = vld [vmem:[#allocation2 + $0xf58] sm:$0xff] }
 0x4e7   : > { %1902 = vmatpush2.msra.mxu0 %v1807_v38  ;;  %v2037_v38 = vld [vmem:[#allocation2 + $0xf50] sm:$0xff] }
 0x4e8   : > { %1904 = vmatmul.mubr.f32.vlgmr.msra.gmra.mxu0 %v5794_v26 }
 0x4e9   : > { %2205 = vmatprep.mubr.f32.mxu0 %v5554_v4 }
 0x568   : > { %v1767_v54 = vpop.f32.mrf.mxu0 }
 0x569   : > { %v5814_v55 = vadd.f32 %v1767_v54, %v5799_v45  ;;  %v2023_v45 = vld [vmem:[#allocation2 + $0xee0] sm:$0xff]  ;;  %v2036_v54 = vld [vmem:[#allocation2 + $0xf48] sm:$0xff] }
 0x56a   : > { %v1769_v57 = vpop.f32.mrf.mxu0 }
 0x56b   : > { %v5817_v58 = vadd.f32 %v1769_v57, %v5802_v47  ;;  %v2022_v47 = vld [vmem:[#allocation2 + $0xed8] sm:$0xff]  ;;  %v2035_v57 = vld [vmem:[#allocation2 + $0xf40] sm:$0xff] }
 0x5a8   : > { %v1905_v59 = vpop.f32.mrf.mxu0 }
 0x5aa   : > { %v1907_v60 = vpop.f32.mrf.mxu0 }
 0x5ab   : > { %4813 = vmatprep.subr.msk.mxu1 %vm736_vm0, %v1907_v60  ;;  %v2033_v60 = vld [vmem:[#allocation2 + $0xf30] sm:$0xff] }
 0x5ac   : > { %4814 = vmatpush1.msk.msra.mxu1 %vm736_vm0, %v1905_v59  ;;  %v2034_v59 = vld [vmem:[#allocation2 + $0xf38] sm:$0xff] }
 0x5ad   : > { %4815 = vmatmul.mubr.msk.f32.vlgmr.msra.gmra.mxu1 %vm732_vm1, %v4812_v61  ;;  %2059 = vmatprep.subr.mxu1 %v2026_v62  ;;  %v2032_v61 = vld [vmem:[#allocation2 + $0xf28] sm:$0xff]  ;;  %v2031_v62 = vld [vmem:[#allocation2 + $0xf20] sm:$0xff] }
 0x5ae   : > { %2060 = vmatpush1.msra.mxu1 %v2025_v0  ;;  %2123 = vmatprep.mubr.f32.mxu1 %v5734_v63  ;;  %v2030_v0 = vld [vmem:[#allocation2 + $0xf18] sm:$0xff] }
 0x5af   : > { %2061 = vmatprep.subr.mxu1 %v2024_v1  ;;  %v2029_v1 = vld [vmem:[#allocation2 + $0xf10] sm:$0xff] }
 0x5b0   : > { %2062 = vmatpush1.msra.mxu1 %v2023_v45  ;;  %v2028_v45 = vld [vmem:[#allocation2 + $0xf08] sm:$0xff] }
 0x5b1   : > { %2063 = vmatprep.subr.mxu1 %v2022_v47  ;;  %v2027_v47 = vld [vmem:[#allocation2 + $0xf00] sm:$0xff] }
 0x5b2   : > { %2064 = vmatpush1.msra.mxu1 %v2021_v2 }
 0x5b3   : > { %2065 = vmatprep.subr.mxu1 %v2020_v3 }
 0x5b4   : > { %2066 = vmatpush1.msra.mxu1 %v2019_v5 }
 0x5b5   : > { %2067 = vmatprep.subr.mxu1 %v2018_v6 }
 0x5b6   : > { %2068 = vmatpush1.msra.mxu1 %v2017_v7 }
 0x5b7   : > { %2069 = vmatprep.subr.mxu1 %v2016_v8 }
 0x5b8   : > { %2070 = vmatpush1.msra.mxu1 %v2015_v9  ;;  %v4816_v9 = vld [vmem:[%s6052_s2 + $0x38] sm:$0xff] }
 0x5b9   : > { %2071 = vmatprep.subr.mxu1 %v2014_v10  ;;  %v2246_v10 = vld [vmem:[#allocation2 + $0x10f8] sm:$0xff] }
 0x5ba   : > { %2072 = vmatpush1.msra.mxu1 %v2013_v11  ;;  %v2245_v11 = vld [vmem:[#allocation2 + $0x10f0] sm:$0xff] }
 0x5bb   : > { %2073 = vmatprep.subr.mxu1 %v2012_v12  ;;  %v2244_v12 = vld [vmem:[#allocation2 + $0x10e8] sm:$0xff] }
 0x5bc   : > { %2074 = vmatpush1.msra.mxu1 %v2011_v13  ;;  %v2241_v13 = vld [vmem:[#allocation2 + $0x10d0] sm:$0xff] }
 0x5bd   : > { %2075 = vmatprep.subr.mxu1 %v2010_v14  ;;  %v2240_v14 = vld [vmem:[#allocation2 + $0x10c8] sm:$0xff] }
 0x5be   : > { %2076 = vmatpush1.msra.mxu1 %v2009_v15  ;;  %v2239_v15 = vld [vmem:[#allocation2 + $0x10c0] sm:$0xff] }
 0x5bf   : > { %2077 = vmatprep.subr.mxu1 %v2008_v16  ;;  %v2238_v16 = vld [vmem:[#allocation2 + $0x10b8] sm:$0xff] }
 0x5c0   : > { %2078 = vmatpush1.msra.mxu1 %v2007_v17  ;;  %v2237_v17 = vld [vmem:[#allocation2 + $0x10b0] sm:$0xff] }
 0x5c1   : > { %2079 = vmatprep.subr.mxu1 %v2006_v18  ;;  %v2236_v18 = vld [vmem:[#allocation2 + $0x10a8] sm:$0xff] }
 0x5c2   : > { %2080 = vmatpush1.msra.mxu1 %v2005_v19  ;;  %v2235_v19 = vld [vmem:[#allocation2 + $0x10a0] sm:$0xff] }
 0x5c3   : > { %2081 = vmatprep.subr.mxu1 %v2004_v20  ;;  %v2234_v20 = vld [vmem:[#allocation2 + $0x1098] sm:$0xff] }
 0x5c4   : > { %2082 = vmatpush1.msra.mxu1 %v2003_v21  ;;  %v2233_v21 = vld [vmem:[#allocation2 + $0x1090] sm:$0xff] }
 0x5c5   : > { %2083 = vmatprep.subr.mxu1 %v2002_v22  ;;  %v2231_v22 = vld [vmem:[#allocation2 + $0x1080] sm:$0xff] }
 0x5c6   : > { %2084 = vmatpush1.msra.mxu1 %v2001_v23  ;;  %v2230_v23 = vld [vmem:[#allocation2 + $0x1078] sm:$0xff] }
 0x5c7   : > { %2085 = vmatprep.subr.mxu1 %v2000_v25  ;;  %v2229_v25 = vld [vmem:[#allocation2 + $0x1070] sm:$0xff] }
 0x5c8   : > { %2086 = vmatpush1.msra.mxu1 %v1999_v27  ;;  %v2228_v27 = vld [vmem:[#allocation2 + $0x1068] sm:$0xff] }
 0x5c9   : > { %2087 = vmatprep.subr.mxu1 %v1998_v28  ;;  %v2227_v28 = vld [vmem:[#allocation2 + $0x1060] sm:$0xff] }
 0x5ca   : > { %2088 = vmatpush1.msra.mxu1 %v1997_v29  ;;  %v2226_v29 = vld [vmem:[#allocation2 + $0x1058] sm:$0xff] }
 0x5cb   : > { %2089 = vmatprep.subr.mxu1 %v1996_v30  ;;  %v2225_v30 = vld [vmem:[#allocation2 + $0x1050] sm:$0xff] }
 0x5cc   : > { %2090 = vmatpush1.msra.mxu1 %v1995_v31  ;;  %v2224_v31 = vld [vmem:[#allocation2 + $0x1048] sm:$0xff] }
 0x5cd   : > { %2091 = vmatprep.subr.mxu1 %v2058_v32  ;;  %v2223_v32 = vld [vmem:[#allocation2 + $0x1040] sm:$0xff] }
 0x5ce   : > { %2092 = vmatpush2.msra.mxu1 %v2057_v33  ;;  %v2222_v33 = vld [vmem:[#allocation2 + $0x1038] sm:$0xff] }
 0x5cf   : > { %2093 = vmatprep.subr.mxu1 %v2056_v34  ;;  %v2221_v34 = vld [vmem:[#allocation2 + $0x1030] sm:$0xff] }
 0x5d0   : > { %2094 = vmatpush2.msra.mxu1 %v2055_v35  ;;  %v2220_v35 = vld [vmem:[#allocation2 + $0x1028] sm:$0xff] }
 0x5d1   : > { %2095 = vmatprep.subr.mxu1 %v2054_v37  ;;  %v2219_v37 = vld [vmem:[#allocation2 + $0x1020] sm:$0xff] }
 0x5d2   : > { %2096 = vmatpush2.msra.mxu1 %v2053_v39  ;;  %v2218_v39 = vld [vmem:[#allocation2 + $0x1018] sm:$0xff] }
 0x5d3   : > { %2097 = vmatprep.subr.mxu1 %v2052_v40  ;;  %v2217_v40 = vld [vmem:[#allocation2 + $0x1010] sm:$0xff] }
 0x5d4   : > { %2098 = vmatpush2.msra.mxu1 %v2051_v41  ;;  %v2216_v41 = vld [vmem:[#allocation2 + $0x1008] sm:$0xff] }
 0x5d5   : > { %2099 = vmatprep.subr.mxu1 %v2050_v42  ;;  %v2215_v42 = vld [vmem:[#allocation2 + $0x1000] sm:$0xff] }
 0x5d6   : > { %2100 = vmatpush2.msra.mxu1 %v2049_v56  ;;  %v2278_v56 = vld [vmem:[#allocation2 + $0x11f8] sm:$0xff] }
 0x5d7   : > { %2101 = vmatprep.subr.mxu1 %v2048_v43  ;;  %v2277_v43 = vld [vmem:[#allocation2 + $0x11f0] sm:$0xff] }
 0x5d8   : > { %2102 = vmatpush2.msra.mxu1 %v2047_v24  ;;  %v2276_v24 = vld [vmem:[#allocation2 + $0x11e8] sm:$0xff] }
 0x5d9   : > { %2103 = vmatprep.subr.mxu1 %v2046_v44  ;;  %v2275_v44 = vld [vmem:[#allocation2 + $0x11e0] sm:$0xff] }
 0x5da   : > { %2104 = vmatpush2.msra.mxu1 %v2045_v46  ;;  %v2274_v46 = vld [vmem:[#allocation2 + $0x11d8] sm:$0xff] }
 0x5db   : > { %2105 = vmatprep.subr.mxu1 %v2044_v48  ;;  %v2273_v48 = vld [vmem:[#allocation2 + $0x11d0] sm:$0xff] }
 0x5dc   : > { %2106 = vmatpush2.msra.mxu1 %v2043_v49  ;;  %v2272_v49 = vld [vmem:[#allocation2 + $0x11c8] sm:$0xff] }
 0x5dd   : > { %2107 = vmatprep.subr.mxu1 %v2042_v50  ;;  %v2271_v50 = vld [vmem:[#allocation2 + $0x11c0] sm:$0xff] }
 0x5de   : > { %2108 = vmatpush2.msra.mxu1 %v2041_v51  ;;  %v2270_v51 = vld [vmem:[#allocation2 + $0x11b8] sm:$0xff] }
 0x5df   : > { %2109 = vmatprep.subr.mxu1 %v2040_v52  ;;  %v2269_v52 = vld [vmem:[#allocation2 + $0x11b0] sm:$0xff] }
 0x5e0   : > { %2110 = vmatpush2.msra.mxu1 %v2039_v53  ;;  %v2268_v53 = vld [vmem:[#allocation2 + $0x11a8] sm:$0xff] }
 0x5e1   : > { %2111 = vmatprep.subr.mxu1 %v2038_v36  ;;  %v2267_v36 = vld [vmem:[#allocation2 + $0x11a0] sm:$0xff] }
 0x5e2   : > { %2112 = vmatpush2.msra.mxu1 %v2037_v38  ;;  %v2266_v38 = vld [vmem:[#allocation2 + $0x1198] sm:$0xff] }
 0x5e3   : > { %2113 = vmatprep.subr.mxu1 %v2036_v54  ;;  %v2265_v54 = vld [vmem:[#allocation2 + $0x1190] sm:$0xff] }
 0x5e4   : > { %2114 = vmatpush2.msra.mxu1 %v2035_v57  ;;  %v2264_v57 = vld [vmem:[#allocation2 + $0x1188] sm:$0xff] }
 0x5e5   : > { %2115 = vmatprep.subr.mxu1 %v2034_v59  ;;  %v2263_v59 = vld [vmem:[#allocation2 + $0x1180] sm:$0xff] }
 0x5e6   : > { %2116 = vmatpush2.msra.mxu1 %v2033_v60  ;;  %v2262_v60 = vld [vmem:[#allocation2 + $0x1178] sm:$0xff] }
 0x5e7   : > { %2117 = vmatprep.subr.mxu1 %v2032_v61  ;;  %v2261_v61 = vld [vmem:[#allocation2 + $0x1170] sm:$0xff] }
 0x5e8   : > { %2118 = vmatpush2.msra.mxu1 %v2031_v62  ;;  %v2260_v62 = vld [vmem:[#allocation2 + $0x1168] sm:$0xff] }
 0x5e9   : > { %2119 = vmatprep.subr.mxu1 %v2030_v0  ;;  %v2259_v0 = vld [vmem:[#allocation2 + $0x1160] sm:$0xff] }
 0x5ea   : > { %2120 = vmatpush2.msra.mxu1 %v2029_v1  ;;  %v2258_v1 = vld [vmem:[#allocation2 + $0x1158] sm:$0xff] }
 0x5eb   : > { %2121 = vmatprep.subr.mxu1 %v2028_v45  ;;  %v2257_v45 = vld [vmem:[#allocation2 + $0x1150] sm:$0xff] }
 0x5ec   : > { %2122 = vmatpush2.msra.mxu1 %v2027_v47  ;;  %v2256_v47 = vld [vmem:[#allocation2 + $0x1148] sm:$0xff] }
 0x5ed   : > { %2124 = vmatmul.mubr.f32.vlgmr.msra.gmra.mxu1 %v5794_v26 }
 0x5ee   : > { %2425 = vmatprep.mubr.f32.mxu1 %v5554_v4 }
 0x66d   : > { %v1987_v2 = vpop.f32.mrf.mxu1 }
 0x66e   : > { %v5829_v3 = vadd.f32 %v1987_v2, %v5814_v55  ;;  %v2243_v55 = vld [vmem:[#allocation2 + $0x10e0] sm:$0xff] }
 0x66f   : > { %v1989_v5 = vpop.f32.mrf.mxu1  ;;  %v2255_v2 = vld [vmem:[#allocation2 + $0x1140] sm:$0xff] }
 0x670   : > { %v5832_v6 = vadd.f32 %v1989_v5, %v5817_v58  ;;  %v2242_v58 = vld [vmem:[#allocation2 + $0x10d8] sm:$0xff] }
 0x671   : > { %v2254_v5 = vld [vmem:[#allocation2 + $0x1138] sm:$0xff] }
 0x6ad   : > { %v2125_v7 = vpop.f32.mrf.mxu1 }
 0x6af   : > { %v2127_v8 = vpop.f32.mrf.mxu1 }
 0x6b0   : > { %4817 = vmatprep.subr.msk.mxu0 %vm736_vm0, %v2127_v8  ;;  %v2252_v8 = vld [vmem:[#allocation2 + $0x1128] sm:$0xff] }
 0x6b1   : > { %4818 = vmatpush1.msk.msra.mxu0 %vm736_vm0, %v2125_v7  ;;  %v2253_v7 = vld [vmem:[#allocation2 + $0x1130] sm:$0xff] }
 0x6b2   : > { %4819 = vmatmul.mubr.msk.f32.vlgmr.msra.gmra.mxu0 %vm732_vm1, %v4816_v9  ;;  %2279 = vmatprep.subr.mxu0 %v2246_v10  ;;  %v2251_v9 = vld [vmem:[#allocation2 + $0x1120] sm:$0xff]  ;;  %v2250_v10 = vld [vmem:[#allocation2 + $0x1118] sm:$0xff] }
 0x6b3   : > { %2280 = vmatpush1.msra.mxu0 %v2245_v11  ;;  %2343 = vmatprep.mubr.f32.mxu0 %v5734_v63  ;;  %v2232_v63 = vld [vmem:[#allocation2 + $0x1088] sm:$0xff]  ;;  %v2249_v11 = vld [vmem:[#allocation2 + $0x1110] sm:$0xff] }
 0x6b4   : > { %2281 = vmatprep.subr.mxu0 %v2244_v12  ;;  %v2248_v12 = vld [vmem:[#allocation2 + $0x1108] sm:$0xff] }
 0x6b5   : > { %2282 = vmatpush1.msra.mxu0 %v2243_v55  ;;  %v2247_v55 = vld [vmem:[#allocation2 + $0x1100] sm:$0xff] }
 0x6b6   : > { %2283 = vmatprep.subr.mxu0 %v2242_v58  ;;  %v2434_v58 = vld [vmem:[%s6053_s3] sm:$0xff] }
 0x6b7   : > { %2284 = vmatpush1.msra.mxu0 %v2241_v13  ;;  %v5555_v13 = vmov 0  }
 0x6b8   : > { %2285 = vmatprep.subr.mxu0 %v2240_v14  ;;  %5377 = vset.pattern.permute.xlu0 %v5555_v13 }
 0x6b9   : > { %2286 = vmatpush1.msra.mxu0 %v2239_v15  ;;  %5378 = vset.pattern.permute.xlu1 %v5555_v13 }
 0x6ba   : > { %2287 = vmatprep.subr.mxu0 %v2238_v16  ;;  %2437 = vperm.xlu0 %5377, %v2434_v58   ;;  %v2641_v58 = vld [vmem:[#allocation6 + $0x18] sm:$0xff] }
 0x6bb   : > { %2288 = vmatpush1.msra.mxu0 %v2237_v17 }
 0x6bc   : > { %2289 = vmatprep.subr.mxu0 %v2236_v18 }
 0x6bd   : > { %2290 = vmatpush1.msra.mxu0 %v2235_v19 }
 0x6be   : > { %2291 = vmatprep.subr.mxu0 %v2234_v20 }
 0x6bf   : > { %2292 = vmatpush1.msra.mxu0 %v2233_v21 }
 0x6c0   : > { %2293 = vmatprep.subr.mxu0 %v2232_v63 }
 0x6c1   : > { %2294 = vmatpush1.msra.mxu0 %v2231_v22 }
 0x6c2   : > { %2295 = vmatprep.subr.mxu0 %v2230_v23 }
 0x6c3   : > { %2296 = vmatpush1.msra.mxu0 %v2229_v25 }
 0x6c4   : > { %2297 = vmatprep.subr.mxu0 %v2228_v27 }
 0x6c5   : > { %2298 = vmatpush1.msra.mxu0 %v2227_v28 }
 0x6c6   : > { %2299 = vmatprep.subr.mxu0 %v2226_v29 }
 0x6c7   : > { %2300 = vmatpush1.msra.mxu0 %v2225_v30 }
 0x6c8   : > { %2301 = vmatprep.subr.mxu0 %v2224_v31 }
 0x6c9   : > { %2302 = vmatpush1.msra.mxu0 %v2223_v32 }
 0x6ca   : > { %2303 = vmatprep.subr.mxu0 %v2222_v33 }
 0x6cb   : > { %2304 = vmatpush1.msra.mxu0 %v2221_v34 }
 0x6cc   : > { %2305 = vmatprep.subr.mxu0 %v2220_v35  ;;  %v2455_v35 = vld [vmem:[#allocation4] sm:$0xff] }
 0x6cd   : > { %2306 = vmatpush1.msra.mxu0 %v2219_v37 }
 0x6ce   : > { %2307 = vmatprep.subr.mxu0 %v2218_v39 }
 0x6cf   : > { %2308 = vmatpush1.msra.mxu0 %v2217_v40 }
 0x6d0   : > { %2309 = vmatprep.subr.mxu0 %v2216_v41 }
 0x6d1   : > { %2310 = vmatpush1.msra.mxu0 %v2215_v42 }
 0x6d2   : > { %2311 = vmatprep.subr.mxu0 %v2278_v56 }
 0x6d3   : > { %2312 = vmatpush2.msra.mxu0 %v2277_v43 }
 0x6d4   : > { %2313 = vmatprep.subr.mxu0 %v2276_v24 }
 0x6d5   : > { %2314 = vmatpush2.msra.mxu0 %v2275_v44 }
 0x6d6   : > { %2315 = vmatprep.subr.mxu0 %v2274_v46  ;;  %v4828_v46 = vld [vmem:[%s6053_s3 + $0x8] sm:$0xff] }
 0x6d7   : > { %2316 = vmatpush2.msra.mxu0 %v2273_v48  ;;  %v4334_v48 = vld [vmem:[%s6057_s7 + $0x8] sm:$0xff] }
 0x6d8   : > { %2317 = vmatprep.subr.mxu0 %v2272_v49 }
 0x6d9   : > { %2318 = vmatpush2.msra.mxu0 %v2271_v50  ;;  %v2669_v50 = vld [vmem:[#allocation6 + $0xf8] sm:$0xff] }
 0x6da   : > { %2319 = vmatprep.subr.mxu0 %v2270_v51  ;;  %v2653_v51 = vld [vmem:[#allocation6 + $0x78] sm:$0xff] }
 0x6db   : > { %2320 = vmatpush2.msra.mxu0 %v2269_v52  ;;  %v2668_v52 = vld [vmem:[#allocation6 + $0xf0] sm:$0xff] }
 0x6dc   : > { %2321 = vmatprep.subr.mxu0 %v2268_v53  ;;  %v2652_v53 = vld [vmem:[#allocation6 + $0x70] sm:$0xff] }
 0x6dd   : > { %2322 = vmatpush2.msra.mxu0 %v2267_v36  ;;  %v2667_v36 = vld [vmem:[#allocation6 + $0xe8] sm:$0xff] }
 0x6de   : > { %2323 = vmatprep.subr.mxu0 %v2266_v38  ;;  %v2651_v38 = vld [vmem:[#allocation6 + $0x68] sm:$0xff] }
 0x6df   : > { %2324 = vmatpush2.msra.mxu0 %v2265_v54  ;;  %v2666_v54 = vld [vmem:[#allocation6 + $0xe0] sm:$0xff] }
 0x6e0   : > { %2325 = vmatprep.subr.mxu0 %v2264_v57  ;;  %v2650_v57 = vld [vmem:[#allocation6 + $0x60] sm:$0xff] }
 0x6e1   : > { %2326 = vmatpush2.msra.mxu0 %v2263_v59  ;;  %v2665_v59 = vld [vmem:[#allocation6 + $0xd8] sm:$0xff] }
 0x6e2   : > { %2327 = vmatprep.subr.mxu0 %v2262_v60  ;;  %v2649_v60 = vld [vmem:[#allocation6 + $0x58] sm:$0xff] }
 0x6e3   : > { %2328 = vmatpush2.msra.mxu0 %v2261_v61  ;;  %v2664_v61 = vld [vmem:[#allocation6 + $0xd0] sm:$0xff] }
 0x6e4   : > { %2329 = vmatprep.subr.mxu0 %v2260_v62  ;;  %v2648_v62 = vld [vmem:[#allocation6 + $0x50] sm:$0xff] }
 0x6e5   : > { %2330 = vmatpush2.msra.mxu0 %v2259_v0  ;;  %v2663_v0 = vld [vmem:[#allocation6 + $0xc8] sm:$0xff] }
 0x6e6   : > { %2331 = vmatprep.subr.mxu0 %v2258_v1  ;;  %v2647_v1 = vld [vmem:[#allocation6 + $0x48] sm:$0xff] }
 0x6e7   : > { %2332 = vmatpush2.msra.mxu0 %v2257_v45  ;;  %v2662_v45 = vld [vmem:[#allocation6 + $0xc0] sm:$0xff] }
 0x6e8   : > { %2333 = vmatprep.subr.mxu0 %v2256_v47  ;;  %v2646_v47 = vld [vmem:[#allocation6 + $0x40] sm:$0xff] }
 0x6e9   : > { %2334 = vmatpush2.msra.mxu0 %v2255_v2  ;;  %v2661_v2 = vld [vmem:[#allocation6 + $0xb8] sm:$0xff] }
 0x6ea   : > { %2335 = vmatprep.subr.mxu0 %v2254_v5  ;;  %v2645_v5 = vld [vmem:[#allocation6 + $0x38] sm:$0xff] }
 0x6eb   : > { %2336 = vmatpush2.msra.mxu0 %v2253_v7  ;;  %v2660_v7 = vld [vmem:[#allocation6 + $0xb0] sm:$0xff] }
 0x6ec   : > { %2337 = vmatprep.subr.mxu0 %v2252_v8  ;;  %v2644_v8 = vld [vmem:[#allocation6 + $0x30] sm:$0xff] }
 0x6ed   : > { %2338 = vmatpush2.msra.mxu0 %v2251_v9  ;;  %v2659_v9 = vld [vmem:[#allocation6 + $0xa8] sm:$0xff] }
 0x6ee   : > { %2339 = vmatprep.subr.mxu0 %v2250_v10  ;;  %v2643_v10 = vld [vmem:[#allocation6 + $0x28] sm:$0xff] }
 0x6ef   : > { %2340 = vmatpush2.msra.mxu0 %v2249_v11  ;;  %v2658_v11 = vld [vmem:[#allocation6 + $0xa0] sm:$0xff] }
 0x6f0   : > { %2341 = vmatprep.subr.mxu0 %v2248_v12  ;;  %v2642_v12 = vld [vmem:[#allocation6 + $0x20] sm:$0xff] }
 0x6f1   : > { %2342 = vmatpush2.msra.mxu0 %v2247_v55  ;;  %v2657_v55 = vld [vmem:[#allocation6 + $0x98] sm:$0xff] }
 0x6f2   : > { %2344 = vmatmul.mubr.f32.vlgmr.msra.gmra.mxu0 %v5794_v26  ;;  %v4820_v26 = vld [vmem:[%s6052_s2 + $0x40] sm:$0xff] }
 0x735   : > { %v2438_v21 = vpop.permute.xlu0 %2437 }
 0x772   : > { %v2207_v14 = vpop.f32.mrf.mxu0 }
 0x773   : > { %v2212_v15 = vadd.f32 %v2207_v14, %v5829_v3 }
 0x774   : > { %v2209_v16 = vpop.f32.mrf.mxu0 }
 0x775   : > { %v2213_v17 = vadd.f32 %v2209_v16, %v5832_v6  ;;  %v2656_v16 = vld [vmem:[#allocation6 + $0x90] sm:$0xff] }
 0x7b2   : > { %v2345_v18 = vpop.f32.mrf.mxu0 }
 0x7b4   : > { %v2347_v19 = vpop.f32.mrf.mxu0 }
 0x7b5   : > { %4821 = vmatprep.subr.msk.mxu1 %vm736_vm0, %v2347_v19  ;;  %v2639_v19 = vld [vmem:[#allocation6 + $0x8] sm:$0xff] }
 0x7b6   : > { %4822 = vmatpush1.msk.msra.mxu1 %vm736_vm0, %v2345_v18  ;;  %v2655_v18 = vld [vmem:[#allocation6 + $0x88] sm:$0xff] }
 0x7b7   : > { %4823 = vmatmul.mubr.msk.f32.vlgmr.msra.gmra.mxu1 %vm732_vm1, %v4820_v26  ;;  %5235 = vmatprep.subr.mxu1 %v5554_v4 }
 0x7b8   : > { %5237 = vmatprep.mubr.msk.f32.mxu1 %vm5556_vm4, %v5554_v4 }
 0x877   : > { %v2427_v20 = vpop.f32.mrf.mxu1 }
 0x878   : > { %v2432_v3 = vadd.f32 %v2427_v20, %v2212_v15  ;;  %v2654_v20 = vld [vmem:[#allocation6 + $0x80] sm:$0xff] }
 0x879   : > { %v2429_v63 = vpop.f32.mrf.mxu1 }
 0x87a   : > { %v2440_v22 = vadd.f32 %v2438_v21, %v2432_v3  ;;  %v2433_v6 = vadd.f32 %v2429_v63, %v2213_v17  ;;  %v2640_v17 = vld [vmem:[#allocation6 + $0x10] sm:$0xff]  ;;  %v4829_v3 = vld [vmem:[%s6053_s3 + $0x10] sm:$0xff]  ;;  %v2774_v63 = vld [vmem:[#allocation6 + $0x1f8] sm:$0xff] }
 0x87c   : > { %v2444_v23 = vmul.f32 1.442695, %v2440_v22  ;;  %v2441_v25 = vadd.f32 %v2438_v21, %v2433_v6  ;;  %vm2442_vm2 = vcmp.gt.f32.partialorder %v2440_v22, 0.0  ;;  %v2638_v21 = vld [vmem:[#allocation6] sm:$0xff] }
 0x87e   : > { %5380 = vpow2.f32 %v2444_v23  ;;  %v2446_v27 = vmul.f32 1.442695, %v2441_v25  ;;  %vm2443_vm3 = vcmp.gt.f32.partialorder %v2441_v25, 0.0 }
 0x880   : > { %5382 = vpow2.f32 %v2446_v27 }
 0x88b   : > { %v5381_v28 = vpop.eup %5380 }
 0x88c   : > { %v4824_v29 = vadd.f32 -1.0, %v5381_v28 }
 0x88d   : > { %v5383_v30 = vpop.eup %5382 }
 0x88e   : > { %v4825_v31 = vadd.f32 -1.0, %v5383_v30  ;;  %v2450_v32 = vsel %vm2442_vm2, %v2440_v22, %v4824_v29  ;;  %v4333_v22 = vld [vmem:[%s6057_s7] sm:$0xff] }
 0x890   : > { %v2451_v33 = vsel %vm2443_vm3, %v2441_v25, %v4825_v31 }
 0x891   : > { %v2452_v34 = vadd.f32 %v2451_v33, %v2450_v32 }
 0x893   : > { %2453 = vadd.xlane.f32.xlu0 %v2452_v34  ;;  %v2773_v34 = vld [vmem:[#allocation6 + $0x1f0] sm:$0xff] }
 0x91c   : > { %v2454_v37 = vpop.xlane.xlu0 %2453 }
 0x91d   : > { %5236 = vmatpush3.msra.mxu1 %v2454_v37  ;;  %v2772_v37 = vld [vmem:[#allocation6 + $0x1e8] sm:$0xff] }
 0x91e   : > { %5238 = vmatmul.mubr.msk.f32.vlgmr.msra.gmra.mxu1 %vm2456_vm5, %v2455_v35  ;;  %5240 = vmatprep.subr.mxu1 %v5554_v4 }
 0x91f   : > { %5242 = vmatprep.mubr.msk.f32.mxu1 %vm5556_vm4, %v5554_v4 }
 0x9de   : > { %v2526_v39 = vpop.f32.mrf.mxu1 }
 0x9df   : > { %2532 = vperm.xlu1 %5378, %v2526_v39   ;;  %v2756_v39 = vld [vmem:[#allocation6 + $0x168] sm:$0xff] }
 0x9e0   : > { %v5239_v40 = vpop.f32.mrf.mxu1 }
 0x9e1   : > { %v2771_v40 = vld [vmem:[#allocation6 + $0x1e0] sm:$0xff] }
 0xa5a   : > { %v2533_v41 = vpop.permute.xlu1 %2532 }
 0xa5b   : > { %v5860_v42 = vsub.f32 %v2450_v32, %v2533_v41  ;;  %v5862_v56 = vsub.f32 %v2451_v33, %v2533_v41  ;;  %v2758_v33 = vld [vmem:[#allocation6 + $0x178] sm:$0xff]  ;;  %v2755_v41 = vld [vmem:[#allocation6 + $0x160] sm:$0xff] }
 0xa5d   : > { %v2537_v43 = vmul.f32 %v5860_v42, %v5860_v42  ;;  %v2538_v24 = vmul.f32 %v5862_v56, %v5862_v56 }
 0xa5f   : > { %v2539_v44 = vadd.f32 %v2538_v24, %v2537_v43  ;;  %v2769_v43 = vld [vmem:[#allocation6 + $0x1d0] sm:$0xff] }
 0xa60   : > { %v2753_v24 = vld [vmem:[#allocation6 + $0x150] sm:$0xff] }
 0xa61   : > { %2540 = vadd.xlane.f32.xlu1 %v2539_v44  ;;  %v2768_v44 = vld [vmem:[#allocation6 + $0x1c8] sm:$0xff] }
 0xa72   : > { %2624 = vperm.xlu1 %5378, %v4828_v46   ;;  %v2752_v46 = vld [vmem:[#allocation6 + $0x148] sm:$0xff] }
 0xa76   : > { %4342 = vperm.xlu1 %5378, %v4334_v48   ;;  %v2767_v48 = vld [vmem:[#allocation6 + $0x1c0] sm:$0xff] }
 0xaea   : > { %v2541_v49 = vpop.xlane.xlu1 %2540 }
 0xaeb   : > { %5241 = vmatpush3.msra.mxu1 %v2541_v49  ;;  %v2751_v49 = vld [vmem:[#allocation6 + $0x140] sm:$0xff] }
 0xaec   : > { %5243 = vmatmul.mubr.msk.f32.vlgmr.msra.gmra.mxu1 %vm2456_vm5, %v2455_v35  ;;  %4882 = vmatprep.subr.mxu1 %v2669_v50  ;;  %v2757_v35 = vld [vmem:[#allocation6 + $0x170] sm:$0xff]  ;;  %v2766_v50 = vld [vmem:[#allocation6 + $0x1b8] sm:$0xff] }
 0xaed   : > { %4883 = vmatpush3.msra.mxu1 %v2653_v51  ;;  %v2750_v51 = vld [vmem:[#allocation6 + $0x138] sm:$0xff] }
 0xaee   : > { %4884 = vmatprep.subr.mxu1 %v2668_v52  ;;  %v2625_v27 = vpop.permute.xlu1 %2624  ;;  %v2765_v52 = vld [vmem:[#allocation6 + $0x1b0] sm:$0xff] }
 0xaef   : > { %4885 = vmatpush3.msra.mxu1 %v2652_v53  ;;  %v2749_v53 = vld [vmem:[#allocation6 + $0x130] sm:$0xff] }
 0xaf0   : > { %4886 = vmatprep.subr.mxu1 %v2667_v36  ;;  %v2764_v36 = vld [vmem:[#allocation6 + $0x1a8] sm:$0xff] }
 0xaf1   : > { %4887 = vmatpush3.msra.mxu1 %v2651_v38  ;;  %v2748_v38 = vld [vmem:[#allocation6 + $0x128] sm:$0xff] }
 0xaf2   : > { %4888 = vmatprep.subr.mxu1 %v2666_v54  ;;  %v2763_v54 = vld [vmem:[#allocation6 + $0x1a0] sm:$0xff] }
 0xaf3   : > { %4889 = vmatpush3.msra.mxu1 %v2650_v57  ;;  %v2747_v57 = vld [vmem:[#allocation6 + $0x120] sm:$0xff] }
 0xaf4   : > { %4890 = vmatprep.subr.mxu1 %v2665_v59  ;;  %v2762_v59 = vld [vmem:[#allocation6 + $0x198] sm:$0xff] }
 0xaf5   : > { %4891 = vmatpush3.msra.mxu1 %v2649_v60  ;;  %v2746_v60 = vld [vmem:[#allocation6 + $0x118] sm:$0xff] }
 0xaf6   : > { %4892 = vmatprep.subr.mxu1 %v2664_v61  ;;  %v2761_v61 = vld [vmem:[#allocation6 + $0x190] sm:$0xff] }
 0xaf7   : > { %4893 = vmatpush3.msra.mxu1 %v2648_v62  ;;  %v2745_v62 = vld [vmem:[#allocation6 + $0x110] sm:$0xff] }
 0xaf8   : > { %4894 = vmatprep.subr.mxu1 %v2663_v0  ;;  %v2760_v0 = vld [vmem:[#allocation6 + $0x188] sm:$0xff] }
 0xaf9   : > { %4895 = vmatpush3.msra.mxu1 %v2647_v1  ;;  %v2744_v1 = vld [vmem:[#allocation6 + $0x108] sm:$0xff] }
 0xafa   : > { %4896 = vmatprep.subr.mxu1 %v2662_v45  ;;  %v2759_v45 = vld [vmem:[#allocation6 + $0x180] sm:$0xff] }
 0xafb   : > { %4897 = vmatpush3.msra.mxu1 %v2646_v47  ;;  %v2743_v47 = vld [vmem:[#allocation6 + $0x100] sm:$0xff] }
 0xafc   : > { %4898 = vmatprep.subr.mxu1 %v2661_v2  ;;  %v4830_v2 = vld [vmem:[%s6056_s6 + $0x10] sm:$0xff] }
 0xafd   : > { %4899 = vmatpush3.msra.mxu1 %v2645_v5  ;;  %5247 = vmatprep.mubr.msk.f32.mxu0 %vm2456_vm5, %v4830_v2  ;;  %v3227_v2 = vld [vmem:[#allocation6 + $0x3d8] sm:$0xff] }
 0xafe   : > { %4900 = vmatprep.subr.mxu1 %v2660_v7 }
 0xaff   : > { %4901 = vmatpush3.msra.mxu1 %v2644_v8 }
 0xb00   : > { %4902 = vmatprep.subr.mxu1 %v2659_v9 }
 0xb01   : > { %4903 = vmatpush3.msra.mxu1 %v2643_v10 }
 0xb02   : > { %4904 = vmatprep.subr.mxu1 %v2658_v11  ;;  %v4831_v11 = vld [vmem:[%s6056_s6 + $0x18] sm:$0xff] }
 0xb03   : > { %4905 = vmatpush3.msra.mxu1 %v2642_v12 }
 0xb04   : > { %4906 = vmatprep.subr.mxu1 %v2657_v55  ;;  %v2740_v55 = vld [vmem:[%s6056_s6] sm:$0xff] }
 0xb05   : > { %4907 = vmatpush3.msra.mxu1 %v2641_v58  ;;  %v3042_v58 = vld [vmem:[#allocation6 + $0x2f8] sm:$0xff] }
 0xb06   : > { %4908 = vmatprep.subr.mxu1 %v2656_v16  ;;  %v3025_v16 = vld [vmem:[#allocation6 + $0x270] sm:$0xff] }
 0xb07   : > { %4909 = vmatpush3.msra.mxu1 %v2640_v17  ;;  %v3040_v17 = vld [vmem:[#allocation6 + $0x2e8] sm:$0xff] }
 0xb08   : > { %4910 = vmatprep.subr.mxu1 %v2655_v18  ;;  %v3024_v18 = vld [vmem:[#allocation6 + $0x268] sm:$0xff] }
 0xb09   : > { %4911 = vmatpush3.msra.mxu1 %v2639_v19  ;;  %v3039_v19 = vld [vmem:[#allocation6 + $0x2e0] sm:$0xff] }
 0xb0a   : > { %4912 = vmatprep.subr.mxu1 %v2654_v20  ;;  %v3038_v20 = vld [vmem:[#allocation6 + $0x2d8] sm:$0xff] }
 0xb0b   : > { %4913 = vmatpush3.msra.mxu1 %v2638_v21  ;;  %v3022_v21 = vld [vmem:[#allocation6 + $0x258] sm:$0xff] }
 0xb0c   : > { %4917 = vmatprep.subr.mxu1 %v2774_v63  ;;  %v3021_v63 = vld [vmem:[#allocation6 + $0x250] sm:$0xff] }
 0xbac   : > { %v2608_v13 = vpop.f32.mrf.mxu1 }
 0xbad   : > { %v2609_v14 = vadd.f32 1e-05, %v2608_v13  ;;  %v2741_v13 = vld [vmem:[%s6056_s6 + $0x8] sm:$0xff] }
 0xbae   : > { %v5244_v15 = vpop.f32.mrf.mxu1 }
 0xbaf   : > { %5384 = vrsqrt.f32 %v2609_v14  ;;  %v3026_v14 = vld [vmem:[#allocation6 + $0x278] sm:$0xff]  ;;  %v3041_v15 = vld [vmem:[#allocation6 + $0x2f0] sm:$0xff] }
 0xbbc   : > { %v5385_v26 = vpop.eup %5384 }
 0xbbd   : > { %2615 = vperm.xlu0 %5377, %v5385_v26   ;;  %v3023_v26 = vld [vmem:[#allocation6 + $0x260] sm:$0xff] }
 0xbc1   : > { %2633 = vperm.xlu0 %5377, %v4829_v3   ;;  %v3037_v3 = vld [vmem:[#allocation6 + $0x2d0] sm:$0xff] }
 0xbc5   : > { %4337 = vperm.xlu0 %5377, %v4333_v22   ;;  %v3036_v22 = vld [vmem:[#allocation6 + $0x2c8] sm:$0xff] }
 0xc38   : > { %v2616_v6 = vpop.permute.xlu0 %2615 }
 0xc39   : > { %v2618_v23 = vmul.f32 %v2616_v6, %v5860_v42  ;;  %v2619_v25 = vmul.f32 %v2616_v6, %v5862_v56  ;;  %v2770_v42 = vld [vmem:[#allocation6 + $0x1d8] sm:$0xff]  ;;  %v3020_v6 = vld [vmem:[#allocation6 + $0x248] sm:$0xff] }
 0xc3a   : > { %v2754_v56 = vld [vmem:[#allocation6 + $0x158] sm:$0xff] }
 0xc3b   : > { %v2627_v28 = vmul.f32 %v2625_v27, %v2618_v23  ;;  %v2628_v29 = vmul.f32 %v2625_v27, %v2619_v25  ;;  %v3035_v23 = vld [vmem:[#allocation6 + $0x2c0] sm:$0xff]  ;;  %v3034_v27 = vld [vmem:[#allocation6 + $0x2b8] sm:$0xff] }
 0xc3c   : > { %v2634_v30 = vpop.permute.xlu0 %2633  ;;  %v3019_v25 = vld [vmem:[#allocation6 + $0x240] sm:$0xff] }
 0xc3d   : > { %v5883_v31 = vadd.f32 %v2634_v30, %v2627_v28  ;;  %v5885_v32 = vadd.f32 %v2634_v30, %v2628_v29  ;;  %v3018_v28 = vld [vmem:[#allocation6 + $0x238] sm:$0xff]  ;;  %v3033_v29 = vld [vmem:[#allocation6 + $0x2b0] sm:$0xff] }
 0xc3e   : > { %v3017_v30 = vld [vmem:[#allocation6 + $0x230] sm:$0xff] }
 0xc3f   : > { %2734 = vmatprep.mubr.f32.mxu1 %v5885_v32 }
 0xc40   : > { %2735 = vmatmul.mubr.f32.vlgmr.msra.gmra.mxu1 %v5883_v31 }
 0xc41   : > { %4918 = vmatpush3.msra.mxu1 %v2758_v33  ;;  %2839 = vmatprep.mubr.f32.mxu1 %v5885_v32  ;;  %v3032_v33 = vld [vmem:[#allocation6 + $0x2a8] sm:$0xff] }
 0xc42   : > { %4919 = vmatprep.subr.mxu1 %v2773_v34  ;;  %v3016_v34 = vld [vmem:[#allocation6 + $0x228] sm:$0xff] }
 0xc43   : > { %4920 = vmatpush3.msra.mxu1 %v2757_v35  ;;  %v3031_v35 = vld [vmem:[#allocation6 + $0x2a0] sm:$0xff] }
 0xc44   : > { %4921 = vmatprep.subr.mxu1 %v2772_v37  ;;  %v3015_v37 = vld [vmem:[#allocation6 + $0x220] sm:$0xff] }
 0xc45   : > { %4922 = vmatpush3.msra.mxu1 %v2756_v39  ;;  %v3030_v39 = vld [vmem:[#allocation6 + $0x298] sm:$0xff] }
 0xc46   : > { %4923 = vmatprep.subr.mxu1 %v2771_v40  ;;  %v3014_v40 = vld [vmem:[#allocation6 + $0x218] sm:$0xff] }
 0xc47   : > { %4924 = vmatpush3.msra.mxu1 %v2755_v41  ;;  %v3029_v41 = vld [vmem:[#allocation6 + $0x290] sm:$0xff] }
 0xc48   : > { %4925 = vmatprep.subr.mxu1 %v2770_v42  ;;  %v3013_v42 = vld [vmem:[#allocation6 + $0x210] sm:$0xff] }
 0xc49   : > { %4926 = vmatpush3.msra.mxu1 %v2754_v56  ;;  %v3028_v56 = vld [vmem:[#allocation6 + $0x288] sm:$0xff] }
 0xc4a   : > { %4927 = vmatprep.subr.mxu1 %v2769_v43  ;;  %v3012_v43 = vld [vmem:[#allocation6 + $0x208] sm:$0xff] }
 0xc4b   : > { %4928 = vmatpush3.msra.mxu1 %v2753_v24  ;;  %v3027_v24 = vld [vmem:[#allocation6 + $0x280] sm:$0xff] }
 0xc4c   : > { %4929 = vmatprep.subr.mxu1 %v2768_v44  ;;  %v3011_v44 = vld [vmem:[#allocation6 + $0x200] sm:$0xff] }
 0xc4d   : > { %4930 = vmatpush3.msra.mxu1 %v2752_v46  ;;  %v4836_v46 = vld [vmem:[%s6056_s6 + $0x20] sm:$0xff] }
 0xc4e   : > { %4931 = vmatprep.subr.mxu1 %v2767_v48 }
 0xc4f   : > { %4932 = vmatpush3.msra.mxu1 %v2751_v49 }
 0xc50   : > { %4933 = vmatprep.subr.mxu1 %v2766_v50 }
 0xc51   : > { %4934 = vmatpush3.msra.mxu1 %v2750_v51 }
 0xc52   : > { %4935 = vmatprep.subr.mxu1 %v2765_v52 }
 0xc53   : > { %4936 = vmatpush3.msra.mxu1 %v2749_v53 }
 0xc54   : > { %4937 = vmatprep.subr.mxu1 %v2764_v36 }
 0xc55   : > { %4938 = vmatpush3.msra.mxu1 %v2748_v38 }
 0xc56   : > { %4939 = vmatprep.subr.mxu1 %v2763_v54 }
 0xc57   : > { %4940 = vmatpush3.msra.mxu1 %v2747_v57  ;;  %v4837_v57 = vld [vmem:[%s6056_s6 + $0x28] sm:$0xff] }
 0xc58   : > { %4941 = vmatprep.subr.mxu1 %v2762_v59  ;;  %v3231_v59 = vld [vmem:[#allocation6 + $0x3f8] sm:$0xff] }
 0xc59   : > { %4942 = vmatpush3.msra.mxu1 %v2746_v60  ;;  %v3215_v60 = vld [vmem:[#allocation6 + $0x378] sm:$0xff] }
 0xc5a   : > { %4943 = vmatprep.subr.mxu1 %v2761_v61  ;;  %v3230_v61 = vld [vmem:[#allocation6 + $0x3f0] sm:$0xff] }
 0xc5b   : > { %4944 = vmatpush3.msra.mxu1 %v2745_v62  ;;  %v3214_v62 = vld [vmem:[#allocation6 + $0x370] sm:$0xff] }
 0xc5c   : > { %4945 = vmatprep.subr.mxu1 %v2760_v0  ;;  %v3229_v0 = vld [vmem:[#allocation6 + $0x3e8] sm:$0xff] }
 0xc5d   : > { %4946 = vmatpush3.msra.mxu1 %v2744_v1  ;;  %v3213_v1 = vld [vmem:[#allocation6 + $0x368] sm:$0xff] }
 0xc5e   : > { %4947 = vmatprep.subr.mxu1 %v2759_v45  ;;  %v3228_v45 = vld [vmem:[#allocation6 + $0x3e0] sm:$0xff] }
 0xc5f   : > { %4948 = vmatpush3.msra.mxu1 %v2743_v47  ;;  %v3212_v47 = vld [vmem:[#allocation6 + $0x360] sm:$0xff] }
 0xc60   : > { %2840 = vmatmul.mubr.f32.vlgmr.msra.gmra.mxu1 %v5883_v31 }
 0xc61   : > { %5257 = vmatprep.mubr.msk.f32.mxu1 %vm2456_vm5, %v4836_v46  ;;  %v3400_v46 = vld [vmem:[#allocation6 + $0x458] sm:$0xff] }
 0xd00   : > { %v4914_v5 = vpop.f32.mrf.mxu1 }
 0xd02   : > { %v4915_v7 = vpop.f32.mrf.mxu1 }
 0xd03   : > { %v4916_v12 = vadd.f32 %v4915_v7, %v4914_v5  ;;  %v3211_v5 = vld [vmem:[#allocation6 + $0x358] sm:$0xff]  ;;  %v3226_v7 = vld [vmem:[#allocation6 + $0x3d0] sm:$0xff] }
 0xd20   : > { %v4949_v8 = vpop.f32.mrf.mxu1 }
 0xd22   : > { %v4950_v9 = vpop.f32.mrf.mxu1 }
 0xd23   : > { %v4951_v10 = vadd.f32 %v4950_v9, %v4949_v8  ;;  %v3210_v8 = vld [vmem:[#allocation6 + $0x350] sm:$0xff]  ;;  %v3225_v9 = vld [vmem:[#allocation6 + $0x3c8] sm:$0xff] }
 0xd25   : > { %5245 = vmatprep.subr.mxu0 %v4951_v10 }
 0xd26   : > { %5246 = vmatpush3.msra.mxu0 %v4951_v10  ;;  %v3209_v10 = vld [vmem:[#allocation6 + $0x348] sm:$0xff] }
 0xd27   : > { %5248 = vmatmul.mubr.msk.f32.vlgmr.msra.gmra.mxu0 %vm2456_vm5, %v4831_v11  ;;  %5250 = vmatprep.subr.mxu0 %v4916_v12  ;;  %v3224_v11 = vld [vmem:[#allocation6 + $0x3c0] sm:$0xff] }
 0xd28   : > { %5251 = vmatpush3.msra.mxu0 %v4916_v12  ;;  %5252 = vmatprep.mubr.msk.f32.mxu0 %vm2456_vm5, %v2740_v55  ;;  %v3208_v12 = vld [vmem:[#allocation6 + $0x340] sm:$0xff]  ;;  %v3223_v55 = vld [vmem:[#allocation6 + $0x3b8] sm:$0xff] }
 0xd29   : > { %4958 = vmatprep.subr.mxu0 %v3042_v58  ;;  %v3207_v58 = vld [vmem:[#allocation6 + $0x338] sm:$0xff] }
 0xd2b   : > { %5253 = vmatmul.mubr.msk.f32.vlgmr.msra.gmra.mxu0 %vm2456_vm5, %v2741_v13  ;;  %v3222_v13 = vld [vmem:[#allocation6 + $0x3b0] sm:$0xff] }
 0xd2c   : > { %4959 = vmatpush3.msra.mxu0 %v3026_v14  ;;  %3107 = vmatprep.mubr.f32.mxu0 %v5885_v32  ;;  %v3206_v14 = vld [vmem:[#allocation6 + $0x330] sm:$0xff] }
 0xd2d   : > { %4960 = vmatprep.subr.mxu0 %v3041_v15  ;;  %v3221_v15 = vld [vmem:[#allocation6 + $0x3a8] sm:$0xff] }
 0xd2e   : > { %4961 = vmatpush3.msra.mxu0 %v3025_v16  ;;  %v3205_v16 = vld [vmem:[#allocation6 + $0x328] sm:$0xff] }
 0xd2f   : > { %4962 = vmatprep.subr.mxu0 %v3040_v17  ;;  %v3220_v17 = vld [vmem:[#allocation6 + $0x3a0] sm:$0xff] }
 0xd30   : > { %4963 = vmatpush3.msra.mxu0 %v3024_v18  ;;  %v3204_v18 = vld [vmem:[#allocation6 + $0x320] sm:$0xff] }
 0xd31   : > { %4964 = vmatprep.subr.mxu0 %v3039_v19  ;;  %v3219_v19 = vld [vmem:[#allocation6 + $0x398] sm:$0xff] }
 0xd32   : > { %4965 = vmatpush3.msra.mxu0 %v3023_v26  ;;  %v3203_v26 = vld [vmem:[#allocation6 + $0x318] sm:$0xff] }
 0xd33   : > { %4966 = vmatprep.subr.mxu0 %v3038_v20  ;;  %v3218_v20 = vld [vmem:[#allocation6 + $0x390] sm:$0xff] }
 0xd34   : > { %4967 = vmatpush3.msra.mxu0 %v3022_v21  ;;  %v3202_v21 = vld [vmem:[#allocation6 + $0x310] sm:$0xff] }
 0xd35   : > { %4968 = vmatprep.subr.mxu0 %v3037_v3  ;;  %v3217_v3 = vld [vmem:[#allocation6 + $0x388] sm:$0xff] }
 0xd36   : > { %4969 = vmatpush3.msra.mxu0 %v3021_v63  ;;  %v3201_v63 = vld [vmem:[#allocation6 + $0x308] sm:$0xff] }
 0xd37   : > { %4970 = vmatprep.subr.mxu0 %v3036_v22  ;;  %v3216_v22 = vld [vmem:[#allocation6 + $0x380] sm:$0xff] }
 0xd38   : > { %4971 = vmatpush3.msra.mxu0 %v3020_v6  ;;  %v3200_v6 = vld [vmem:[#allocation6 + $0x300] sm:$0xff] }
 0xd39   : > { %4972 = vmatprep.subr.mxu0 %v3035_v23  ;;  %v4840_v23 = vld [vmem:[%s6056_s6 + $0x30] sm:$0xff] }
 0xd3a   : > { %4973 = vmatpush3.msra.mxu0 %v3019_v25 }
 0xd3b   : > { %4974 = vmatprep.subr.mxu0 %v3034_v27 }
 0xd3c   : > { %4975 = vmatpush3.msra.mxu0 %v3018_v28 }
 0xd3d   : > { %4976 = vmatprep.subr.mxu0 %v3033_v29 }
 0xd3e   : > { %4977 = vmatpush3.msra.mxu0 %v3017_v30 }
 0xd3f   : > { %4978 = vmatprep.subr.mxu0 %v3032_v33 }
 0xd40   : > { %4979 = vmatpush3.msra.mxu0 %v3016_v34 }
 0xd41   : > { %4980 = vmatprep.subr.mxu0 %v3031_v35  ;;  %v4841_v35 = vld [vmem:[%s6056_s6 + $0x38] sm:$0xff] }
 0xd42   : > { %4981 = vmatpush3.msra.mxu0 %v3015_v37  ;;  %v3420_v37 = vld [vmem:[#allocation6 + $0x4f8] sm:$0xff] }
 0xd43   : > { %4982 = vmatprep.subr.mxu0 %v3030_v39  ;;  %v3404_v39 = vld [vmem:[#allocation6 + $0x478] sm:$0xff] }
 0xd44   : > { %4983 = vmatpush3.msra.mxu0 %v3014_v40  ;;  %v3419_v40 = vld [vmem:[#allocation6 + $0x4f0] sm:$0xff] }
 0xd45   : > { %4984 = vmatprep.subr.mxu0 %v3029_v41  ;;  %v3403_v41 = vld [vmem:[#allocation6 + $0x470] sm:$0xff] }
 0xd46   : > { %4985 = vmatpush3.msra.mxu0 %v3013_v42  ;;  %v3418_v42 = vld [vmem:[#allocation6 + $0x4e8] sm:$0xff] }
 0xd47   : > { %4986 = vmatprep.subr.mxu0 %v3028_v56  ;;  %v3402_v56 = vld [vmem:[#allocation6 + $0x468] sm:$0xff] }
 0xd48   : > { %4987 = vmatpush3.msra.mxu0 %v3012_v43  ;;  %v3417_v43 = vld [vmem:[#allocation6 + $0x4e0] sm:$0xff] }
 0xd49   : > { %4988 = vmatprep.subr.mxu0 %v3027_v24  ;;  %v3401_v24 = vld [vmem:[#allocation6 + $0x460] sm:$0xff] }
 0xd4a   : > { %4989 = vmatpush3.msra.mxu0 %v3011_v44  ;;  %v3416_v44 = vld [vmem:[#allocation6 + $0x4d8] sm:$0xff] }
 0xd4b   : > { %3108 = vmatmul.mubr.f32.vlgmr.msra.gmra.mxu0 %v5883_v31 }
 0xd4c   : > { %5262 = vmatprep.mubr.msk.f32.mxu0 %vm2456_vm5, %v4840_v23  ;;  %v3588_v23 = vld [vmem:[#allocation6 + $0x550] sm:$0xff] }
 0xde7   : > { %v5249_v48 = vpop.f32.mrf.mxu0 }
 0xde9   : > { %v2920_v49 = vpop.f32.mrf.mxu0 }
 0xdeb   : > { %v5254_v50 = vpop.f32.mrf.mxu0 }
 0xdec   : > { %v5913_v51 = vadd.f32 %v5254_v50, %v5249_v48  ;;  %v3415_v48 = vld [vmem:[#allocation6 + $0x4d0] sm:$0xff]  ;;  %v3414_v50 = vld [vmem:[#allocation6 + $0x4c8] sm:$0xff] }
 0xded   : > { %v3001_v52 = vpop.f32.mrf.mxu0 }
 0xdee   : > { %v5915_v53 = vadd.f32 %v3001_v52, %v2920_v49  ;;  %v3399_v49 = vld [vmem:[#allocation6 + $0x450] sm:$0xff]  ;;  %v3413_v52 = vld [vmem:[#allocation6 + $0x4c0] sm:$0xff] }
 0xe0b   : > { %v4990_v36 = vpop.f32.mrf.mxu0 }
 0xe0d   : > { %v4991_v38 = vpop.f32.mrf.mxu0 }
 0xe0e   : > { %v4992_v54 = vadd.f32 %v4991_v38, %v4990_v36  ;;  %v3412_v36 = vld [vmem:[#allocation6 + $0x4b8] sm:$0xff] }
 0xe0f   : > { %v3396_v38 = vld [vmem:[#allocation6 + $0x438] sm:$0xff] }
 0xe10   : > { %5255 = vmatprep.subr.mxu1 %v4992_v54 }
 0xe11   : > { %5256 = vmatpush3.msra.mxu1 %v4992_v54  ;;  %v3411_v54 = vld [vmem:[#allocation6 + $0x4b0] sm:$0xff] }
 0xe12   : > { %5258 = vmatmul.mubr.msk.f32.vlgmr.msra.gmra.mxu1 %vm2456_vm5, %v4837_v57  ;;  %4996 = vmatprep.subr.mxu1 %v3231_v59  ;;  %v3395_v57 = vld [vmem:[#allocation6 + $0x430] sm:$0xff]  ;;  %v3410_v59 = vld [vmem:[#allocation6 + $0x4a8] sm:$0xff] }
 0xe13   : > { %4997 = vmatpush3.msra.mxu1 %v3215_v60  ;;  %3296 = vmatprep.mubr.f32.mxu1 %v5885_v32  ;;  %v3394_v60 = vld [vmem:[#allocation6 + $0x428] sm:$0xff] }
 0xe14   : > { %4998 = vmatprep.subr.mxu1 %v3230_v61  ;;  %v3409_v61 = vld [vmem:[#allocation6 + $0x4a0] sm:$0xff] }
 0xe15   : > { %4999 = vmatpush3.msra.mxu1 %v3214_v62  ;;  %v3393_v62 = vld [vmem:[#allocation6 + $0x420] sm:$0xff] }
 0xe16   : > { %5000 = vmatprep.subr.mxu1 %v3229_v0  ;;  %v3408_v0 = vld [vmem:[#allocation6 + $0x498] sm:$0xff] }
 0xe17   : > { %5001 = vmatpush3.msra.mxu1 %v3213_v1  ;;  %v3392_v1 = vld [vmem:[#allocation6 + $0x418] sm:$0xff] }
 0xe18   : > { %5002 = vmatprep.subr.mxu1 %v3228_v45  ;;  %v3407_v45 = vld [vmem:[#allocation6 + $0x490] sm:$0xff] }
 0xe19   : > { %5003 = vmatpush3.msra.mxu1 %v3212_v47  ;;  %v3391_v47 = vld [vmem:[#allocation6 + $0x410] sm:$0xff] }
 0xe1a   : > { %5004 = vmatprep.subr.mxu1 %v3227_v2  ;;  %v3406_v2 = vld [vmem:[#allocation6 + $0x488] sm:$0xff] }
 0xe1b   : > { %5005 = vmatpush3.msra.mxu1 %v3211_v5  ;;  %v3390_v5 = vld [vmem:[#allocation6 + $0x408] sm:$0xff] }
 0xe1c   : > { %5006 = vmatprep.subr.mxu1 %v3226_v7  ;;  %v3405_v7 = vld [vmem:[#allocation6 + $0x480] sm:$0xff] }
 0xe1d   : > { %5007 = vmatpush3.msra.mxu1 %v3210_v8  ;;  %v3389_v8 = vld [vmem:[#allocation6 + $0x400] sm:$0xff] }
 0xe1e   : > { %5008 = vmatprep.subr.mxu1 %v3225_v9  ;;  %v4844_v9 = vld [vmem:[%s6056_s6 + $0x40] sm:$0xff] }
 0xe1f   : > { %5009 = vmatpush3.msra.mxu1 %v3209_v10 }
 0xe20   : > { %5010 = vmatprep.subr.mxu1 %v3224_v11 }
 0xe21   : > { %5011 = vmatpush3.msra.mxu1 %v3208_v12 }
 0xe22   : > { %5012 = vmatprep.subr.mxu1 %v3223_v55 }
 0xe23   : > { %5013 = vmatpush3.msra.mxu1 %v3207_v58 }
 0xe24   : > { %5014 = vmatprep.subr.mxu1 %v3222_v13 }
 0xe25   : > { %5015 = vmatpush3.msra.mxu1 %v3206_v14 }
 0xe26   : > { %5016 = vmatprep.subr.mxu1 %v3221_v15  ;;  %v4845_v15 = vld [vmem:[%s6056_s6 + $0x48] sm:$0xff] }
 0xe27   : > { %5017 = vmatpush3.msra.mxu1 %v3205_v16  ;;  %v3609_v16 = vld [vmem:[#allocation6 + $0x5f8] sm:$0xff] }
 0xe28   : > { %5018 = vmatprep.subr.mxu1 %v3220_v17  ;;  %v3593_v17 = vld [vmem:[#allocation6 + $0x578] sm:$0xff] }
 0xe29   : > { %5019 = vmatpush3.msra.mxu1 %v3204_v18  ;;  %v3608_v18 = vld [vmem:[#allocation6 + $0x5f0] sm:$0xff] }
 0xe2a   : > { %5020 = vmatprep.subr.mxu1 %v3219_v19  ;;  %v3592_v19 = vld [vmem:[#allocation6 + $0x570] sm:$0xff] }
 0xe2b   : > { %5021 = vmatpush3.msra.mxu1 %v3203_v26  ;;  %v3607_v26 = vld [vmem:[#allocation6 + $0x5e8] sm:$0xff] }
 0xe2c   : > { %5022 = vmatprep.subr.mxu1 %v3218_v20  ;;  %v3591_v20 = vld [vmem:[#allocation6 + $0x568] sm:$0xff] }
 0xe2d   : > { %5023 = vmatpush3.msra.mxu1 %v3202_v21  ;;  %v3606_v21 = vld [vmem:[#allocation6 + $0x5e0] sm:$0xff] }
 0xe2e   : > { %5024 = vmatprep.subr.mxu1 %v3217_v3  ;;  %v3590_v3 = vld [vmem:[#allocation6 + $0x560] sm:$0xff] }
 0xe2f   : > { %5025 = vmatpush3.msra.mxu1 %v3201_v63  ;;  %v3605_v63 = vld [vmem:[#allocation6 + $0x5d8] sm:$0xff] }
 0xe30   : > { %5026 = vmatprep.subr.mxu1 %v3216_v22  ;;  %v3589_v22 = vld [vmem:[#allocation6 + $0x558] sm:$0xff] }
 0xe31   : > { %5027 = vmatpush3.msra.mxu1 %v3200_v6  ;;  %v3604_v6 = vld [vmem:[#allocation6 + $0x5d0] sm:$0xff] }
 0xe32   : > { %3297 = vmatmul.mubr.f32.vlgmr.msra.gmra.mxu1 %v5883_v31 }
 0xe33   : > { %5267 = vmatprep.mubr.msk.f32.mxu1 %vm2456_vm5, %v4844_v9  ;;  %v3777_v9 = vld [vmem:[#allocation6 + $0x650] sm:$0xff] }
 0xed2   : > { %v5259_v25 = vpop.f32.mrf.mxu1 }
 0xed3   : > { %v5928_v27 = vadd.f32 %v5259_v25, %v5913_v51  ;;  %v3398_v51 = vld [vmem:[#allocation6 + $0x448] sm:$0xff] }
 0xed4   : > { %v3188_v28 = vpop.f32.mrf.mxu1  ;;  %v3603_v25 = vld [vmem:[#allocation6 + $0x5c8] sm:$0xff] }
 0xed5   : > { %v5931_v29 = vadd.f32 %v3188_v28, %v5915_v53  ;;  %v3397_v53 = vld [vmem:[#allocation6 + $0x440] sm:$0xff] }
 0xed6   : > { %v3602_v28 = vld [vmem:[#allocation6 + $0x5c0] sm:$0xff] }
 0xef2   : > { %v5028_v30 = vpop.f32.mrf.mxu1 }
 0xef4   : > { %v5029_v33 = vpop.f32.mrf.mxu1 }
 0xef5   : > { %v5030_v34 = vadd.f32 %v5029_v33, %v5028_v30  ;;  %v3601_v30 = vld [vmem:[#allocation6 + $0x5b8] sm:$0xff] }
 0xef6   : > { %v3585_v33 = vld [vmem:[#allocation6 + $0x538] sm:$0xff] }
 0xef7   : > { %5260 = vmatprep.subr.mxu0 %v5030_v34 }
 0xef8   : > { %5261 = vmatpush3.msra.mxu0 %v5030_v34  ;;  %v3600_v34 = vld [vmem:[#allocation6 + $0x5b0] sm:$0xff] }
 0xef9   : > { %5263 = vmatmul.mubr.msk.f32.vlgmr.msra.gmra.mxu0 %vm2456_vm5, %v4841_v35  ;;  %5034 = vmatprep.subr.mxu0 %v3420_v37  ;;  %v3584_v35 = vld [vmem:[#allocation6 + $0x530] sm:$0xff]  ;;  %v3599_v37 = vld [vmem:[#allocation6 + $0x5a8] sm:$0xff] }
 0xefa   : > { %5035 = vmatpush3.msra.mxu0 %v3404_v39  ;;  %3485 = vmatprep.mubr.f32.mxu0 %v5885_v32  ;;  %v3583_v39 = vld [vmem:[#allocation6 + $0x528] sm:$0xff] }
 0xefb   : > { %5036 = vmatprep.subr.mxu0 %v3419_v40  ;;  %v3598_v40 = vld [vmem:[#allocation6 + $0x5a0] sm:$0xff] }
 0xefc   : > { %5037 = vmatpush3.msra.mxu0 %v3403_v41  ;;  %v3582_v41 = vld [vmem:[#allocation6 + $0x520] sm:$0xff] }
 0xefd   : > { %5038 = vmatprep.subr.mxu0 %v3418_v42  ;;  %v3597_v42 = vld [vmem:[#allocation6 + $0x598] sm:$0xff] }
 0xefe   : > { %5039 = vmatpush3.msra.mxu0 %v3402_v56  ;;  %v3581_v56 = vld [vmem:[#allocation6 + $0x518] sm:$0xff] }
 0xeff   : > { %5040 = vmatprep.subr.mxu0 %v3417_v43  ;;  %v3596_v43 = vld [vmem:[#allocation6 + $0x590] sm:$0xff] }
 0xf00   : > { %5041 = vmatpush3.msra.mxu0 %v3401_v24  ;;  %v3580_v24 = vld [vmem:[#allocation6 + $0x510] sm:$0xff] }
 0xf01   : > { %5042 = vmatprep.subr.mxu0 %v3416_v44  ;;  %v3595_v44 = vld [vmem:[#allocation6 + $0x588] sm:$0xff] }
 0xf02   : > { %5043 = vmatpush3.msra.mxu0 %v3400_v46  ;;  %v3579_v46 = vld [vmem:[#allocation6 + $0x508] sm:$0xff] }
 0xf03   : > { %5044 = vmatprep.subr.mxu0 %v3415_v48  ;;  %v3594_v48 = vld [vmem:[#allocation6 + $0x580] sm:$0xff] }
 0xf04   : > { %5045 = vmatpush3.msra.mxu0 %v3399_v49  ;;  %v3578_v49 = vld [vmem:[#allocation6 + $0x500] sm:$0xff] }
 0xf05   : > { %5046 = vmatprep.subr.mxu0 %v3414_v50  ;;  %v4848_v50 = vld [vmem:[%s6056_s6 + $0x50] sm:$0xff] }
 0xf06   : > { %5047 = vmatpush3.msra.mxu0 %v3398_v51 }
 0xf07   : > { %5048 = vmatprep.subr.mxu0 %v3413_v52 }
 0xf08   : > { %5049 = vmatpush3.msra.mxu0 %v3397_v53 }
 0xf09   : > { %5050 = vmatprep.subr.mxu0 %v3412_v36 }
 0xf0a   : > { %5051 = vmatpush3.msra.mxu0 %v3396_v38 }
 0xf0b   : > { %5052 = vmatprep.subr.mxu0 %v3411_v54 }
 0xf0c   : > { %5053 = vmatpush3.msra.mxu0 %v3395_v57 }
 0xf0d   : > { %5054 = vmatprep.subr.mxu0 %v3410_v59  ;;  %v4849_v59 = vld [vmem:[%s6056_s6 + $0x58] sm:$0xff] }
 0xf0e   : > { %5055 = vmatpush3.msra.mxu0 %v3394_v60  ;;  %v3798_v60 = vld [vmem:[#allocation6 + $0x6f8] sm:$0xff] }
 0xf0f   : > { %5056 = vmatprep.subr.mxu0 %v3409_v61  ;;  %v3782_v61 = vld [vmem:[#allocation6 + $0x678] sm:$0xff] }
 0xf10   : > { %5057 = vmatpush3.msra.mxu0 %v3393_v62  ;;  %v3797_v62 = vld [vmem:[#allocation6 + $0x6f0] sm:$0xff] }
 0xf11   : > { %5058 = vmatprep.subr.mxu0 %v3408_v0  ;;  %v3781_v0 = vld [vmem:[#allocation6 + $0x670] sm:$0xff] }
 0xf12   : > { %5059 = vmatpush3.msra.mxu0 %v3392_v1  ;;  %v3796_v1 = vld [vmem:[#allocation6 + $0x6e8] sm:$0xff] }
 0xf13   : > { %5060 = vmatprep.subr.mxu0 %v3407_v45  ;;  %v3780_v45 = vld [vmem:[#allocation6 + $0x668] sm:$0xff] }
 0xf14   : > { %5061 = vmatpush3.msra.mxu0 %v3391_v47  ;;  %v3795_v47 = vld [vmem:[#allocation6 + $0x6e0] sm:$0xff] }
 0xf15   : > { %5062 = vmatprep.subr.mxu0 %v3406_v2  ;;  %v3779_v2 = vld [vmem:[#allocation6 + $0x660] sm:$0xff] }
 0xf16   : > { %5063 = vmatpush3.msra.mxu0 %v3390_v5  ;;  %v3794_v5 = vld [vmem:[#allocation6 + $0x6d8] sm:$0xff] }
 0xf17   : > { %5064 = vmatprep.subr.mxu0 %v3405_v7  ;;  %v3778_v7 = vld [vmem:[#allocation6 + $0x658] sm:$0xff] }
 0xf18   : > { %5065 = vmatpush3.msra.mxu0 %v3389_v8  ;;  %v3793_v8 = vld [vmem:[#allocation6 + $0x6d0] sm:$0xff] }
 0xf19   : > { %3486 = vmatmul.mubr.f32.vlgmr.msra.gmra.mxu0 %v5883_v31 }
 0xf1a   : > { %5272 = vmatprep.mubr.msk.f32.mxu0 %vm2456_vm5, %v4848_v50  ;;  %v3966_v50 = vld [vmem:[#allocation6 + $0x750] sm:$0xff] }
 0xfb9   : > { %v5264_v10 = vpop.f32.mrf.mxu0 }
 0xfba   : > { %v5944_v11 = vadd.f32 %v5264_v10, %v5928_v27  ;;  %v3587_v27 = vld [vmem:[#allocation6 + $0x548] sm:$0xff] }
 0xfbb   : > { %v3377_v12 = vpop.f32.mrf.mxu0  ;;  %v3792_v10 = vld [vmem:[#allocation6 + $0x6c8] sm:$0xff] }
 0xfbc   : > { %v5947_v55 = vadd.f32 %v3377_v12, %v5931_v29  ;;  %v3586_v29 = vld [vmem:[#allocation6 + $0x540] sm:$0xff] }
 0xfbd   : > { %v3791_v12 = vld [vmem:[#allocation6 + $0x6c0] sm:$0xff] }
 0xfd9   : > { %v5066_v58 = vpop.f32.mrf.mxu0 }
 0xfdb   : > { %v5067_v13 = vpop.f32.mrf.mxu0 }
 0xfdc   : > { %v5068_v14 = vadd.f32 %v5067_v13, %v5066_v58  ;;  %v3790_v58 = vld [vmem:[#allocation6 + $0x6b8] sm:$0xff] }
 0xfdd   : > { %v3774_v13 = vld [vmem:[#allocation6 + $0x638] sm:$0xff] }
 0xfde   : > { %5265 = vmatprep.subr.mxu1 %v5068_v14 }
 0xfdf   : > { %5266 = vmatpush3.msra.mxu1 %v5068_v14  ;;  %v3789_v14 = vld [vmem:[#allocation6 + $0x6b0] sm:$0xff] }
 0xfe0   : > { %5268 = vmatmul.mubr.msk.f32.vlgmr.msra.gmra.mxu1 %vm2456_vm5, %v4845_v15  ;;  %5072 = vmatprep.subr.mxu1 %v3609_v16  ;;  %v3773_v15 = vld [vmem:[#allocation6 + $0x630] sm:$0xff]  ;;  %v3788_v16 = vld [vmem:[#allocation6 + $0x6a8] sm:$0xff] }
 0xfe1   : > { %5073 = vmatpush3.msra.mxu1 %v3593_v17  ;;  %3674 = vmatprep.mubr.f32.mxu1 %v5885_v32  ;;  %v3772_v17 = vld [vmem:[#allocation6 + $0x628] sm:$0xff] }
 0xfe2   : > { %5074 = vmatprep.subr.mxu1 %v3608_v18  ;;  %v3787_v18 = vld [vmem:[#allocation6 + $0x6a0] sm:$0xff] }
 0xfe3   : > { %5075 = vmatpush3.msra.mxu1 %v3592_v19  ;;  %v3771_v19 = vld [vmem:[#allocation6 + $0x620] sm:$0xff] }
 0xfe4   : > { %5076 = vmatprep.subr.mxu1 %v3607_v26  ;;  %v3786_v26 = vld [vmem:[#allocation6 + $0x698] sm:$0xff] }
 0xfe5   : > { %5077 = vmatpush3.msra.mxu1 %v3591_v20  ;;  %v3770_v20 = vld [vmem:[#allocation6 + $0x618] sm:$0xff] }
 0xfe6   : > { %5078 = vmatprep.subr.mxu1 %v3606_v21  ;;  %v3785_v21 = vld [vmem:[#allocation6 + $0x690] sm:$0xff] }
 0xfe7   : > { %5079 = vmatpush3.msra.mxu1 %v3590_v3  ;;  %v3769_v3 = vld [vmem:[#allocation6 + $0x610] sm:$0xff] }
 0xfe8   : > { %5080 = vmatprep.subr.mxu1 %v3605_v63  ;;  %v3784_v63 = vld [vmem:[#allocation6 + $0x688] sm:$0xff] }
 0xfe9   : > { %5081 = vmatpush3.msra.mxu1 %v3589_v22  ;;  %v3768_v22 = vld [vmem:[#allocation6 + $0x608] sm:$0xff] }
 0xfea   : > { %5082 = vmatprep.subr.mxu1 %v3604_v6  ;;  %v3783_v6 = vld [vmem:[#allocation6 + $0x680] sm:$0xff] }
 0xfeb   : > { %5083 = vmatpush3.msra.mxu1 %v3588_v23  ;;  %v3767_v23 = vld [vmem:[#allocation6 + $0x600] sm:$0xff] }
 0xfec   : > { %5084 = vmatprep.subr.mxu1 %v3603_v25  ;;  %v4852_v25 = vld [vmem:[%s6056_s6 + $0x60] sm:$0xff] }
 0xfed   : > { %5085 = vmatpush3.msra.mxu1 %v3587_v27 }
 0xfee   : > { %5086 = vmatprep.subr.mxu1 %v3602_v28 }
 0xfef   : > { %5087 = vmatpush3.msra.mxu1 %v3586_v29 }
 0xff0   : > { %5088 = vmatprep.subr.mxu1 %v3601_v30 }
 0xff1   : > { %5089 = vmatpush3.msra.mxu1 %v3585_v33 }
 0xff2   : > { %5090 = vmatprep.subr.mxu1 %v3600_v34 }
 0xff3   : > { %5091 = vmatpush3.msra.mxu1 %v3584_v35 }
 0xff4   : > { %5092 = vmatprep.subr.mxu1 %v3599_v37  ;;  %v4853_v37 = vld [vmem:[%s6056_s6 + $0x68] sm:$0xff] }
 0xff5   : > { %5093 = vmatpush3.msra.mxu1 %v3583_v39  ;;  %v3987_v39 = vld [vmem:[#allocation6 + $0x7f8] sm:$0xff] }
 0xff6   : > { %5094 = vmatprep.subr.mxu1 %v3598_v40  ;;  %v3971_v40 = vld [vmem:[#allocation6 + $0x778] sm:$0xff] }
 0xff7   : > { %5095 = vmatpush3.msra.mxu1 %v3582_v41  ;;  %v3986_v41 = vld [vmem:[#allocation6 + $0x7f0] sm:$0xff] }
 0xff8   : > { %5096 = vmatprep.subr.mxu1 %v3597_v42  ;;  %v3970_v42 = vld [vmem:[#allocation6 + $0x770] sm:$0xff] }
 0xff9   : > { %5097 = vmatpush3.msra.mxu1 %v3581_v56  ;;  %v3985_v56 = vld [vmem:[#allocation6 + $0x7e8] sm:$0xff] }
 0xffa   : > { %5098 = vmatprep.subr.mxu1 %v3596_v43  ;;  %v3969_v43 = vld [vmem:[#allocation6 + $0x768] sm:$0xff] }
 0xffb   : > { %5099 = vmatpush3.msra.mxu1 %v3580_v24  ;;  %v3984_v24 = vld [vmem:[#allocation6 + $0x7e0] sm:$0xff] }
 0xffc   : > { %5100 = vmatprep.subr.mxu1 %v3595_v44  ;;  %v3968_v44 = vld [vmem:[#allocation6 + $0x760] sm:$0xff] }
 0xffd   : > { %5101 = vmatpush3.msra.mxu1 %v3579_v46  ;;  %v3983_v46 = vld [vmem:[#allocation6 + $0x7d8] sm:$0xff] }
 0xffe   : > { %5102 = vmatprep.subr.mxu1 %v3594_v48  ;;  %v3967_v48 = vld [vmem:[#allocation6 + $0x758] sm:$0xff] }
 0xfff   : > { %5103 = vmatpush3.msra.mxu1 %v3578_v49  ;;  %v3982_v49 = vld [vmem:[#allocation6 + $0x7d0] sm:$0xff] }
0x1000   : > { %3675 = vmatmul.mubr.f32.vlgmr.msra.gmra.mxu1 %v5883_v31 }
0x1001   : > { %5277 = vmatprep.mubr.msk.f32.mxu1 %vm2456_vm5, %v4852_v25  ;;  %v4155_v25 = vld [vmem:[#allocation6 + $0x850] sm:$0xff] }
0x10a0   : > { %v5269_v51 = vpop.f32.mrf.mxu1 }
0x10a1   : > { %v5960_v52 = vadd.f32 %v5269_v51, %v5944_v11  ;;  %v3776_v11 = vld [vmem:[#allocation6 + $0x648] sm:$0xff] }
0x10a2   : > { %v3566_v53 = vpop.f32.mrf.mxu1  ;;  %v3981_v51 = vld [vmem:[#allocation6 + $0x7c8] sm:$0xff] }
0x10a3   : > { %v5963_v36 = vadd.f32 %v3566_v53, %v5947_v55  ;;  %v3775_v55 = vld [vmem:[#allocation6 + $0x640] sm:$0xff] }
0x10a4   : > { %v3980_v53 = vld [vmem:[#allocation6 + $0x7c0] sm:$0xff] }
0x10c0   : > { %v5104_v38 = vpop.f32.mrf.mxu1 }
0x10c2   : > { %v5105_v54 = vpop.f32.mrf.mxu1 }
0x10c3   : > { %v5106_v57 = vadd.f32 %v5105_v54, %v5104_v38  ;;  %v3979_v38 = vld [vmem:[#allocation6 + $0x7b8] sm:$0xff] }
0x10c4   : > { %v3963_v54 = vld [vmem:[#allocation6 + $0x738] sm:$0xff] }
0x10c5   : > { %5270 = vmatprep.subr.mxu0 %v5106_v57 }
0x10c6   : > { %5271 = vmatpush3.msra.mxu0 %v5106_v57  ;;  %v3978_v57 = vld [vmem:[#allocation6 + $0x7b0] sm:$0xff] }
0x10c7   : > { %5273 = vmatmul.mubr.msk.f32.vlgmr.msra.gmra.mxu0 %vm2456_vm5, %v4849_v59  ;;  %5110 = vmatprep.subr.mxu0 %v3798_v60  ;;  %v3962_v59 = vld [vmem:[#allocation6 + $0x730] sm:$0xff]  ;;  %v3977_v60 = vld [vmem:[#allocation6 + $0x7a8] sm:$0xff] }
0x10c8   : > { %5111 = vmatpush3.msra.mxu0 %v3782_v61  ;;  %3863 = vmatprep.mubr.f32.mxu0 %v5885_v32  ;;  %v3961_v61 = vld [vmem:[#allocation6 + $0x728] sm:$0xff] }
0x10c9   : > { %5112 = vmatprep.subr.mxu0 %v3797_v62  ;;  %v3976_v62 = vld [vmem:[#allocation6 + $0x7a0] sm:$0xff] }
0x10ca   : > { %5113 = vmatpush3.msra.mxu0 %v3781_v0  ;;  %v3960_v0 = vld [vmem:[#allocation6 + $0x720] sm:$0xff] }
0x10cb   : > { %5114 = vmatprep.subr.mxu0 %v3796_v1  ;;  %v3975_v1 = vld [vmem:[#allocation6 + $0x798] sm:$0xff] }
0x10cc   : > { %5115 = vmatpush3.msra.mxu0 %v3780_v45  ;;  %v3959_v45 = vld [vmem:[#allocation6 + $0x718] sm:$0xff] }
0x10cd   : > { %5116 = vmatprep.subr.mxu0 %v3795_v47  ;;  %v3974_v47 = vld [vmem:[#allocation6 + $0x790] sm:$0xff] }
0x10ce   : > { %5117 = vmatpush3.msra.mxu0 %v3779_v2  ;;  %v3958_v2 = vld [vmem:[#allocation6 + $0x710] sm:$0xff] }
0x10cf   : > { %5118 = vmatprep.subr.mxu0 %v3794_v5  ;;  %v3973_v5 = vld [vmem:[#allocation6 + $0x788] sm:$0xff] }
0x10d0   : > { %5119 = vmatpush3.msra.mxu0 %v3778_v7  ;;  %v3957_v7 = vld [vmem:[#allocation6 + $0x708] sm:$0xff] }
0x10d1   : > { %5120 = vmatprep.subr.mxu0 %v3793_v8  ;;  %v3972_v8 = vld [vmem:[#allocation6 + $0x780] sm:$0xff] }
0x10d2   : > { %5121 = vmatpush3.msra.mxu0 %v3777_v9  ;;  %v3956_v9 = vld [vmem:[#allocation6 + $0x700] sm:$0xff] }
0x10d3   : > { %5122 = vmatprep.subr.mxu0 %v3792_v10  ;;  %v4856_v10 = vld [vmem:[%s6056_s6 + $0x70] sm:$0xff] }
0x10d4   : > { %5123 = vmatpush3.msra.mxu0 %v3776_v11 }
0x10d5   : > { %5124 = vmatprep.subr.mxu0 %v3791_v12 }
0x10d6   : > { %5125 = vmatpush3.msra.mxu0 %v3775_v55 }
0x10d7   : > { %5126 = vmatprep.subr.mxu0 %v3790_v58 }
0x10d8   : > { %5127 = vmatpush3.msra.mxu0 %v3774_v13 }
0x10d9   : > { %5128 = vmatprep.subr.mxu0 %v3789_v14 }
0x10da   : > { %5129 = vmatpush3.msra.mxu0 %v3773_v15 }
0x10db   : > { %5130 = vmatprep.subr.mxu0 %v3788_v16  ;;  %v4857_v16 = vld [vmem:[%s6056_s6 + $0x78] sm:$0xff] }
0x10dc   : > { %5131 = vmatpush3.msra.mxu0 %v3772_v17  ;;  %v4176_v17 = vld [vmem:[#allocation6 + $0x8f8] sm:$0xff] }
0x10dd   : > { %5132 = vmatprep.subr.mxu0 %v3787_v18  ;;  %v4160_v18 = vld [vmem:[#allocation6 + $0x878] sm:$0xff] }
0x10de   : > { %5133 = vmatpush3.msra.mxu0 %v3771_v19  ;;  %v4175_v19 = vld [vmem:[#allocation6 + $0x8f0] sm:$0xff] }
0x10df   : > { %5134 = vmatprep.subr.mxu0 %v3786_v26  ;;  %v4159_v26 = vld [vmem:[#allocation6 + $0x870] sm:$0xff] }
0x10e0   : > { %5135 = vmatpush3.msra.mxu0 %v3770_v20  ;;  %v4174_v20 = vld [vmem:[#allocation6 + $0x8e8] sm:$0xff] }
0x10e1   : > { %5136 = vmatprep.subr.mxu0 %v3785_v21  ;;  %v4158_v21 = vld [vmem:[#allocation6 + $0x868] sm:$0xff] }
0x10e2   : > { %5137 = vmatpush3.msra.mxu0 %v3769_v3  ;;  %v4173_v3 = vld [vmem:[#allocation6 + $0x8e0] sm:$0xff] }
0x10e3   : > { %5138 = vmatprep.subr.mxu0 %v3784_v63  ;;  %v4157_v63 = vld [vmem:[#allocation6 + $0x860] sm:$0xff] }
0x10e4   : > { %5139 = vmatpush3.msra.mxu0 %v3768_v22  ;;  %v4172_v22 = vld [vmem:[#allocation6 + $0x8d8] sm:$0xff] }
0x10e5   : > { %5140 = vmatprep.subr.mxu0 %v3783_v6  ;;  %v4156_v6 = vld [vmem:[#allocation6 + $0x858] sm:$0xff] }
0x10e6   : > { %5141 = vmatpush3.msra.mxu0 %v3767_v23  ;;  %v4171_v23 = vld [vmem:[#allocation6 + $0x8d0] sm:$0xff] }
0x10e7   : > { %3864 = vmatmul.mubr.f32.vlgmr.msra.gmra.mxu0 %v5883_v31 }
0x10e8   : > { %5282 = vmatprep.mubr.msk.f32.mxu0 %vm2456_vm5, %v4856_v10 }
0x1187   : > { %v5274_v27 = vpop.f32.mrf.mxu0 }
0x1188   : > { %v5976_v28 = vadd.f32 %v5274_v27, %v5960_v52  ;;  %v3965_v52 = vld [vmem:[#allocation6 + $0x748] sm:$0xff] }
0x1189   : > { %v3755_v29 = vpop.f32.mrf.mxu0  ;;  %v4170_v27 = vld [vmem:[#allocation6 + $0x8c8] sm:$0xff] }
0x118a   : > { %v5979_v30 = vadd.f32 %v3755_v29, %v5963_v36  ;;  %v3964_v36 = vld [vmem:[#allocation6 + $0x740] sm:$0xff] }
0x118b   : > { %v4153_v29 = vld [vmem:[#allocation6 + $0x840] sm:$0xff] }
0x11a7   : > { %v5142_v33 = vpop.f32.mrf.mxu0 }
0x11a9   : > { %v5143_v34 = vpop.f32.mrf.mxu0 }
0x11aa   : > { %v5144_v35 = vadd.f32 %v5143_v34, %v5142_v33  ;;  %v4152_v33 = vld [vmem:[#allocation6 + $0x838] sm:$0xff]  ;;  %v4167_v34 = vld [vmem:[#allocation6 + $0x8b0] sm:$0xff] }
0x11ac   : > { %5275 = vmatprep.subr.mxu1 %v5144_v35 }
0x11ad   : > { %5276 = vmatpush3.msra.mxu1 %v5144_v35  ;;  %v4151_v35 = vld [vmem:[#allocation6 + $0x830] sm:$0xff] }
0x11ae   : > { %5278 = vmatmul.mubr.msk.f32.vlgmr.msra.gmra.mxu1 %vm2456_vm5, %v4853_v37  ;;  %5148 = vmatprep.subr.mxu1 %v3987_v39  ;;  %v4166_v37 = vld [vmem:[#allocation6 + $0x8a8] sm:$0xff] }
0x11af   : > { %5149 = vmatpush3.msra.mxu1 %v3971_v40  ;;  %4052 = vmatprep.mubr.f32.mxu1 %v5885_v32  ;;  %v4150_v39 = vld [vmem:[#allocation6 + $0x828] sm:$0xff]  ;;  %v4165_v40 = vld [vmem:[#allocation6 + $0x8a0] sm:$0xff] }
0x11b0   : > { %5150 = vmatprep.subr.mxu1 %v3986_v41  ;;  %v4149_v41 = vld [vmem:[#allocation6 + $0x820] sm:$0xff] }
0x11b1   : > { %5151 = vmatpush3.msra.mxu1 %v3970_v42  ;;  %v4164_v42 = vld [vmem:[#allocation6 + $0x898] sm:$0xff] }
0x11b2   : > { %5152 = vmatprep.subr.mxu1 %v3985_v56  ;;  %v4148_v56 = vld [vmem:[#allocation6 + $0x818] sm:$0xff] }
0x11b3   : > { %5153 = vmatpush3.msra.mxu1 %v3969_v43  ;;  %v4163_v43 = vld [vmem:[#allocation6 + $0x890] sm:$0xff] }
0x11b4   : > { %5154 = vmatprep.subr.mxu1 %v3984_v24  ;;  %v4147_v24 = vld [vmem:[#allocation6 + $0x810] sm:$0xff] }
0x11b5   : > { %5155 = vmatpush3.msra.mxu1 %v3968_v44  ;;  %v4162_v44 = vld [vmem:[#allocation6 + $0x888] sm:$0xff] }
0x11b6   : > { %5156 = vmatprep.subr.mxu1 %v3983_v46  ;;  %v4146_v46 = vld [vmem:[#allocation6 + $0x808] sm:$0xff] }
0x11b7   : > { %5157 = vmatpush3.msra.mxu1 %v3967_v48  ;;  %v4161_v48 = vld [vmem:[#allocation6 + $0x880] sm:$0xff] }
0x11b8   : > { %5158 = vmatprep.subr.mxu1 %v3982_v49  ;;  %v4145_v49 = vld [vmem:[#allocation6 + $0x800] sm:$0xff] }
0x11b9   : > { %5159 = vmatpush3.msra.mxu1 %v3966_v50  ;;  %v4860_v50 = vld [vmem:[%s6056_s6 + $0x80] sm:$0xff] }
0x11ba   : > { %5160 = vmatprep.subr.mxu1 %v3981_v51 }
0x11bb   : > { %5161 = vmatpush3.msra.mxu1 %v3965_v52 }
0x11bc   : > { %5162 = vmatprep.subr.mxu1 %v3980_v53 }
0x11bd   : > { %5163 = vmatpush3.msra.mxu1 %v3964_v36 }
0x11be   : > { %5164 = vmatprep.subr.mxu1 %v3979_v38 }
0x11bf   : > { %5165 = vmatpush3.msra.mxu1 %v3963_v54 }
0x11c0   : > { %5166 = vmatprep.subr.mxu1 %v3978_v57 }
0x11c1   : > { %5167 = vmatpush3.msra.mxu1 %v3962_v59  ;;  %v4861_v59 = vld [vmem:[%s6056_s6 + $0x88] sm:$0xff] }
0x11c2   : > { %5168 = vmatprep.subr.mxu1 %v3977_v60 }
0x11c3   : > { %5169 = vmatpush3.msra.mxu1 %v3961_v61  ;;  %v4343_v61 = vpop.permute.xlu1 %4342 }
0x11c4   : > { %5170 = vmatprep.subr.mxu1 %v3976_v62 }
0x11c5   : > { %5171 = vmatpush3.msra.mxu1 %v3960_v0 }
0x11c6   : > { %5172 = vmatprep.subr.mxu1 %v3975_v1 }
0x11c7   : > { %5173 = vmatpush3.msra.mxu1 %v3959_v45  ;;  %v4338_v45 = vpop.permute.xlu0 %4337 }
0x11c8   : > { %5174 = vmatprep.subr.mxu1 %v3974_v47 }
0x11c9   : > { %5175 = vmatpush3.msra.mxu1 %v3958_v2 }
0x11ca   : > { %5176 = vmatprep.subr.mxu1 %v3973_v5 }
0x11cb   : > { %5177 = vmatpush3.msra.mxu1 %v3957_v7 }
0x11cc   : > { %5178 = vmatprep.subr.mxu1 %v3972_v8 }
0x11cd   : > { %5179 = vmatpush3.msra.mxu1 %v3956_v9 }
0x11ce   : > { %4053 = vmatmul.mubr.f32.vlgmr.msra.gmra.mxu1 %v5883_v31 }
0x11cf   : > { %5287 = vmatprep.mubr.msk.f32.mxu1 %vm2456_vm5, %v4860_v50 }
0x126e   : > { %v5279_v11 = vpop.f32.mrf.mxu1 }
0x126f   : > { %v5992_v12 = vadd.f32 %v5279_v11, %v5976_v28  ;;  %v4154_v28 = vld [vmem:[#allocation6 + $0x848] sm:$0xff] }
0x1270   : > { %v3944_v55 = vpop.f32.mrf.mxu1 }
0x1271   : > { %v5995_v58 = vadd.f32 %v3944_v55, %v5979_v30  ;;  %v4168_v30 = vld [vmem:[#allocation6 + $0x8b8] sm:$0xff] }
0x128e   : > { %v5180_v13 = vpop.f32.mrf.mxu1 }
0x1290   : > { %v5181_v14 = vpop.f32.mrf.mxu1 }
0x1291   : > { %v5182_v15 = vadd.f32 %v5181_v14, %v5180_v13  ;;  %v4364_v13 = vld [vmem:[#allocation7] sm:$0xff] }
0x1293   : > { %5280 = vmatprep.subr.mxu0 %v5182_v15 }
0x1294   : > { %5281 = vmatpush3.msra.mxu0 %v5182_v15 }
0x1295   : > { %5283 = vmatmul.mubr.msk.f32.vlgmr.msra.gmra.mxu0 %vm2456_vm5, %v4857_v16  ;;  %5186 = vmatprep.subr.mxu0 %v4176_v17  ;;  %v4365_v16 = vld [vmem:[#allocation7 + $0x8] sm:$0xff] }
0x1296   : > { %5187 = vmatpush3.msra.mxu0 %v4160_v18  ;;  %4241 = vmatprep.mubr.f32.mxu0 %v5885_v32  ;;  %v4169_v32 = vld [vmem:[#allocation6 + $0x8c0] sm:$0xff] }
0x1297   : > { %5188 = vmatprep.subr.mxu0 %v4175_v19 }
0x1298   : > { %5189 = vmatpush3.msra.mxu0 %v4159_v26 }
0x1299   : > { %5190 = vmatprep.subr.mxu0 %v4174_v20 }
0x129a   : > { %5191 = vmatpush3.msra.mxu0 %v4158_v21 }
0x129b   : > { %5192 = vmatprep.subr.mxu0 %v4173_v3 }
0x129c   : > { %5193 = vmatpush3.msra.mxu0 %v4157_v63 }
0x129d   : > { %5194 = vmatprep.subr.mxu0 %v4172_v22 }
0x129e   : > { %5195 = vmatpush3.msra.mxu0 %v4156_v6 }
0x129f   : > { %5196 = vmatprep.subr.mxu0 %v4171_v23  ;;  %v4871_v23 = vld [vmem:[%s6057_s7 + $0x18] sm:$0xff] }
0x12a0   : > { %5197 = vmatpush3.msra.mxu0 %v4155_v25 }
0x12a1   : > { %5198 = vmatprep.subr.mxu0 %v4170_v27 }
0x12a2   : > { %5199 = vmatpush3.msra.mxu0 %v4154_v28 }
0x12a3   : > { %5200 = vmatprep.subr.mxu0 %v4169_v32 }
0x12a4   : > { %5201 = vmatpush3.msra.mxu0 %v4153_v29 }
0x12a5   : > { %5202 = vmatprep.subr.mxu0 %v4168_v30 }
0x12a6   : > { %5203 = vmatpush3.msra.mxu0 %v4152_v33 }
0x12a7   : > { %5204 = vmatprep.subr.mxu0 %v4167_v34 }
0x12a8   : > { %5205 = vmatpush3.msra.mxu0 %v4151_v35  ;;  %v4870_v35 = vld [vmem:[%s6057_s7 + $0x10] sm:$0xff] }
0x12a9   : > { %5206 = vmatprep.subr.mxu0 %v4166_v37  ;;  %v4873_v37 = vld [vmem:[%s6057_s7 + $0x28] sm:$0xff] }
0x12aa   : > { %5207 = vmatpush3.msra.mxu0 %v4150_v39  ;;  %v4872_v39 = vld [vmem:[%s6057_s7 + $0x20] sm:$0xff] }
0x12ab   : > { %5208 = vmatprep.subr.mxu0 %v4165_v40  ;;  %v4588_v40 = vld [vmem:[%s6060_s10] sm:$0xff] }
0x12ac   : > { %5209 = vmatpush3.msra.mxu0 %v4149_v41 }
0x12ad   : > { %5210 = vmatprep.subr.mxu0 %v4164_v42 }
0x12ae   : > { %5211 = vmatpush3.msra.mxu0 %v4148_v56 }
0x12af   : > { %5212 = vmatprep.subr.mxu0 %v4163_v43 }
0x12b0   : > { %5213 = vmatpush3.msra.mxu0 %v4147_v24 }
0x12b1   : > { %5214 = vmatprep.subr.mxu0 %v4162_v44 }
0x12b2   : > { %5215 = vmatpush3.msra.mxu0 %v4146_v46 }
0x12b3   : > { %5216 = vmatprep.subr.mxu0 %v4161_v48 }
0x12b4   : > { %5217 = vmatpush3.msra.mxu0 %v4145_v49 }
0x12b5   : > { %4242 = vmatmul.mubr.f32.vlgmr.msra.gmra.mxu0 %v5883_v31 }
0x1355   : > { %v5284_v51 = vpop.f32.mrf.mxu0 }
0x1356   : > { %v4143_v52 = vadd.f32 %v5284_v51, %v5992_v12 }
0x1357   : > { %v4133_v53 = vpop.f32.mrf.mxu0 }
0x1358   : > { %v4142_v36 = vadd.f32 %v4133_v53, %v5995_v58  ;;  %v4587_v53 = vld [vmem:[#allocation9] sm:$0xff] }
0x1375   : > { %v5218_v38 = vpop.f32.mrf.mxu0 }
0x1377   : > { %v5219_v54 = vpop.f32.mrf.mxu0 }
0x1378   : > { %v5220_v57 = vadd.f32 %v5219_v54, %v5218_v38 }
0x137a   : > { %5285 = vmatprep.subr.mxu1 %v5220_v57 }
0x137b   : > { %5286 = vmatpush3.msra.mxu1 %v5220_v57 }
0x137c   : > { %5288 = vmatmul.mubr.msk.f32.vlgmr.msra.gmra.mxu1 %vm2456_vm5, %v4861_v59 }
0x137d   : > { %5294 = vmatprep.mubr.msk.f32.mxu1 %vm4366_vm9, %v4364_v13 }
0x143c   : > { %v5289_v31 = vpop.f32.mrf.mxu1 }
0x143d   : > { %v4332_v60 = vadd.f32 %v5289_v31, %v4143_v52 }
0x143e   : > { %v4322_v62 = vpop.f32.mrf.mxu1 }
0x143f   : > { %v4346_v0 = vadd.f32 %v4343_v61, %v4332_v60  ;;  %v4331_v1 = vadd.f32 %v4322_v62, %v4142_v36 }
0x1441   : > { %v4351_v47 = vmul.f32 1.442695, %v4346_v0  ;;  %v4345_v2 = vadd.f32 %v4338_v45, %v4331_v1  ;;  %vm4348_vm7 = vcmp.gt.f32.partialorder %v4346_v0, 0.0 }
0x1443   : > { %5386 = vpow2.f32 %v4351_v47  ;;  %v4349_v5 = vmul.f32 1.442695, %v4345_v2  ;;  %vm4347_vm8 = vcmp.gt.f32.partialorder %v4345_v2, 0.0 }
0x1445   : > { %5388 = vpow2.f32 %v4349_v5 }
0x1450   : > { %v5387_v7 = vpop.eup %5386 }
0x1451   : > { %v4865_v8 = vadd.f32 -1.0, %v5387_v7 }
0x1452   : > { %v5389_v9 = vpop.eup %5388 }
0x1453   : > { %v4356_v10 = vsel %vm4348_vm7, %v4346_v0, %v4865_v8  ;;  %v4864_v11 = vadd.f32 -1.0, %v5389_v9 }
0x1454   : > { %v4361_v12 = vsel %vm4357_vm6, %v4356_v10, 0.0 }
0x1455   : > { %4362 = vadd.xlane.f32.xlu1 %v4361_v12  ;;  %v4355_v55 = vsel %vm4347_vm8, %v4345_v2, %v4864_v11 }
0x1456   : > { %v4358_v58 = vsel %vm4357_vm6, %v4355_v55, 0.0 }
0x1457   : > { %4359 = vadd.xlane.f32.xlu0 %v4358_v58 }
0x14de   : > { %v4363_v14 = vpop.xlane.xlu1 %4362 }
0x14df   : > { %5290 = vmatprep.subr.mxu1 %v4363_v14 }
0x14e0   : > { %5291 = vmatpush3.msra.mxu1 %v4363_v14  ;;  %v4360_v15 = vpop.xlane.xlu0 %4359 }
0x14e1   : > { %5292 = vmatprep.subr.mxu1 %v4360_v15 }
0x14e2   : > { %5293 = vmatpush3.msra.mxu1 %v4360_v15 }
0x14e3   : > { %5295 = vmatmul.mubr.msk.f32.vlgmr.msra.gmra.mxu1 %vm4366_vm9, %v4365_v16 }
0x14e4   : > { %5301 = vmatprep.mubr.msk.f32.mxu1 %vm4366_vm9, %v4364_v13 }
0x15a3   : > { %v5296_v17 = vpop.f32.mrf.mxu1 }
0x15a4   : > { %4455 = vperm.xlu0 %5377, %v5296_v17  }
0x15a5   : > { %v4439_v18 = vpop.f32.mrf.mxu1 }
0x15a6   : > { %4450 = vperm.xlu1 %5378, %v4439_v18  }
0x161f   : > { %v4456_v19 = vpop.permute.xlu0 %4455 }
0x1620   : > { %v4459_v26 = vsub.f32 %v4356_v10, %v4456_v19 }
0x1621   : > { %v4451_v20 = vpop.permute.xlu1 %4450 }
0x1622   : > { %v4458_v21 = vsub.f32 %v4355_v55, %v4451_v20  ;;  %v4461_v3 = vmul.f32 %v4459_v26, %v4459_v26 }
0x1624   : > { %v4465_v63 = vsel %vm4357_vm6, %v4461_v3, 0.0  ;;  %v4460_v22 = vmul.f32 %v4458_v21, %v4458_v21 }
0x1625   : > { %4466 = vadd.xlane.f32.xlu1 %v4465_v63 }
0x1626   : > { %v4462_v6 = vsel %vm4357_vm6, %v4460_v22, 0.0 }
0x1627   : > { %4463 = vadd.xlane.f32.xlu0 %v4462_v6 }
0x1636   : > { %4567 = vperm.xlu1 %5378, %v4871_v23  }
0x16ae   : > { %v4467_v25 = vpop.xlane.xlu1 %4466 }
0x16af   : > { %5297 = vmatprep.subr.mxu1 %v4467_v25 }
0x16b0   : > { %v4464_v27 = vpop.xlane.xlu0 %4463  ;;  %5298 = vmatpush3.msra.mxu1 %v4467_v25 }
0x16b1   : > { %5299 = vmatprep.subr.mxu1 %v4464_v27 }
0x16b2   : > { %5300 = vmatpush3.msra.mxu1 %v4464_v27  ;;  %v4568_v41 = vpop.permute.xlu1 %4567 }
0x16b3   : > { %5302 = vmatmul.mubr.msk.f32.vlgmr.msra.gmra.mxu1 %vm4366_vm9, %v4365_v16  ;;  %5304 = vmatprep.subr.mxu1 %v5554_v4 }
0x16b4   : > { %5308 = vmatprep.mubr.msk.f32.mxu1 %vm5556_vm4, %v5554_v4 }
0x1773   : > { %v5303_v28 = vpop.f32.mrf.mxu1 }
0x1774   : > { %v4540_v32 = vadd.f32 1e-05, %v5303_v28 }
0x1775   : > { %v4534_v29 = vpop.f32.mrf.mxu1 }
0x1776   : > { %5390 = vrsqrt.f32 %v4540_v32  ;;  %v4535_v30 = vadd.f32 1e-05, %v4534_v29 }
0x1778   : > { %5392 = vrsqrt.f32 %v4535_v30 }
0x1783   : > { %v5391_v33 = vpop.eup %5390 }
0x1784   : > { %4552 = vperm.xlu0 %5377, %v5391_v33  }
0x1785   : > { %v5393_v34 = vpop.eup %5392 }
0x1786   : > { %4547 = vperm.xlu1 %5378, %v5393_v34  }
0x1788   : > { %4562 = vperm.xlu0 %5377, %v4870_v35  }
0x178a   : > { %4582 = vperm.xlu1 %5378, %v4873_v37  }
0x178c   : > { %4577 = vperm.xlu0 %5377, %v4872_v39  }
0x178e   : > { %4591 = vperm.xlu1 %5378, %v4588_v40  }
0x17ff   : > { %v4553_v42 = vpop.permute.xlu0 %4552 }
0x1800   : > { %v4556_v56 = vmul.f32 %v4553_v42, %v4459_v26 }
0x1801   : > { %v4548_v43 = vpop.permute.xlu1 %4547 }
0x1802   : > { %v4555_v24 = vmul.f32 %v4548_v43, %v4458_v21  ;;  %v4571_v46 = vmul.f32 %v4568_v41, %v4556_v56 }
0x1803   : > { %v4563_v44 = vpop.permute.xlu0 %4562 }
0x1804   : > { %v4570_v49 = vmul.f32 %v4563_v44, %v4555_v24 }
0x1805   : > { %v4583_v48 = vpop.permute.xlu1 %4582 }
0x1806   : > { %v4586_v50 = vadd.f32 %v4583_v48, %v4571_v46 }
0x1807   : > { %v4578_v51 = vpop.permute.xlu0 %4577 }
0x1808   : > { %v4585_v52 = vadd.f32 %v4578_v51, %v4570_v49  ;;  %5305 = vmatpush3.msra.mxu1 %v4586_v50 }
0x1809   : > { %5306 = vmatprep.subr.mxu1 %v5554_v4  ;;  %v4592_v36 = vpop.permute.xlu1 %4591 }
0x180a   : > { %5307 = vmatpush3.msra.mxu1 %v4585_v52 }
0x180b   : > { %5309 = vmatmul.mubr.msk.f32.vlgmr.msra.gmra.mxu1 %vm4366_vm9, %v4587_v53 }
0x18cb   : > { %v4663_v38 = vpop.f32.mrf.mxu1 }
0x18cc   : > { %v4664_v54 = vadd.f32 %v4663_v38, %v4592_v36 }
0x18cd   : > { %v5310_v57 = vpop.f32.mrf.mxu1 }
0x18ce   : > { %4667 = vst.msk [vmem:[%s453_s22] sm:$0xff] %vm4357_vm6, %v4664_v54 }
0x18cf PF: > { %s24_s17 = sadd.s32 1, %s5543_s17  }
0x18d0   : > { %p21_p3 = scmp.ge.s32.totalorder %s24_s17, 4  }
0x18d2   :  { %23 = sbr.rel (!%p21_p3) target bundleno = 3 (0x3), region = 151 }
0x18d7   :  { %4687 = vsyncpa [#allocation3], 1 }
0x18d8   :  { %4689 = vsyncpa [#allocation3 + $0x1], 1 }
0x18d9   :  { %4690 = vsyncpa [#allocation5], 1 }
0x18da   :  { %4691 = vsyncpa [#allocation8], 1 }

</bundles_post_ra>
